<compile_context>
chip_gen: v6e
topology: v6e:2x2x1
jax: 0.10.0
libtpu: 0.0.40
codegen_flags: <defaults>
</compile_context>

<pallas_src>
import math
from functools import partial

import numpy as np
import jax
import jax.numpy as jnp
from jax.experimental import pallas as pl
from jax.experimental.pallas import tpu as pltpu

BN_EPS = 1e-5
LANE = 128          # only the final (stored) classifier dim is padded to this
STEM_K = 16         # stem im2col contraction (9 taps) padded to the bf16 sublane pack
VMEM_LIMIT = 32 * 1024 * 1024


# ----------------------------------------------------------------------------- helpers
def _make_divisible(v, divisor=8, min_value=None):
    if min_value is None:
        min_value = divisor
    new_v = max(min_value, int(v + divisor / 2) // divisor * divisor)
    if new_v < 0.9 * v:
        new_v += divisor
    return new_v


def _round_up(x, m):
    return (x + m - 1) // m * m


class BlockCfg:
    """Mirrors MBConvConfig / FusedMBConvConfig (kind selects the block type)."""

    def __init__(self, kind, expand_ratio, kernel, stride, input_channels, out_channels, num_layers):
        self.kind = kind                      # 'fused' or 'mbconv'
        self.expand_ratio = expand_ratio
        self.kernel = kernel
        self.stride = stride
        self.input_channels = input_channels
        self.out_channels = out_channels
        self.num_layers = num_layers


# ----------------------------------------------------------------------------- in-kernel building blocks
def _silu(x):
    return x * jax.nn.sigmoid(x)


def _tree_sum(parts):
    # pairwise tree reduction (avoids a serial dependent accumulation chain)
    while len(parts) > 1:
        nxt = [parts[i] + parts[i + 1] for i in range(0, len(parts) - 1, 2)]
        if len(parts) % 2 == 1:
            nxt.append(parts[-1])
        parts = nxt
    return parts[0]


def _conv_taps(a, t_ref, w_ref):
    # KxK conv on a flattened [HW, Cin] activation.
    #   t_ref: [k*k, OHW, HW]  constant 0/1 tap-selection matrices (boundary + stride folded in)
    #   w_ref: [k*k, Cin, Cout] conv weights (tap-major)
    # Returns [OHW, Cout] f32 (pre-BN / pre-activation).
    kk = t_ref.shape[0]
    a16 = a.astype(jnp.bfloat16)
    parts = []
    for t in range(kk):
        tap = jnp.dot(t_ref[t], a16, preferred_element_type=jnp.float32)     # [OHW, Cin]
        parts.append(jnp.dot(tap.astype(jnp.bfloat16), w_ref[t],
                             preferred_element_type=jnp.float32))            # [OHW, Cout]
    return _tree_sum(parts)


def _dwconv_taps(a, t_ref, w_ref):
    # Depthwise KxK conv on a flattened [HW, C] activation.
    #   t_ref: [k*k, OHW, HW] 0/1 tap-selection matrices; w_ref: [k*k, 1, C] f32 weights.
    kk = t_ref.shape[0]
    a16 = a.astype(jnp.bfloat16)
    parts = []
    for t in range(kk):
        tap = jnp.dot(t_ref[t], a16, preferred_element_type=jnp.float32)     # [OHW, C]
        parts.append(tap * w_ref[t])                                         # [OHW, C] * [1, C]
    return _tree_sum(parts)


# ----------------------------------------------------------------------------- the fused network kernel
def _effnet_kernel(plan, *refs):
    # refs = [stem_patches, <all weights in plan order>, out]
    x_ref, o_ref = refs[0], refs[-1]
    it = iter(refs[1:-1])
    nxt = lambda: next(it)  # noqa: E731

    # ---- stem: conv (host im2col'd, K padded to 16) + folded BN + SiLU ----
    ws, ss, bs = nxt(), nxt(), nxt()
    a = jnp.dot(x_ref[0], ws[...], preferred_element_type=jnp.float32)       # [HW, c0]
    a = _silu(a * ss[...] + bs[...])

    # ---- inverted-residual blocks (all activations stay VMEM-resident f32) ----
    for blk in plan["blocks"]:
        kind = blk["kind"]
        if kind == "fused_simple":
            # FusedMBConv, expand_ratio == 1: KxK conv + BN + SiLU (+ residual)
            t_ref, wk, sc, bc = nxt(), nxt(), nxt(), nxt()
            y = _conv_taps(a, t_ref, wk)
            y = _silu(y * sc[...] + bc[...])
            a = y + a if blk["use_res"] else y
        elif kind == "fused":
            # FusedMBConv with expansion: KxK expand conv + BN + SiLU, 1x1 project + BN (+ res)
            t_ref, wk, se_, be_ = nxt(), nxt(), nxt(), nxt()
            wp, sp, bp = nxt(), nxt(), nxt()
            h = _conv_taps(a, t_ref, wk)
            h = _silu(h * se_[...] + be_[...])
            y = jnp.dot(h.astype(jnp.bfloat16), wp[...], preferred_element_type=jnp.float32)
            y = y * sp[...] + bp[...]
            a = y + a if blk["use_res"] else y
        else:  # mbconv
            res = a
            if blk["has_expand"]:
                we, se_, be_ = nxt(), nxt(), nxt()
                a = jnp.dot(a.astype(jnp.bfloat16), we[...], preferred_element_type=jnp.float32)
                a = _silu(a * se_[...] + be_[...])
            # depthwise conv + BN + SiLU
            t_ref, wd, sd, bd = nxt(), nxt(), nxt(), nxt()
            d = _dwconv_taps(a, t_ref, wd)
            d = _silu(d * sd[...] + bd[...])
            # squeeze-excitation (squeeze dim padded only to 8 sublanes)
            w1, b1, w2, b2 = nxt(), nxt(), nxt(), nxt()
            s = jnp.sum(d, axis=0, keepdims=True) * (1.0 / d.shape[0])       # [1, Cexp]
            s8 = jnp.broadcast_to(s, (8, s.shape[1])).astype(jnp.bfloat16)
            h1 = jnp.dot(s8, w1[...], preferred_element_type=jnp.float32) + b1[...]
            h1 = _silu(h1)
            g = jax.nn.sigmoid(
                jnp.dot(h1.astype(jnp.bfloat16), w2[...], preferred_element_type=jnp.float32)
                + b2[...])
            d = d * g[0:1, :]
            # 1x1 project + BN (+ residual)
            wp, sp, bp = nxt(), nxt(), nxt()
            y = jnp.dot(d.astype(jnp.bfloat16), wp[...], preferred_element_type=jnp.float32)
            y = y * sp[...] + bp[...]
            a = y + res if blk["use_res"] else y

    # ---- head: last 1x1 conv + BN + SiLU, global avg pool, classifier ----
    wl, sl, bl = nxt(), nxt(), nxt()
    h = jnp.dot(a.astype(jnp.bfloat16), wl[...], preferred_element_type=jnp.float32)
    h = _silu(h * sl[...] + bl[...])
    pooled = jnp.sum(h, axis=0, keepdims=True) * (1.0 / h.shape[0])          # [1, Clast]
    wf, bf_ = nxt(), nxt()
    p8 = jnp.broadcast_to(pooled, (8, pooled.shape[1])).astype(jnp.bfloat16)
    o_ref[0] = jnp.dot(p8, wf[...], preferred_element_type=jnp.float32) + bf_[...]


# ----------------------------------------------------------------------------- host-side layout helpers
def _stem_patches(x_nhwc):
    # 3x3 / stride-2 / pad-1 im2col of the single-channel input -> [B, OH*OW, 16] bf16
    B, H, W, _ = x_nhwc.shape
    xp = jnp.pad(x_nhwc, ((0, 0), (1, 1), (1, 1), (0, 0)))
    OH, OW = (H - 1) // 2 + 1, (W - 1) // 2 + 1
    taps = []
    for i in range(3):
        for j in range(3):
            taps.append(xp[:, i:i + 2 * (OH - 1) + 1:2, j:j + 2 * (OW - 1) + 1:2, 0])
    p = jnp.stack(taps, axis=-1).reshape(B, OH * OW, 9)
    p = jnp.pad(p, ((0, 0), (0, 0), (0, STEM_K - 9)))
    return p.astype(jnp.bfloat16), OH, OW


def _tap_select_matrix(H, W, k, stride):
    # [k*k, OH*OW, H*W] 0/1 matrices: T[t] @ flat_activation == tap t (with 'same' padding zeros
    # and the stride-s subsampling folded in).
    r = k // 2
    OH, OW = (H - 1) // stride + 1, (W - 1) // stride + 1
    T = np.zeros((k * k, OH * OW, H * W), np.float32)
    for t in range(k * k):
        di, dj = t // k - r, t % k - r
        for oh in range(OH):
            for ow in range(OW):
                ih, iw = oh * stride + di, ow * stride + dj
                if 0 <= ih < H and 0 <= iw < W:
                    T[t, oh * OW + ow, ih * W + iw] = 1.0
    return jnp.asarray(T, jnp.bfloat16)


def _const_spec(arr):
    n = arr.ndim
    return pl.BlockSpec(tuple(arr.shape), lambda b, _n=n: (0,) * _n)


# ----------------------------------------------------------------------------- parameter construction
def _init_conv(key, cout, cin, k):
    fan_out = cout * k * k                               # kaiming_normal_(mode='fan_out')
    std = math.sqrt(2.0 / fan_out)
    return jax.random.normal(key, (cout, cin, k, k), jnp.float32) * std


def _bn_fold(c):
    # eval-mode BN with gamma=1, beta=0, running_mean=0, running_var=1
    scale = jnp.full((1, c), 1.0 / math.sqrt(1.0 + BN_EPS), jnp.float32)
    bias = jnp.zeros((1, c), jnp.float32)
    return scale, bias


def _conv_kxk_params(key, cin, cout, k):
    w = _init_conv(key, cout, cin, k)                                        # [cout, cin, k, k]
    wt = jnp.transpose(w, (2, 3, 1, 0)).reshape(k * k, cin, cout).astype(jnp.bfloat16)
    s, b = _bn_fold(cout)
    return [wt, s, b]


def _conv_1x1_params(key, cin, cout):
    w = _init_conv(key, cout, cin, 1)[:, :, 0, 0]                            # [cout, cin]
    wt = jnp.transpose(w).astype(jnp.bfloat16)                               # [cin, cout]
    s, b = _bn_fold(cout)
    return [wt, s, b]


def _dw_params(key, c, k):
    w = _init_conv(key, c, 1, k)                                             # [c, 1, k, k]
    wt = jnp.transpose(w[:, 0], (1, 2, 0)).reshape(k * k, 1, c)              # [k*k, 1, c] f32
    s, b = _bn_fold(c)
    return [wt, s, b]


def _se_params(key1, key2, cexp, sq):
    sq_p = max(8, _round_up(sq, 8))        # review: pad squeeze dim to 8 (not 128)
    w1 = _init_conv(key1, sq, cexp, 1)[:, :, 0, 0]                           # [sq, cexp]
    w1 = jnp.pad(jnp.transpose(w1), ((0, 0), (0, sq_p - sq))).astype(jnp.bfloat16)   # [cexp, sq_p]
    b1 = jnp.zeros((1, sq_p), jnp.float32)
    w2 = _init_conv(key2, cexp, sq, 1)[:, :, 0, 0]                           # [cexp, sq]
    w2 = jnp.pad(jnp.transpose(w2), ((0, sq_p - sq), (0, 0))).astype(jnp.bfloat16)   # [sq_p, cexp]
    b2 = jnp.zeros((1, cexp), jnp.float32)
    return [w1, b1, w2, b2]


def build_model(key, settings, last_channel, num_classes, in_hw):
    keys = iter(jax.random.split(key, 64))
    weights, blocks_plan = [], []
    H, W = in_hw

    # stem: Conv2dNormActivation(1, c0, 3, stride=2, SiLU)
    c0 = settings[0].input_channels
    w = _init_conv(next(keys), c0, 1, 3)
    w2d = jnp.transpose(w[:, 0], (1, 2, 0)).reshape(9, c0)                   # tap-major
    w2d = jnp.pad(w2d, ((0, STEM_K - 9), (0, 0))).astype(jnp.bfloat16)
    s, b = _bn_fold(c0)
    weights += [w2d, s, b]
    H, W = (H - 1) // 2 + 1, (W - 1) // 2 + 1

    for cnf in settings:
        for li in range(cnf.num_layers):
            cin = cnf.input_channels if li == 0 else cnf.out_channels
            stride = cnf.stride if li == 0 else 1
            cout, k = cnf.out_channels, cnf.kernel
            use_res = stride == 1 and cin == cout
            exp = _make_divisible(cin * cnf.expand_ratio, 8)
            if cnf.kind == "fused":
                T = _tap_select_matrix(H, W, k, stride)
                if exp != cin:
                    weights += [T]
                    weights += _conv_kxk_params(next(keys), cin, exp, k)
                    weights += _conv_1x1_params(next(keys), exp, cout)
                    blocks_plan.append({"kind": "fused", "use_res": use_res})
                else:
                    weights += [T]
                    weights += _conv_kxk_params(next(keys), cin, cout, k)
                    blocks_plan.append({"kind": "fused_simple", "use_res": use_res})
            else:  # mbconv
                has_expand = exp != cin
                if has_expand:
                    weights += _conv_1x1_params(next(keys), cin, exp)
                weights += [_tap_select_matrix(H, W, k, stride)]
                weights += _dw_params(next(keys), exp, k)
                weights += _se_params(next(keys), next(keys), exp, max(1, cin // 4))
                weights += _conv_1x1_params(next(keys), exp, cout)
                blocks_plan.append({"kind": "mbconv", "use_res": use_res,
                                    "has_expand": has_expand})
            if stride == 2:
                H, W = (H - 1) // 2 + 1, (W - 1) // 2 + 1

    # head conv + classifier (nn.Linear init: uniform(+-1/sqrt(num_classes)), zero bias)
    lc_in = settings[-1].out_channels
    lc_out = last_channel if last_channel is not None else 4 * lc_in
    weights += _conv_1x1_params(next(keys), lc_in, lc_out)
    ncp = _round_up(num_classes, LANE)
    r = 1.0 / math.sqrt(num_classes)
    fcw = jax.random.uniform(next(keys), (num_classes, lc_out), jnp.float32, -r, r)
    fcw = jnp.pad(jnp.transpose(fcw), ((0, 0), (0, ncp - num_classes))).astype(jnp.bfloat16)
    weights += [fcw, jnp.zeros((1, ncp), jnp.float32)]

    plan = {"blocks": blocks_plan, "num_classes": num_classes, "ncp": ncp}
    return plan, weights


# ----------------------------------------------------------------------------- forward
def efficientnet_forward(plan, weights, x_nchw):
    B = x_nchw.shape[0]
    x = jnp.transpose(x_nchw, (0, 2, 3, 1)).astype(jnp.float32)              # NCHW -> NHWC
    xk, OH, OW = _stem_patches(x)                                            # [B, OH*OW, 16]
    ncp = plan["ncp"]
    out = pl.pallas_call(
        partial(_effnet_kernel, plan),
        out_shape=jax.ShapeDtypeStruct((B, 8, ncp), jnp.float32),
        grid=(B,),
        in_specs=[pl.BlockSpec((1, OH * OW, STEM_K), lambda b: (b, 0, 0))]
                 + [_const_spec(w) for w in weights],
        out_specs=pl.BlockSpec((1, 8, ncp), lambda b: (b, 0, 0)),
        compiler_params=pltpu.CompilerParams(
            dimension_semantics=("parallel",),
            vmem_limit_bytes=VMEM_LIMIT),
    )(xk, *weights)
    # TODO(synk): nn.Dropout and StochasticDepth are identity in inference mode.
    return out[:, 0, :plan["num_classes"]]


# ----------------------------------------------------------------------------- main
if __name__ == "__main__":
    key = jax.random.PRNGKey(0)
    k_param, k_input = jax.random.split(key)

    # tiny EfficientNetV2-style inverted-residual setting (stem takes 1 input channel,
    # matching the module's Conv2dNormActivation(1, ...)).
    settings = [
        BlockCfg("fused", 1.0, 3, 1, 8, 8, 1),
        BlockCfg("fused", 2.0, 3, 2, 8, 16, 1),
        BlockCfg("mbconv", 2.0, 3, 1, 16, 16, 1),
    ]
    last_channel = 64
    num_classes = 16

    plan, weights = build_model(k_param, settings, last_channel, num_classes, (16, 16))
    x = jax.random.normal(k_input, (2, 1, 16, 16), jnp.float32)              # NCHW like PyTorch

    fwd = jax.jit(partial(efficientnet_forward, plan))
    logits = jax.block_until_ready(fwd(weights, x))
    assert logits.shape == (2, num_classes), logits.shape
    assert bool(jnp.all(jnp.isfinite(logits)))
    print("KERNEL_OK")
</pallas_src>

<mosaic_0001>
module attributes {stable_mosaic.version = 11 : i64} {
  func.func @_effnet_kernel(%arg0: i32, %arg1: memref<1x64x16xbf16, #tpu.memory_space<vmem>>, %arg2: memref<16x8xbf16, #tpu.memory_space<vmem>>, %arg3: memref<1x8xf32, #tpu.memory_space<vmem>>, %arg4: memref<1x8xf32, #tpu.memory_space<vmem>>, %arg5: memref<9x64x64xbf16, #tpu.memory_space<vmem>>, %arg6: memref<9x8x8xbf16, #tpu.memory_space<vmem>>, %arg7: memref<1x8xf32, #tpu.memory_space<vmem>>, %arg8: memref<1x8xf32, #tpu.memory_space<vmem>>, %arg9: memref<9x16x64xbf16, #tpu.memory_space<vmem>>, %arg10: memref<9x8x16xbf16, #tpu.memory_space<vmem>>, %arg11: memref<1x16xf32, #tpu.memory_space<vmem>>, %arg12: memref<1x16xf32, #tpu.memory_space<vmem>>, %arg13: memref<16x16xbf16, #tpu.memory_space<vmem>>, %arg14: memref<1x16xf32, #tpu.memory_space<vmem>>, %arg15: memref<1x16xf32, #tpu.memory_space<vmem>>, %arg16: memref<16x32xbf16, #tpu.memory_space<vmem>>, %arg17: memref<1x32xf32, #tpu.memory_space<vmem>>, %arg18: memref<1x32xf32, #tpu.memory_space<vmem>>, %arg19: memref<9x16x16xbf16, #tpu.memory_space<vmem>>, %arg20: memref<9x1x32xf32, #tpu.memory_space<vmem>>, %arg21: memref<1x32xf32, #tpu.memory_space<vmem>>, %arg22: memref<1x32xf32, #tpu.memory_space<vmem>>, %arg23: memref<32x8xbf16, #tpu.memory_space<vmem>>, %arg24: memref<1x8xf32, #tpu.memory_space<vmem>>, %arg25: memref<8x32xbf16, #tpu.memory_space<vmem>>, %arg26: memref<1x32xf32, #tpu.memory_space<vmem>>, %arg27: memref<32x16xbf16, #tpu.memory_space<vmem>>, %arg28: memref<1x16xf32, #tpu.memory_space<vmem>>, %arg29: memref<1x16xf32, #tpu.memory_space<vmem>>, %arg30: memref<16x64xbf16, #tpu.memory_space<vmem>>, %arg31: memref<1x64xf32, #tpu.memory_space<vmem>>, %arg32: memref<1x64xf32, #tpu.memory_space<vmem>>, %arg33: memref<64x128xbf16, #tpu.memory_space<vmem>>, %arg34: memref<1x128xf32, #tpu.memory_space<vmem>>, %arg35: memref<1x8x128xf32, #tpu.memory_space<vmem>>) attributes {dimension_semantics = [#tpu.dimension_semantics<parallel>], iteration_bounds = array<i64: 2>, scalar_prefetch = 0 : i64, scratch_operands = 0 : i64, tpu.core_type = #tpu.core_type<tc>, window_params = [{transform_indices = @transform_0, window_bounds = array<i64: 1, 64, 16>}, {pipeline_mode = #tpu.pipeline_mode<synchronous>, transform_indices = @transform_1, window_bounds = array<i64: 16, 8>}, {pipeline_mode = #tpu.pipeline_mode<synchronous>, transform_indices = @transform_2, window_bounds = array<i64: 1, 8>}, {pipeline_mode = #tpu.pipeline_mode<synchronous>, transform_indices = @transform_3, window_bounds = array<i64: 1, 8>}, {pipeline_mode = #tpu.pipeline_mode<synchronous>, transform_indices = @transform_4, window_bounds = array<i64: 9, 64, 64>}, {pipeline_mode = #tpu.pipeline_mode<synchronous>, transform_indices = @transform_5, window_bounds = array<i64: 9, 8, 8>}, {pipeline_mode = #tpu.pipeline_mode<synchronous>, transform_indices = @transform_6, window_bounds = array<i64: 1, 8>}, {pipeline_mode = #tpu.pipeline_mode<synchronous>, transform_indices = @transform_7, window_bounds = array<i64: 1, 8>}, {pipeline_mode = #tpu.pipeline_mode<synchronous>, transform_indices = @transform_8, window_bounds = array<i64: 9, 16, 64>}, {pipeline_mode = #tpu.pipeline_mode<synchronous>, transform_indices = @transform_9, window_bounds = array<i64: 9, 8, 16>}, {pipeline_mode = #tpu.pipeline_mode<synchronous>, transform_indices = @transform_10, window_bounds = array<i64: 1, 16>}, {pipeline_mode = #tpu.pipeline_mode<synchronous>, transform_indices = @transform_11, window_bounds = array<i64: 1, 16>}, {pipeline_mode = #tpu.pipeline_mode<synchronous>, transform_indices = @transform_12, window_bounds = array<i64: 16, 16>}, {pipeline_mode = #tpu.pipeline_mode<synchronous>, transform_indices = @transform_13, window_bounds = array<i64: 1, 16>}, {pipeline_mode = #tpu.pipeline_mode<synchronous>, transform_indices = @transform_14, window_bounds = array<i64: 1, 16>}, {pipeline_mode = #tpu.pipeline_mode<synchronous>, transform_indices = @transform_15, window_bounds = array<i64: 16, 32>}, {pipeline_mode = #tpu.pipeline_mode<synchronous>, transform_indices = @transform_16, window_bounds = array<i64: 1, 32>}, {pipeline_mode = #tpu.pipeline_mode<synchronous>, transform_indices = @transform_17, window_bounds = array<i64: 1, 32>}, {pipeline_mode = #tpu.pipeline_mode<synchronous>, transform_indices = @transform_18, window_bounds = array<i64: 9, 16, 16>}, {pipeline_mode = #tpu.pipeline_mode<synchronous>, transform_indices = @transform_19, window_bounds = array<i64: 9, 1, 32>}, {pipeline_mode = #tpu.pipeline_mode<synchronous>, transform_indices = @transform_20, window_bounds = array<i64: 1, 32>}, {pipeline_mode = #tpu.pipeline_mode<synchronous>, transform_indices = @transform_21, window_bounds = array<i64: 1, 32>}, {pipeline_mode = #tpu.pipeline_mode<synchronous>, transform_indices = @transform_22, window_bounds = array<i64: 32, 8>}, {pipeline_mode = #tpu.pipeline_mode<synchronous>, transform_indices = @transform_23, window_bounds = array<i64: 1, 8>}, {pipeline_mode = #tpu.pipeline_mode<synchronous>, transform_indices = @transform_24, window_bounds = array<i64: 8, 32>}, {pipeline_mode = #tpu.pipeline_mode<synchronous>, transform_indices = @transform_25, window_bounds = array<i64: 1, 32>}, {pipeline_mode = #tpu.pipeline_mode<synchronous>, transform_indices = @transform_26, window_bounds = array<i64: 32, 16>}, {pipeline_mode = #tpu.pipeline_mode<synchronous>, transform_indices = @transform_27, window_bounds = array<i64: 1, 16>}, {pipeline_mode = #tpu.pipeline_mode<synchronous>, transform_indices = @transform_28, window_bounds = array<i64: 1, 16>}, {pipeline_mode = #tpu.pipeline_mode<synchronous>, transform_indices = @transform_29, window_bounds = array<i64: 16, 64>}, {pipeline_mode = #tpu.pipeline_mode<synchronous>, transform_indices = @transform_30, window_bounds = array<i64: 1, 64>}, {pipeline_mode = #tpu.pipeline_mode<synchronous>, transform_indices = @transform_31, window_bounds = array<i64: 1, 64>}, {pipeline_mode = #tpu.pipeline_mode<synchronous>, transform_indices = @transform_32, window_bounds = array<i64: 64, 128>}, {pipeline_mode = #tpu.pipeline_mode<synchronous>, transform_indices = @transform_33, window_bounds = array<i64: 1, 128>}, {transform_indices = @transform_34, window_bounds = array<i64: 1, 8, 128>}]} {
    %c0 = arith.constant 0 : index
    %c0_0 = arith.constant 0 : index
    %c0_1 = arith.constant 0 : index
    %0 = vector.load %arg1[%c0, %c0_0, %c0_1] : memref<1x64x16xbf16, #tpu.memory_space<vmem>>, vector<1x64x16xbf16>
    %1 = vector.shape_cast %0 : vector<1x64x16xbf16> to vector<64x16xbf16>
    %c0_2 = arith.constant 0 : index
    %c0_3 = arith.constant 0 : index
    %2 = vector.load %arg2[%c0_2, %c0_3] : memref<16x8xbf16, #tpu.memory_space<vmem>>, vector<16x8xbf16>
    %cst = arith.constant dense<0.000000e+00> : vector<64x8xf32>
    %3 = tpu.matmul %1, %2, %cst {dimension_numbers = #tpu.dot_dimension_numbers<[1], [0], [0], [1], [0, 0, 1, 1], [], []>} : vector<64x16xbf16>, vector<16x8xbf16>, vector<64x8xf32> -> vector<64x8xf32>
    %c0_4 = arith.constant 0 : index
    %c0_5 = arith.constant 0 : index
    %4 = vector.load %arg3[%c0_4, %c0_5] : memref<1x8xf32, #tpu.memory_space<vmem>>, vector<1x8xf32>
    %5 = vector.broadcast %4 : vector<1x8xf32> to vector<64x8xf32>
    %6 = arith.mulf %3, %5 : vector<64x8xf32>
    %c0_6 = arith.constant 0 : index
    %c0_7 = arith.constant 0 : index
    %7 = vector.load %arg4[%c0_6, %c0_7] : memref<1x8xf32, #tpu.memory_space<vmem>>, vector<1x8xf32>
    %8 = vector.broadcast %7 : vector<1x8xf32> to vector<64x8xf32>
    %9 = arith.addf %6, %8 : vector<64x8xf32>
    %10 = arith.negf %9 : vector<64x8xf32>
    %11 = math.exp %10 : vector<64x8xf32>
    %cst_8 = arith.constant 1.000000e+00 : f32
    %12 = vector.broadcast %cst_8 : f32 to vector<64x8xf32>
    %13 = arith.addf %12, %11 : vector<64x8xf32>
    %14 = arith.divf %12, %13 : vector<64x8xf32>
    %15 = arith.mulf %9, %14 : vector<64x8xf32>
    %16 = arith.truncf %15 : vector<64x8xf32> to vector<64x8xbf16>
    %c0_9 = arith.constant 0 : index
    %c0_10 = arith.constant 0 : index
    %c0_11 = arith.constant 0 : index
    %17 = vector.load %arg5[%c0_9, %c0_10, %c0_11] : memref<9x64x64xbf16, #tpu.memory_space<vmem>>, vector<1x64x64xbf16>
    %18 = vector.shape_cast %17 : vector<1x64x64xbf16> to vector<64x64xbf16>
    %cst_12 = arith.constant dense<0.000000e+00> : vector<64x8xf32>
    %19 = tpu.matmul %18, %16, %cst_12 {dimension_numbers = #tpu.dot_dimension_numbers<[1], [0], [0], [1], [0, 0, 1, 1], [], []>} : vector<64x64xbf16>, vector<64x8xbf16>, vector<64x8xf32> -> vector<64x8xf32>
    %20 = arith.truncf %19 : vector<64x8xf32> to vector<64x8xbf16>
    %c0_13 = arith.constant 0 : index
    %c0_14 = arith.constant 0 : index
    %c0_15 = arith.constant 0 : index
    %21 = vector.load %arg6[%c0_13, %c0_14, %c0_15] : memref<9x8x8xbf16, #tpu.memory_space<vmem>>, vector<1x8x8xbf16>
    %22 = vector.shape_cast %21 : vector<1x8x8xbf16> to vector<8x8xbf16>
    %cst_16 = arith.constant dense<0.000000e+00> : vector<64x8xf32>
    %23 = tpu.matmul %20, %22, %cst_16 {dimension_numbers = #tpu.dot_dimension_numbers<[1], [0], [0], [1], [0, 0, 1, 1], [], []>} : vector<64x8xbf16>, vector<8x8xbf16>, vector<64x8xf32> -> vector<64x8xf32>
    %c1 = arith.constant 1 : index
    %c0_17 = arith.constant 0 : index
    %c0_18 = arith.constant 0 : index
    %24 = vector.load %arg5[%c1, %c0_17, %c0_18] : memref<9x64x64xbf16, #tpu.memory_space<vmem>>, vector<1x64x64xbf16>
    %25 = vector.shape_cast %24 : vector<1x64x64xbf16> to vector<64x64xbf16>
    %cst_19 = arith.constant dense<0.000000e+00> : vector<64x8xf32>
    %26 = tpu.matmul %25, %16, %cst_19 {dimension_numbers = #tpu.dot_dimension_numbers<[1], [0], [0], [1], [0, 0, 1, 1], [], []>} : vector<64x64xbf16>, vector<64x8xbf16>, vector<64x8xf32> -> vector<64x8xf32>
    %27 = arith.truncf %26 : vector<64x8xf32> to vector<64x8xbf16>
    %c1_20 = arith.constant 1 : index
    %c0_21 = arith.constant 0 : index
    %c0_22 = arith.constant 0 : index
    %28 = vector.load %arg6[%c1_20, %c0_21, %c0_22] : memref<9x8x8xbf16, #tpu.memory_space<vmem>>, vector<1x8x8xbf16>
    %29 = vector.shape_cast %28 : vector<1x8x8xbf16> to vector<8x8xbf16>
    %cst_23 = arith.constant dense<0.000000e+00> : vector<64x8xf32>
    %30 = tpu.matmul %27, %29, %cst_23 {dimension_numbers = #tpu.dot_dimension_numbers<[1], [0], [0], [1], [0, 0, 1, 1], [], []>} : vector<64x8xbf16>, vector<8x8xbf16>, vector<64x8xf32> -> vector<64x8xf32>
    %c2 = arith.constant 2 : index
    %c0_24 = arith.constant 0 : index
    %c0_25 = arith.constant 0 : index
    %31 = vector.load %arg5[%c2, %c0_24, %c0_25] : memref<9x64x64xbf16, #tpu.memory_space<vmem>>, vector<1x64x64xbf16>
    %32 = vector.shape_cast %31 : vector<1x64x64xbf16> to vector<64x64xbf16>
    %cst_26 = arith.constant dense<0.000000e+00> : vector<64x8xf32>
    %33 = tpu.matmul %32, %16, %cst_26 {dimension_numbers = #tpu.dot_dimension_numbers<[1], [0], [0], [1], [0, 0, 1, 1], [], []>} : vector<64x64xbf16>, vector<64x8xbf16>, vector<64x8xf32> -> vector<64x8xf32>
    %34 = arith.truncf %33 : vector<64x8xf32> to vector<64x8xbf16>
    %c2_27 = arith.constant 2 : index
    %c0_28 = arith.constant 0 : index
    %c0_29 = arith.constant 0 : index
    %35 = vector.load %arg6[%c2_27, %c0_28, %c0_29] : memref<9x8x8xbf16, #tpu.memory_space<vmem>>, vector<1x8x8xbf16>
    %36 = vector.shape_cast %35 : vector<1x8x8xbf16> to vector<8x8xbf16>
    %cst_30 = arith.constant dense<0.000000e+00> : vector<64x8xf32>
    %37 = tpu.matmul %34, %36, %cst_30 {dimension_numbers = #tpu.dot_dimension_numbers<[1], [0], [0], [1], [0, 0, 1, 1], [], []>} : vector<64x8xbf16>, vector<8x8xbf16>, vector<64x8xf32> -> vector<64x8xf32>
    %c3 = arith.constant 3 : index
    %c0_31 = arith.constant 0 : index
    %c0_32 = arith.constant 0 : index
    %38 = vector.load %arg5[%c3, %c0_31, %c0_32] : memref<9x64x64xbf16, #tpu.memory_space<vmem>>, vector<1x64x64xbf16>
    %39 = vector.shape_cast %38 : vector<1x64x64xbf16> to vector<64x64xbf16>
    %cst_33 = arith.constant dense<0.000000e+00> : vector<64x8xf32>
    %40 = tpu.matmul %39, %16, %cst_33 {dimension_numbers = #tpu.dot_dimension_numbers<[1], [0], [0], [1], [0, 0, 1, 1], [], []>} : vector<64x64xbf16>, vector<64x8xbf16>, vector<64x8xf32> -> vector<64x8xf32>
    %41 = arith.truncf %40 : vector<64x8xf32> to vector<64x8xbf16>
    %c3_34 = arith.constant 3 : index
    %c0_35 = arith.constant 0 : index
    %c0_36 = arith.constant 0 : index
    %42 = vector.load %arg6[%c3_34, %c0_35, %c0_36] : memref<9x8x8xbf16, #tpu.memory_space<vmem>>, vector<1x8x8xbf16>
    %43 = vector.shape_cast %42 : vector<1x8x8xbf16> to vector<8x8xbf16>
    %cst_37 = arith.constant dense<0.000000e+00> : vector<64x8xf32>
    %44 = tpu.matmul %41, %43, %cst_37 {dimension_numbers = #tpu.dot_dimension_numbers<[1], [0], [0], [1], [0, 0, 1, 1], [], []>} : vector<64x8xbf16>, vector<8x8xbf16>, vector<64x8xf32> -> vector<64x8xf32>
    %c4 = arith.constant 4 : index
    %c0_38 = arith.constant 0 : index
    %c0_39 = arith.constant 0 : index
    %45 = vector.load %arg5[%c4, %c0_38, %c0_39] : memref<9x64x64xbf16, #tpu.memory_space<vmem>>, vector<1x64x64xbf16>
    %46 = vector.shape_cast %45 : vector<1x64x64xbf16> to vector<64x64xbf16>
    %cst_40 = arith.constant dense<0.000000e+00> : vector<64x8xf32>
    %47 = tpu.matmul %46, %16, %cst_40 {dimension_numbers = #tpu.dot_dimension_numbers<[1], [0], [0], [1], [0, 0, 1, 1], [], []>} : vector<64x64xbf16>, vector<64x8xbf16>, vector<64x8xf32> -> vector<64x8xf32>
    %48 = arith.truncf %47 : vector<64x8xf32> to vector<64x8xbf16>
    %c4_41 = arith.constant 4 : index
    %c0_42 = arith.constant 0 : index
    %c0_43 = arith.constant 0 : index
    %49 = vector.load %arg6[%c4_41, %c0_42, %c0_43] : memref<9x8x8xbf16, #tpu.memory_space<vmem>>, vector<1x8x8xbf16>
    %50 = vector.shape_cast %49 : vector<1x8x8xbf16> to vector<8x8xbf16>
    %cst_44 = arith.constant dense<0.000000e+00> : vector<64x8xf32>
    %51 = tpu.matmul %48, %50, %cst_44 {dimension_numbers = #tpu.dot_dimension_numbers<[1], [0], [0], [1], [0, 0, 1, 1], [], []>} : vector<64x8xbf16>, vector<8x8xbf16>, vector<64x8xf32> -> vector<64x8xf32>
    %c5 = arith.constant 5 : index
    %c0_45 = arith.constant 0 : index
    %c0_46 = arith.constant 0 : index
    %52 = vector.load %arg5[%c5, %c0_45, %c0_46] : memref<9x64x64xbf16, #tpu.memory_space<vmem>>, vector<1x64x64xbf16>
    %53 = vector.shape_cast %52 : vector<1x64x64xbf16> to vector<64x64xbf16>
    %cst_47 = arith.constant dense<0.000000e+00> : vector<64x8xf32>
    %54 = tpu.matmul %53, %16, %cst_47 {dimension_numbers = #tpu.dot_dimension_numbers<[1], [0], [0], [1], [0, 0, 1, 1], [], []>} : vector<64x64xbf16>, vector<64x8xbf16>, vector<64x8xf32> -> vector<64x8xf32>
    %55 = arith.truncf %54 : vector<64x8xf32> to vector<64x8xbf16>
    %c5_48 = arith.constant 5 : index
    %c0_49 = arith.constant 0 : index
    %c0_50 = arith.constant 0 : index
    %56 = vector.load %arg6[%c5_48, %c0_49, %c0_50] : memref<9x8x8xbf16, #tpu.memory_space<vmem>>, vector<1x8x8xbf16>
    %57 = vector.shape_cast %56 : vector<1x8x8xbf16> to vector<8x8xbf16>
    %cst_51 = arith.constant dense<0.000000e+00> : vector<64x8xf32>
    %58 = tpu.matmul %55, %57, %cst_51 {dimension_numbers = #tpu.dot_dimension_numbers<[1], [0], [0], [1], [0, 0, 1, 1], [], []>} : vector<64x8xbf16>, vector<8x8xbf16>, vector<64x8xf32> -> vector<64x8xf32>
    %c6 = arith.constant 6 : index
    %c0_52 = arith.constant 0 : index
    %c0_53 = arith.constant 0 : index
    %59 = vector.load %arg5[%c6, %c0_52, %c0_53] : memref<9x64x64xbf16, #tpu.memory_space<vmem>>, vector<1x64x64xbf16>
    %60 = vector.shape_cast %59 : vector<1x64x64xbf16> to vector<64x64xbf16>
    %cst_54 = arith.constant dense<0.000000e+00> : vector<64x8xf32>
    %61 = tpu.matmul %60, %16, %cst_54 {dimension_numbers = #tpu.dot_dimension_numbers<[1], [0], [0], [1], [0, 0, 1, 1], [], []>} : vector<64x64xbf16>, vector<64x8xbf16>, vector<64x8xf32> -> vector<64x8xf32>
    %62 = arith.truncf %61 : vector<64x8xf32> to vector<64x8xbf16>
    %c6_55 = arith.constant 6 : index
    %c0_56 = arith.constant 0 : index
    %c0_57 = arith.constant 0 : index
    %63 = vector.load %arg6[%c6_55, %c0_56, %c0_57] : memref<9x8x8xbf16, #tpu.memory_space<vmem>>, vector<1x8x8xbf16>
    %64 = vector.shape_cast %63 : vector<1x8x8xbf16> to vector<8x8xbf16>
    %cst_58 = arith.constant dense<0.000000e+00> : vector<64x8xf32>
    %65 = tpu.matmul %62, %64, %cst_58 {dimension_numbers = #tpu.dot_dimension_numbers<[1], [0], [0], [1], [0, 0, 1, 1], [], []>} : vector<64x8xbf16>, vector<8x8xbf16>, vector<64x8xf32> -> vector<64x8xf32>
    %c7 = arith.constant 7 : index
    %c0_59 = arith.constant 0 : index
    %c0_60 = arith.constant 0 : index
    %66 = vector.load %arg5[%c7, %c0_59, %c0_60] : memref<9x64x64xbf16, #tpu.memory_space<vmem>>, vector<1x64x64xbf16>
    %67 = vector.shape_cast %66 : vector<1x64x64xbf16> to vector<64x64xbf16>
    %cst_61 = arith.constant dense<0.000000e+00> : vector<64x8xf32>
    %68 = tpu.matmul %67, %16, %cst_61 {dimension_numbers = #tpu.dot_dimension_numbers<[1], [0], [0], [1], [0, 0, 1, 1], [], []>} : vector<64x64xbf16>, vector<64x8xbf16>, vector<64x8xf32> -> vector<64x8xf32>
    %69 = arith.truncf %68 : vector<64x8xf32> to vector<64x8xbf16>
    %c7_62 = arith.constant 7 : index
    %c0_63 = arith.constant 0 : index
    %c0_64 = arith.constant 0 : index
    %70 = vector.load %arg6[%c7_62, %c0_63, %c0_64] : memref<9x8x8xbf16, #tpu.memory_space<vmem>>, vector<1x8x8xbf16>
    %71 = vector.shape_cast %70 : vector<1x8x8xbf16> to vector<8x8xbf16>
    %cst_65 = arith.constant dense<0.000000e+00> : vector<64x8xf32>
    %72 = tpu.matmul %69, %71, %cst_65 {dimension_numbers = #tpu.dot_dimension_numbers<[1], [0], [0], [1], [0, 0, 1, 1], [], []>} : vector<64x8xbf16>, vector<8x8xbf16>, vector<64x8xf32> -> vector<64x8xf32>
    %c8 = arith.constant 8 : index
    %c0_66 = arith.constant 0 : index
    %c0_67 = arith.constant 0 : index
    %73 = vector.load %arg5[%c8, %c0_66, %c0_67] : memref<9x64x64xbf16, #tpu.memory_space<vmem>>, vector<1x64x64xbf16>
    %74 = vector.shape_cast %73 : vector<1x64x64xbf16> to vector<64x64xbf16>
    %cst_68 = arith.constant dense<0.000000e+00> : vector<64x8xf32>
    %75 = tpu.matmul %74, %16, %cst_68 {dimension_numbers = #tpu.dot_dimension_numbers<[1], [0], [0], [1], [0, 0, 1, 1], [], []>} : vector<64x64xbf16>, vector<64x8xbf16>, vector<64x8xf32> -> vector<64x8xf32>
    %76 = arith.truncf %75 : vector<64x8xf32> to vector<64x8xbf16>
    %c8_69 = arith.constant 8 : index
    %c0_70 = arith.constant 0 : index
    %c0_71 = arith.constant 0 : index
    %77 = vector.load %arg6[%c8_69, %c0_70, %c0_71] : memref<9x8x8xbf16, #tpu.memory_space<vmem>>, vector<1x8x8xbf16>
    %78 = vector.shape_cast %77 : vector<1x8x8xbf16> to vector<8x8xbf16>
    %cst_72 = arith.constant dense<0.000000e+00> : vector<64x8xf32>
    %79 = tpu.matmul %76, %78, %cst_72 {dimension_numbers = #tpu.dot_dimension_numbers<[1], [0], [0], [1], [0, 0, 1, 1], [], []>} : vector<64x8xbf16>, vector<8x8xbf16>, vector<64x8xf32> -> vector<64x8xf32>
    %80 = arith.addf %23, %30 : vector<64x8xf32>
    %81 = arith.addf %37, %44 : vector<64x8xf32>
    %82 = arith.addf %51, %58 : vector<64x8xf32>
    %83 = arith.addf %65, %72 : vector<64x8xf32>
    %84 = arith.addf %80, %81 : vector<64x8xf32>
    %85 = arith.addf %82, %83 : vector<64x8xf32>
    %86 = arith.addf %84, %85 : vector<64x8xf32>
    %87 = arith.addf %86, %79 : vector<64x8xf32>
    %c0_73 = arith.constant 0 : index
    %c0_74 = arith.constant 0 : index
    %88 = vector.load %arg7[%c0_73, %c0_74] : memref<1x8xf32, #tpu.memory_space<vmem>>, vector<1x8xf32>
    %89 = vector.broadcast %88 : vector<1x8xf32> to vector<64x8xf32>
    %90 = arith.mulf %87, %89 : vector<64x8xf32>
    %c0_75 = arith.constant 0 : index
    %c0_76 = arith.constant 0 : index
    %91 = vector.load %arg8[%c0_75, %c0_76] : memref<1x8xf32, #tpu.memory_space<vmem>>, vector<1x8xf32>
    %92 = vector.broadcast %91 : vector<1x8xf32> to vector<64x8xf32>
    %93 = arith.addf %90, %92 : vector<64x8xf32>
    %94 = arith.negf %93 : vector<64x8xf32>
    %95 = math.exp %94 : vector<64x8xf32>
    %cst_77 = arith.constant 1.000000e+00 : f32
    %96 = vector.broadcast %cst_77 : f32 to vector<64x8xf32>
    %97 = arith.addf %96, %95 : vector<64x8xf32>
    %98 = arith.divf %96, %97 : vector<64x8xf32>
    %99 = arith.mulf %93, %98 : vector<64x8xf32>
    %100 = arith.addf %99, %15 : vector<64x8xf32>
    %101 = arith.truncf %100 : vector<64x8xf32> to vector<64x8xbf16>
    %c0_78 = arith.constant 0 : index
    %c0_79 = arith.constant 0 : index
    %c0_80 = arith.constant 0 : index
    %102 = vector.load %arg9[%c0_78, %c0_79, %c0_80] : memref<9x16x64xbf16, #tpu.memory_space<vmem>>, vector<1x16x64xbf16>
    %103 = vector.shape_cast %102 : vector<1x16x64xbf16> to vector<16x64xbf16>
    %cst_81 = arith.constant dense<0.000000e+00> : vector<16x8xf32>
    %104 = tpu.matmul %103, %101, %cst_81 {dimension_numbers = #tpu.dot_dimension_numbers<[1], [0], [0], [1], [0, 0, 1, 1], [], []>} : vector<16x64xbf16>, vector<64x8xbf16>, vector<16x8xf32> -> vector<16x8xf32>
    %105 = arith.truncf %104 : vector<16x8xf32> to vector<16x8xbf16>
    %c0_82 = arith.constant 0 : index
    %c0_83 = arith.constant 0 : index
    %c0_84 = arith.constant 0 : index
    %106 = vector.load %arg10[%c0_82, %c0_83, %c0_84] : memref<9x8x16xbf16, #tpu.memory_space<vmem>>, vector<1x8x16xbf16>
    %107 = vector.shape_cast %106 : vector<1x8x16xbf16> to vector<8x16xbf16>
    %cst_85 = arith.constant dense<0.000000e+00> : vector<16x16xf32>
    %108 = tpu.matmul %105, %107, %cst_85 {dimension_numbers = #tpu.dot_dimension_numbers<[1], [0], [0], [1], [0, 0, 1, 1], [], []>} : vector<16x8xbf16>, vector<8x16xbf16>, vector<16x16xf32> -> vector<16x16xf32>
    %c1_86 = arith.constant 1 : index
    %c0_87 = arith.constant 0 : index
    %c0_88 = arith.constant 0 : index
    %109 = vector.load %arg9[%c1_86, %c0_87, %c0_88] : memref<9x16x64xbf16, #tpu.memory_space<vmem>>, vector<1x16x64xbf16>
    %110 = vector.shape_cast %109 : vector<1x16x64xbf16> to vector<16x64xbf16>
    %cst_89 = arith.constant dense<0.000000e+00> : vector<16x8xf32>
    %111 = tpu.matmul %110, %101, %cst_89 {dimension_numbers = #tpu.dot_dimension_numbers<[1], [0], [0], [1], [0, 0, 1, 1], [], []>} : vector<16x64xbf16>, vector<64x8xbf16>, vector<16x8xf32> -> vector<16x8xf32>
    %112 = arith.truncf %111 : vector<16x8xf32> to vector<16x8xbf16>
    %c1_90 = arith.constant 1 : index
    %c0_91 = arith.constant 0 : index
    %c0_92 = arith.constant 0 : index
    %113 = vector.load %arg10[%c1_90, %c0_91, %c0_92] : memref<9x8x16xbf16, #tpu.memory_space<vmem>>, vector<1x8x16xbf16>
    %114 = vector.shape_cast %113 : vector<1x8x16xbf16> to vector<8x16xbf16>
    %cst_93 = arith.constant dense<0.000000e+00> : vector<16x16xf32>
    %115 = tpu.matmul %112, %114, %cst_93 {dimension_numbers = #tpu.dot_dimension_numbers<[1], [0], [0], [1], [0, 0, 1, 1], [], []>} : vector<16x8xbf16>, vector<8x16xbf16>, vector<16x16xf32> -> vector<16x16xf32>
    %c2_94 = arith.constant 2 : index
    %c0_95 = arith.constant 0 : index
    %c0_96 = arith.constant 0 : index
    %116 = vector.load %arg9[%c2_94, %c0_95, %c0_96] : memref<9x16x64xbf16, #tpu.memory_space<vmem>>, vector<1x16x64xbf16>
    %117 = vector.shape_cast %116 : vector<1x16x64xbf16> to vector<16x64xbf16>
    %cst_97 = arith.constant dense<0.000000e+00> : vector<16x8xf32>
    %118 = tpu.matmul %117, %101, %cst_97 {dimension_numbers = #tpu.dot_dimension_numbers<[1], [0], [0], [1], [0, 0, 1, 1], [], []>} : vector<16x64xbf16>, vector<64x8xbf16>, vector<16x8xf32> -> vector<16x8xf32>
    %119 = arith.truncf %118 : vector<16x8xf32> to vector<16x8xbf16>
    %c2_98 = arith.constant 2 : index
    %c0_99 = arith.constant 0 : index
    %c0_100 = arith.constant 0 : index
    %120 = vector.load %arg10[%c2_98, %c0_99, %c0_100] : memref<9x8x16xbf16, #tpu.memory_space<vmem>>, vector<1x8x16xbf16>
    %121 = vector.shape_cast %120 : vector<1x8x16xbf16> to vector<8x16xbf16>
    %cst_101 = arith.constant dense<0.000000e+00> : vector<16x16xf32>
    %122 = tpu.matmul %119, %121, %cst_101 {dimension_numbers = #tpu.dot_dimension_numbers<[1], [0], [0], [1], [0, 0, 1, 1], [], []>} : vector<16x8xbf16>, vector<8x16xbf16>, vector<16x16xf32> -> vector<16x16xf32>
    %c3_102 = arith.constant 3 : index
    %c0_103 = arith.constant 0 : index
    %c0_104 = arith.constant 0 : index
    %123 = vector.load %arg9[%c3_102, %c0_103, %c0_104] : memref<9x16x64xbf16, #tpu.memory_space<vmem>>, vector<1x16x64xbf16>
    %124 = vector.shape_cast %123 : vector<1x16x64xbf16> to vector<16x64xbf16>
    %cst_105 = arith.constant dense<0.000000e+00> : vector<16x8xf32>
    %125 = tpu.matmul %124, %101, %cst_105 {dimension_numbers = #tpu.dot_dimension_numbers<[1], [0], [0], [1], [0, 0, 1, 1], [], []>} : vector<16x64xbf16>, vector<64x8xbf16>, vector<16x8xf32> -> vector<16x8xf32>
    %126 = arith.truncf %125 : vector<16x8xf32> to vector<16x8xbf16>
    %c3_106 = arith.constant 3 : index
    %c0_107 = arith.constant 0 : index
    %c0_108 = arith.constant 0 : index
    %127 = vector.load %arg10[%c3_106, %c0_107, %c0_108] : memref<9x8x16xbf16, #tpu.memory_space<vmem>>, vector<1x8x16xbf16>
    %128 = vector.shape_cast %127 : vector<1x8x16xbf16> to vector<8x16xbf16>
    %cst_109 = arith.constant dense<0.000000e+00> : vector<16x16xf32>
    %129 = tpu.matmul %126, %128, %cst_109 {dimension_numbers = #tpu.dot_dimension_numbers<[1], [0], [0], [1], [0, 0, 1, 1], [], []>} : vector<16x8xbf16>, vector<8x16xbf16>, vector<16x16xf32> -> vector<16x16xf32>
    %c4_110 = arith.constant 4 : index
    %c0_111 = arith.constant 0 : index
    %c0_112 = arith.constant 0 : index
    %130 = vector.load %arg9[%c4_110, %c0_111, %c0_112] : memref<9x16x64xbf16, #tpu.memory_space<vmem>>, vector<1x16x64xbf16>
    %131 = vector.shape_cast %130 : vector<1x16x64xbf16> to vector<16x64xbf16>
    %cst_113 = arith.constant dense<0.000000e+00> : vector<16x8xf32>
    %132 = tpu.matmul %131, %101, %cst_113 {dimension_numbers = #tpu.dot_dimension_numbers<[1], [0], [0], [1], [0, 0, 1, 1], [], []>} : vector<16x64xbf16>, vector<64x8xbf16>, vector<16x8xf32> -> vector<16x8xf32>
    %133 = arith.truncf %132 : vector<16x8xf32> to vector<16x8xbf16>
    %c4_114 = arith.constant 4 : index
    %c0_115 = arith.constant 0 : index
    %c0_116 = arith.constant 0 : index
    %134 = vector.load %arg10[%c4_114, %c0_115, %c0_116] : memref<9x8x16xbf16, #tpu.memory_space<vmem>>, vector<1x8x16xbf16>
    %135 = vector.shape_cast %134 : vector<1x8x16xbf16> to vector<8x16xbf16>
    %cst_117 = arith.constant dense<0.000000e+00> : vector<16x16xf32>
    %136 = tpu.matmul %133, %135, %cst_117 {dimension_numbers = #tpu.dot_dimension_numbers<[1], [0], [0], [1], [0, 0, 1, 1], [], []>} : vector<16x8xbf16>, vector<8x16xbf16>, vector<16x16xf32> -> vector<16x16xf32>
    %c5_118 = arith.constant 5 : index
    %c0_119 = arith.constant 0 : index
    %c0_120 = arith.constant 0 : index
    %137 = vector.load %arg9[%c5_118, %c0_119, %c0_120] : memref<9x16x64xbf16, #tpu.memory_space<vmem>>, vector<1x16x64xbf16>
    %138 = vector.shape_cast %137 : vector<1x16x64xbf16> to vector<16x64xbf16>
    %cst_121 = arith.constant dense<0.000000e+00> : vector<16x8xf32>
    %139 = tpu.matmul %138, %101, %cst_121 {dimension_numbers = #tpu.dot_dimension_numbers<[1], [0], [0], [1], [0, 0, 1, 1], [], []>} : vector<16x64xbf16>, vector<64x8xbf16>, vector<16x8xf32> -> vector<16x8xf32>
    %140 = arith.truncf %139 : vector<16x8xf32> to vector<16x8xbf16>
    %c5_122 = arith.constant 5 : index
    %c0_123 = arith.constant 0 : index
    %c0_124 = arith.constant 0 : index
    %141 = vector.load %arg10[%c5_122, %c0_123, %c0_124] : memref<9x8x16xbf16, #tpu.memory_space<vmem>>, vector<1x8x16xbf16>
    %142 = vector.shape_cast %141 : vector<1x8x16xbf16> to vector<8x16xbf16>
    %cst_125 = arith.constant dense<0.000000e+00> : vector<16x16xf32>
    %143 = tpu.matmul %140, %142, %cst_125 {dimension_numbers = #tpu.dot_dimension_numbers<[1], [0], [0], [1], [0, 0, 1, 1], [], []>} : vector<16x8xbf16>, vector<8x16xbf16>, vector<16x16xf32> -> vector<16x16xf32>
    %c6_126 = arith.constant 6 : index
    %c0_127 = arith.constant 0 : index
    %c0_128 = arith.constant 0 : index
    %144 = vector.load %arg9[%c6_126, %c0_127, %c0_128] : memref<9x16x64xbf16, #tpu.memory_space<vmem>>, vector<1x16x64xbf16>
    %145 = vector.shape_cast %144 : vector<1x16x64xbf16> to vector<16x64xbf16>
    %cst_129 = arith.constant dense<0.000000e+00> : vector<16x8xf32>
    %146 = tpu.matmul %145, %101, %cst_129 {dimension_numbers = #tpu.dot_dimension_numbers<[1], [0], [0], [1], [0, 0, 1, 1], [], []>} : vector<16x64xbf16>, vector<64x8xbf16>, vector<16x8xf32> -> vector<16x8xf32>
    %147 = arith.truncf %146 : vector<16x8xf32> to vector<16x8xbf16>
    %c6_130 = arith.constant 6 : index
    %c0_131 = arith.constant 0 : index
    %c0_132 = arith.constant 0 : index
    %148 = vector.load %arg10[%c6_130, %c0_131, %c0_132] : memref<9x8x16xbf16, #tpu.memory_space<vmem>>, vector<1x8x16xbf16>
    %149 = vector.shape_cast %148 : vector<1x8x16xbf16> to vector<8x16xbf16>
    %cst_133 = arith.constant dense<0.000000e+00> : vector<16x16xf32>
    %150 = tpu.matmul %147, %149, %cst_133 {dimension_numbers = #tpu.dot_dimension_numbers<[1], [0], [0], [1], [0, 0, 1, 1], [], []>} : vector<16x8xbf16>, vector<8x16xbf16>, vector<16x16xf32> -> vector<16x16xf32>
    %c7_134 = arith.constant 7 : index
    %c0_135 = arith.constant 0 : index
    %c0_136 = arith.constant 0 : index
    %151 = vector.load %arg9[%c7_134, %c0_135, %c0_136] : memref<9x16x64xbf16, #tpu.memory_space<vmem>>, vector<1x16x64xbf16>
    %152 = vector.shape_cast %151 : vector<1x16x64xbf16> to vector<16x64xbf16>
    %cst_137 = arith.constant dense<0.000000e+00> : vector<16x8xf32>
    %153 = tpu.matmul %152, %101, %cst_137 {dimension_numbers = #tpu.dot_dimension_numbers<[1], [0], [0], [1], [0, 0, 1, 1], [], []>} : vector<16x64xbf16>, vector<64x8xbf16>, vector<16x8xf32> -> vector<16x8xf32>
    %154 = arith.truncf %153 : vector<16x8xf32> to vector<16x8xbf16>
    %c7_138 = arith.constant 7 : index
    %c0_139 = arith.constant 0 : index
    %c0_140 = arith.constant 0 : index
    %155 = vector.load %arg10[%c7_138, %c0_139, %c0_140] : memref<9x8x16xbf16, #tpu.memory_space<vmem>>, vector<1x8x16xbf16>
    %156 = vector.shape_cast %155 : vector<1x8x16xbf16> to vector<8x16xbf16>
    %cst_141 = arith.constant dense<0.000000e+00> : vector<16x16xf32>
    %157 = tpu.matmul %154, %156, %cst_141 {dimension_numbers = #tpu.dot_dimension_numbers<[1], [0], [0], [1], [0, 0, 1, 1], [], []>} : vector<16x8xbf16>, vector<8x16xbf16>, vector<16x16xf32> -> vector<16x16xf32>
    %c8_142 = arith.constant 8 : index
    %c0_143 = arith.constant 0 : index
    %c0_144 = arith.constant 0 : index
    %158 = vector.load %arg9[%c8_142, %c0_143, %c0_144] : memref<9x16x64xbf16, #tpu.memory_space<vmem>>, vector<1x16x64xbf16>
    %159 = vector.shape_cast %158 : vector<1x16x64xbf16> to vector<16x64xbf16>
    %cst_145 = arith.constant dense<0.000000e+00> : vector<16x8xf32>
    %160 = tpu.matmul %159, %101, %cst_145 {dimension_numbers = #tpu.dot_dimension_numbers<[1], [0], [0], [1], [0, 0, 1, 1], [], []>} : vector<16x64xbf16>, vector<64x8xbf16>, vector<16x8xf32> -> vector<16x8xf32>
    %161 = arith.truncf %160 : vector<16x8xf32> to vector<16x8xbf16>
    %c8_146 = arith.constant 8 : index
    %c0_147 = arith.constant 0 : index
    %c0_148 = arith.constant 0 : index
    %162 = vector.load %arg10[%c8_146, %c0_147, %c0_148] : memref<9x8x16xbf16, #tpu.memory_space<vmem>>, vector<1x8x16xbf16>
    %163 = vector.shape_cast %162 : vector<1x8x16xbf16> to vector<8x16xbf16>
    %cst_149 = arith.constant dense<0.000000e+00> : vector<16x16xf32>
    %164 = tpu.matmul %161, %163, %cst_149 {dimension_numbers = #tpu.dot_dimension_numbers<[1], [0], [0], [1], [0, 0, 1, 1], [], []>} : vector<16x8xbf16>, vector<8x16xbf16>, vector<16x16xf32> -> vector<16x16xf32>
    %165 = arith.addf %108, %115 : vector<16x16xf32>
    %166 = arith.addf %122, %129 : vector<16x16xf32>
    %167 = arith.addf %136, %143 : vector<16x16xf32>
    %168 = arith.addf %150, %157 : vector<16x16xf32>
    %169 = arith.addf %165, %166 : vector<16x16xf32>
    %170 = arith.addf %167, %168 : vector<16x16xf32>
    %171 = arith.addf %169, %170 : vector<16x16xf32>
    %172 = arith.addf %171, %164 : vector<16x16xf32>
    %c0_150 = arith.constant 0 : index
    %c0_151 = arith.constant 0 : index
    %173 = vector.load %arg11[%c0_150, %c0_151] : memref<1x16xf32, #tpu.memory_space<vmem>>, vector<1x16xf32>
    %174 = vector.broadcast %173 : vector<1x16xf32> to vector<16x16xf32>
    %175 = arith.mulf %172, %174 : vector<16x16xf32>
    %c0_152 = arith.constant 0 : index
    %c0_153 = arith.constant 0 : index
    %176 = vector.load %arg12[%c0_152, %c0_153] : memref<1x16xf32, #tpu.memory_space<vmem>>, vector<1x16xf32>
    %177 = vector.broadcast %176 : vector<1x16xf32> to vector<16x16xf32>
    %178 = arith.addf %175, %177 : vector<16x16xf32>
    %179 = arith.negf %178 : vector<16x16xf32>
    %180 = math.exp %179 : vector<16x16xf32>
    %cst_154 = arith.constant 1.000000e+00 : f32
    %181 = vector.broadcast %cst_154 : f32 to vector<16x16xf32>
    %182 = arith.addf %181, %180 : vector<16x16xf32>
    %183 = arith.divf %181, %182 : vector<16x16xf32>
    %184 = arith.mulf %178, %183 : vector<16x16xf32>
    %185 = arith.truncf %184 : vector<16x16xf32> to vector<16x16xbf16>
    %c0_155 = arith.constant 0 : index
    %c0_156 = arith.constant 0 : index
    %186 = vector.load %arg13[%c0_155, %c0_156] : memref<16x16xbf16, #tpu.memory_space<vmem>>, vector<16x16xbf16>
    %cst_157 = arith.constant dense<0.000000e+00> : vector<16x16xf32>
    %187 = tpu.matmul %185, %186, %cst_157 {dimension_numbers = #tpu.dot_dimension_numbers<[1], [0], [0], [1], [0, 0, 1, 1], [], []>} : vector<16x16xbf16>, vector<16x16xbf16>, vector<16x16xf32> -> vector<16x16xf32>
    %c0_158 = arith.constant 0 : index
    %c0_159 = arith.constant 0 : index
    %188 = vector.load %arg14[%c0_158, %c0_159] : memref<1x16xf32, #tpu.memory_space<vmem>>, vector<1x16xf32>
    %189 = vector.broadcast %188 : vector<1x16xf32> to vector<16x16xf32>
    %190 = arith.mulf %187, %189 : vector<16x16xf32>
    %c0_160 = arith.constant 0 : index
    %c0_161 = arith.constant 0 : index
    %191 = vector.load %arg15[%c0_160, %c0_161] : memref<1x16xf32, #tpu.memory_space<vmem>>, vector<1x16xf32>
    %192 = vector.broadcast %191 : vector<1x16xf32> to vector<16x16xf32>
    %193 = arith.addf %190, %192 : vector<16x16xf32>
    %194 = arith.truncf %193 : vector<16x16xf32> to vector<16x16xbf16>
    %c0_162 = arith.constant 0 : index
    %c0_163 = arith.constant 0 : index
    %195 = vector.load %arg16[%c0_162, %c0_163] : memref<16x32xbf16, #tpu.memory_space<vmem>>, vector<16x32xbf16>
    %cst_164 = arith.constant dense<0.000000e+00> : vector<16x32xf32>
    %196 = tpu.matmul %194, %195, %cst_164 {dimension_numbers = #tpu.dot_dimension_numbers<[1], [0], [0], [1], [0, 0, 1, 1], [], []>} : vector<16x16xbf16>, vector<16x32xbf16>, vector<16x32xf32> -> vector<16x32xf32>
    %c0_165 = arith.constant 0 : index
    %c0_166 = arith.constant 0 : index
    %197 = vector.load %arg17[%c0_165, %c0_166] : memref<1x32xf32, #tpu.memory_space<vmem>>, vector<1x32xf32>
    %198 = vector.broadcast %197 : vector<1x32xf32> to vector<16x32xf32>
    %199 = arith.mulf %196, %198 : vector<16x32xf32>
    %c0_167 = arith.constant 0 : index
    %c0_168 = arith.constant 0 : index
    %200 = vector.load %arg18[%c0_167, %c0_168] : memref<1x32xf32, #tpu.memory_space<vmem>>, vector<1x32xf32>
    %201 = vector.broadcast %200 : vector<1x32xf32> to vector<16x32xf32>
    %202 = arith.addf %199, %201 : vector<16x32xf32>
    %203 = arith.negf %202 : vector<16x32xf32>
    %204 = math.exp %203 : vector<16x32xf32>
    %cst_169 = arith.constant 1.000000e+00 : f32
    %205 = vector.broadcast %cst_169 : f32 to vector<16x32xf32>
    %206 = arith.addf %205, %204 : vector<16x32xf32>
    %207 = arith.divf %205, %206 : vector<16x32xf32>
    %208 = arith.mulf %202, %207 : vector<16x32xf32>
    %209 = arith.truncf %208 : vector<16x32xf32> to vector<16x32xbf16>
    %c0_170 = arith.constant 0 : index
    %c0_171 = arith.constant 0 : index
    %c0_172 = arith.constant 0 : index
    %210 = vector.load %arg19[%c0_170, %c0_171, %c0_172] : memref<9x16x16xbf16, #tpu.memory_space<vmem>>, vector<1x16x16xbf16>
    %211 = vector.shape_cast %210 : vector<1x16x16xbf16> to vector<16x16xbf16>
    %cst_173 = arith.constant dense<0.000000e+00> : vector<16x32xf32>
    %212 = tpu.matmul %211, %209, %cst_173 {dimension_numbers = #tpu.dot_dimension_numbers<[1], [0], [0], [1], [0, 0, 1, 1], [], []>} : vector<16x16xbf16>, vector<16x32xbf16>, vector<16x32xf32> -> vector<16x32xf32>
    %c0_174 = arith.constant 0 : index
    %c0_175 = arith.constant 0 : index
    %c0_176 = arith.constant 0 : index
    %213 = vector.load %arg20[%c0_174, %c0_175, %c0_176] : memref<9x1x32xf32, #tpu.memory_space<vmem>>, vector<1x1x32xf32>
    %214 = vector.shape_cast %213 : vector<1x1x32xf32> to vector<1x32xf32>
    %215 = vector.broadcast %214 : vector<1x32xf32> to vector<16x32xf32>
    %216 = arith.mulf %212, %215 : vector<16x32xf32>
    %c1_177 = arith.constant 1 : index
    %c0_178 = arith.constant 0 : index
    %c0_179 = arith.constant 0 : index
    %217 = vector.load %arg19[%c1_177, %c0_178, %c0_179] : memref<9x16x16xbf16, #tpu.memory_space<vmem>>, vector<1x16x16xbf16>
    %218 = vector.shape_cast %217 : vector<1x16x16xbf16> to vector<16x16xbf16>
    %cst_180 = arith.constant dense<0.000000e+00> : vector<16x32xf32>
    %219 = tpu.matmul %218, %209, %cst_180 {dimension_numbers = #tpu.dot_dimension_numbers<[1], [0], [0], [1], [0, 0, 1, 1], [], []>} : vector<16x16xbf16>, vector<16x32xbf16>, vector<16x32xf32> -> vector<16x32xf32>
    %c1_181 = arith.constant 1 : index
    %c0_182 = arith.constant 0 : index
    %c0_183 = arith.constant 0 : index
    %220 = vector.load %arg20[%c1_181, %c0_182, %c0_183] : memref<9x1x32xf32, #tpu.memory_space<vmem>>, vector<1x1x32xf32>
    %221 = vector.shape_cast %220 : vector<1x1x32xf32> to vector<1x32xf32>
    %222 = vector.broadcast %221 : vector<1x32xf32> to vector<16x32xf32>
    %223 = arith.mulf %219, %222 : vector<16x32xf32>
    %c2_184 = arith.constant 2 : index
    %c0_185 = arith.constant 0 : index
    %c0_186 = arith.constant 0 : index
    %224 = vector.load %arg19[%c2_184, %c0_185, %c0_186] : memref<9x16x16xbf16, #tpu.memory_space<vmem>>, vector<1x16x16xbf16>
    %225 = vector.shape_cast %224 : vector<1x16x16xbf16> to vector<16x16xbf16>
    %cst_187 = arith.constant dense<0.000000e+00> : vector<16x32xf32>
    %226 = tpu.matmul %225, %209, %cst_187 {dimension_numbers = #tpu.dot_dimension_numbers<[1], [0], [0], [1], [0, 0, 1, 1], [], []>} : vector<16x16xbf16>, vector<16x32xbf16>, vector<16x32xf32> -> vector<16x32xf32>
    %c2_188 = arith.constant 2 : index
    %c0_189 = arith.constant 0 : index
    %c0_190 = arith.constant 0 : index
    %227 = vector.load %arg20[%c2_188, %c0_189, %c0_190] : memref<9x1x32xf32, #tpu.memory_space<vmem>>, vector<1x1x32xf32>
    %228 = vector.shape_cast %227 : vector<1x1x32xf32> to vector<1x32xf32>
    %229 = vector.broadcast %228 : vector<1x32xf32> to vector<16x32xf32>
    %230 = arith.mulf %226, %229 : vector<16x32xf32>
    %c3_191 = arith.constant 3 : index
    %c0_192 = arith.constant 0 : index
    %c0_193 = arith.constant 0 : index
    %231 = vector.load %arg19[%c3_191, %c0_192, %c0_193] : memref<9x16x16xbf16, #tpu.memory_space<vmem>>, vector<1x16x16xbf16>
    %232 = vector.shape_cast %231 : vector<1x16x16xbf16> to vector<16x16xbf16>
    %cst_194 = arith.constant dense<0.000000e+00> : vector<16x32xf32>
    %233 = tpu.matmul %232, %209, %cst_194 {dimension_numbers = #tpu.dot_dimension_numbers<[1], [0], [0], [1], [0, 0, 1, 1], [], []>} : vector<16x16xbf16>, vector<16x32xbf16>, vector<16x32xf32> -> vector<16x32xf32>
    %c3_195 = arith.constant 3 : index
    %c0_196 = arith.constant 0 : index
    %c0_197 = arith.constant 0 : index
    %234 = vector.load %arg20[%c3_195, %c0_196, %c0_197] : memref<9x1x32xf32, #tpu.memory_space<vmem>>, vector<1x1x32xf32>
    %235 = vector.shape_cast %234 : vector<1x1x32xf32> to vector<1x32xf32>
    %236 = vector.broadcast %235 : vector<1x32xf32> to vector<16x32xf32>
    %237 = arith.mulf %233, %236 : vector<16x32xf32>
    %c4_198 = arith.constant 4 : index
    %c0_199 = arith.constant 0 : index
    %c0_200 = arith.constant 0 : index
    %238 = vector.load %arg19[%c4_198, %c0_199, %c0_200] : memref<9x16x16xbf16, #tpu.memory_space<vmem>>, vector<1x16x16xbf16>
    %239 = vector.shape_cast %238 : vector<1x16x16xbf16> to vector<16x16xbf16>
    %cst_201 = arith.constant dense<0.000000e+00> : vector<16x32xf32>
    %240 = tpu.matmul %239, %209, %cst_201 {dimension_numbers = #tpu.dot_dimension_numbers<[1], [0], [0], [1], [0, 0, 1, 1], [], []>} : vector<16x16xbf16>, vector<16x32xbf16>, vector<16x32xf32> -> vector<16x32xf32>
    %c4_202 = arith.constant 4 : index
    %c0_203 = arith.constant 0 : index
    %c0_204 = arith.constant 0 : index
    %241 = vector.load %arg20[%c4_202, %c0_203, %c0_204] : memref<9x1x32xf32, #tpu.memory_space<vmem>>, vector<1x1x32xf32>
    %242 = vector.shape_cast %241 : vector<1x1x32xf32> to vector<1x32xf32>
    %243 = vector.broadcast %242 : vector<1x32xf32> to vector<16x32xf32>
    %244 = arith.mulf %240, %243 : vector<16x32xf32>
    %c5_205 = arith.constant 5 : index
    %c0_206 = arith.constant 0 : index
    %c0_207 = arith.constant 0 : index
    %245 = vector.load %arg19[%c5_205, %c0_206, %c0_207] : memref<9x16x16xbf16, #tpu.memory_space<vmem>>, vector<1x16x16xbf16>
    %246 = vector.shape_cast %245 : vector<1x16x16xbf16> to vector<16x16xbf16>
    %cst_208 = arith.constant dense<0.000000e+00> : vector<16x32xf32>
    %247 = tpu.matmul %246, %209, %cst_208 {dimension_numbers = #tpu.dot_dimension_numbers<[1], [0], [0], [1], [0, 0, 1, 1], [], []>} : vector<16x16xbf16>, vector<16x32xbf16>, vector<16x32xf32> -> vector<16x32xf32>
    %c5_209 = arith.constant 5 : index
    %c0_210 = arith.constant 0 : index
    %c0_211 = arith.constant 0 : index
    %248 = vector.load %arg20[%c5_209, %c0_210, %c0_211] : memref<9x1x32xf32, #tpu.memory_space<vmem>>, vector<1x1x32xf32>
    %249 = vector.shape_cast %248 : vector<1x1x32xf32> to vector<1x32xf32>
    %250 = vector.broadcast %249 : vector<1x32xf32> to vector<16x32xf32>
    %251 = arith.mulf %247, %250 : vector<16x32xf32>
    %c6_212 = arith.constant 6 : index
    %c0_213 = arith.constant 0 : index
    %c0_214 = arith.constant 0 : index
    %252 = vector.load %arg19[%c6_212, %c0_213, %c0_214] : memref<9x16x16xbf16, #tpu.memory_space<vmem>>, vector<1x16x16xbf16>
    %253 = vector.shape_cast %252 : vector<1x16x16xbf16> to vector<16x16xbf16>
    %cst_215 = arith.constant dense<0.000000e+00> : vector<16x32xf32>
    %254 = tpu.matmul %253, %209, %cst_215 {dimension_numbers = #tpu.dot_dimension_numbers<[1], [0], [0], [1], [0, 0, 1, 1], [], []>} : vector<16x16xbf16>, vector<16x32xbf16>, vector<16x32xf32> -> vector<16x32xf32>
    %c6_216 = arith.constant 6 : index
    %c0_217 = arith.constant 0 : index
    %c0_218 = arith.constant 0 : index
    %255 = vector.load %arg20[%c6_216, %c0_217, %c0_218] : memref<9x1x32xf32, #tpu.memory_space<vmem>>, vector<1x1x32xf32>
    %256 = vector.shape_cast %255 : vector<1x1x32xf32> to vector<1x32xf32>
    %257 = vector.broadcast %256 : vector<1x32xf32> to vector<16x32xf32>
    %258 = arith.mulf %254, %257 : vector<16x32xf32>
    %c7_219 = arith.constant 7 : index
    %c0_220 = arith.constant 0 : index
    %c0_221 = arith.constant 0 : index
    %259 = vector.load %arg19[%c7_219, %c0_220, %c0_221] : memref<9x16x16xbf16, #tpu.memory_space<vmem>>, vector<1x16x16xbf16>
    %260 = vector.shape_cast %259 : vector<1x16x16xbf16> to vector<16x16xbf16>
    %cst_222 = arith.constant dense<0.000000e+00> : vector<16x32xf32>
    %261 = tpu.matmul %260, %209, %cst_222 {dimension_numbers = #tpu.dot_dimension_numbers<[1], [0], [0], [1], [0, 0, 1, 1], [], []>} : vector<16x16xbf16>, vector<16x32xbf16>, vector<16x32xf32> -> vector<16x32xf32>
    %c7_223 = arith.constant 7 : index
    %c0_224 = arith.constant 0 : index
    %c0_225 = arith.constant 0 : index
    %262 = vector.load %arg20[%c7_223, %c0_224, %c0_225] : memref<9x1x32xf32, #tpu.memory_space<vmem>>, vector<1x1x32xf32>
    %263 = vector.shape_cast %262 : vector<1x1x32xf32> to vector<1x32xf32>
    %264 = vector.broadcast %263 : vector<1x32xf32> to vector<16x32xf32>
    %265 = arith.mulf %261, %264 : vector<16x32xf32>
    %c8_226 = arith.constant 8 : index
    %c0_227 = arith.constant 0 : index
    %c0_228 = arith.constant 0 : index
    %266 = vector.load %arg19[%c8_226, %c0_227, %c0_228] : memref<9x16x16xbf16, #tpu.memory_space<vmem>>, vector<1x16x16xbf16>
    %267 = vector.shape_cast %266 : vector<1x16x16xbf16> to vector<16x16xbf16>
    %cst_229 = arith.constant dense<0.000000e+00> : vector<16x32xf32>
    %268 = tpu.matmul %267, %209, %cst_229 {dimension_numbers = #tpu.dot_dimension_numbers<[1], [0], [0], [1], [0, 0, 1, 1], [], []>} : vector<16x16xbf16>, vector<16x32xbf16>, vector<16x32xf32> -> vector<16x32xf32>
    %c8_230 = arith.constant 8 : index
    %c0_231 = arith.constant 0 : index
    %c0_232 = arith.constant 0 : index
    %269 = vector.load %arg20[%c8_230, %c0_231, %c0_232] : memref<9x1x32xf32, #tpu.memory_space<vmem>>, vector<1x1x32xf32>
    %270 = vector.shape_cast %269 : vector<1x1x32xf32> to vector<1x32xf32>
    %271 = vector.broadcast %270 : vector<1x32xf32> to vector<16x32xf32>
    %272 = arith.mulf %268, %271 : vector<16x32xf32>
    %273 = arith.addf %216, %223 : vector<16x32xf32>
    %274 = arith.addf %230, %237 : vector<16x32xf32>
    %275 = arith.addf %244, %251 : vector<16x32xf32>
    %276 = arith.addf %258, %265 : vector<16x32xf32>
    %277 = arith.addf %273, %274 : vector<16x32xf32>
    %278 = arith.addf %275, %276 : vector<16x32xf32>
    %279 = arith.addf %277, %278 : vector<16x32xf32>
    %280 = arith.addf %279, %272 : vector<16x32xf32>
    %c0_233 = arith.constant 0 : index
    %c0_234 = arith.constant 0 : index
    %281 = vector.load %arg21[%c0_233, %c0_234] : memref<1x32xf32, #tpu.memory_space<vmem>>, vector<1x32xf32>
    %282 = vector.broadcast %281 : vector<1x32xf32> to vector<16x32xf32>
    %283 = arith.mulf %280, %282 : vector<16x32xf32>
    %c0_235 = arith.constant 0 : index
    %c0_236 = arith.constant 0 : index
    %284 = vector.load %arg22[%c0_235, %c0_236] : memref<1x32xf32, #tpu.memory_space<vmem>>, vector<1x32xf32>
    %285 = vector.broadcast %284 : vector<1x32xf32> to vector<16x32xf32>
    %286 = arith.addf %283, %285 : vector<16x32xf32>
    %287 = arith.negf %286 : vector<16x32xf32>
    %288 = math.exp %287 : vector<16x32xf32>
    %cst_237 = arith.constant 1.000000e+00 : f32
    %289 = vector.broadcast %cst_237 : f32 to vector<16x32xf32>
    %290 = arith.addf %289, %288 : vector<16x32xf32>
    %291 = arith.divf %289, %290 : vector<16x32xf32>
    %292 = arith.mulf %286, %291 : vector<16x32xf32>
    %cst_238 = arith.constant dense<0.000000e+00> : vector<32xf32>
    %293 = vector.multi_reduction <add>, %292, %cst_238 [0] : vector<16x32xf32> to vector<32xf32>
    %294 = vector.shape_cast %293 : vector<32xf32> to vector<1x32xf32>
    %cst_239 = arith.constant 6.250000e-02 : f32
    %295 = vector.broadcast %cst_239 : f32 to vector<1x32xf32>
    %296 = arith.mulf %294, %295 : vector<1x32xf32>
    %297 = vector.shape_cast %296 : vector<1x32xf32> to vector<1x32xf32>
    %298 = vector.broadcast %297 : vector<1x32xf32> to vector<8x32xf32>
    %299 = arith.truncf %298 : vector<8x32xf32> to vector<8x32xbf16>
    %c0_240 = arith.constant 0 : index
    %c0_241 = arith.constant 0 : index
    %300 = vector.load %arg23[%c0_240, %c0_241] : memref<32x8xbf16, #tpu.memory_space<vmem>>, vector<32x8xbf16>
    %cst_242 = arith.constant dense<0.000000e+00> : vector<8x8xf32>
    %301 = tpu.matmul %299, %300, %cst_242 {dimension_numbers = #tpu.dot_dimension_numbers<[1], [0], [0], [1], [0, 0, 1, 1], [], []>} : vector<8x32xbf16>, vector<32x8xbf16>, vector<8x8xf32> -> vector<8x8xf32>
    %c0_243 = arith.constant 0 : index
    %c0_244 = arith.constant 0 : index
    %302 = vector.load %arg24[%c0_243, %c0_244] : memref<1x8xf32, #tpu.memory_space<vmem>>, vector<1x8xf32>
    %303 = vector.broadcast %302 : vector<1x8xf32> to vector<8x8xf32>
    %304 = arith.addf %301, %303 : vector<8x8xf32>
    %305 = arith.negf %304 : vector<8x8xf32>
    %306 = math.exp %305 : vector<8x8xf32>
    %cst_245 = arith.constant 1.000000e+00 : f32
    %307 = vector.broadcast %cst_245 : f32 to vector<8x8xf32>
    %308 = arith.addf %307, %306 : vector<8x8xf32>
    %309 = arith.divf %307, %308 : vector<8x8xf32>
    %310 = arith.mulf %304, %309 : vector<8x8xf32>
    %311 = arith.truncf %310 : vector<8x8xf32> to vector<8x8xbf16>
    %c0_246 = arith.constant 0 : index
    %c0_247 = arith.constant 0 : index
    %312 = vector.load %arg25[%c0_246, %c0_247] : memref<8x32xbf16, #tpu.memory_space<vmem>>, vector<8x32xbf16>
    %cst_248 = arith.constant dense<0.000000e+00> : vector<8x32xf32>
    %313 = tpu.matmul %311, %312, %cst_248 {dimension_numbers = #tpu.dot_dimension_numbers<[1], [0], [0], [1], [0, 0, 1, 1], [], []>} : vector<8x8xbf16>, vector<8x32xbf16>, vector<8x32xf32> -> vector<8x32xf32>
    %c0_249 = arith.constant 0 : index
    %c0_250 = arith.constant 0 : index
    %314 = vector.load %arg26[%c0_249, %c0_250] : memref<1x32xf32, #tpu.memory_space<vmem>>, vector<1x32xf32>
    %315 = vector.broadcast %314 : vector<1x32xf32> to vector<8x32xf32>
    %316 = arith.addf %313, %315 : vector<8x32xf32>
    %317 = arith.negf %316 : vector<8x32xf32>
    %318 = math.exp %317 : vector<8x32xf32>
    %cst_251 = arith.constant 1.000000e+00 : f32
    %319 = vector.broadcast %cst_251 : f32 to vector<8x32xf32>
    %320 = arith.addf %319, %318 : vector<8x32xf32>
    %321 = arith.divf %319, %320 : vector<8x32xf32>
    %322 = vector.extract_strided_slice %321 {offsets = [0, 0], sizes = [1, 32], strides = [1, 1]} : vector<8x32xf32> to vector<1x32xf32>
    %323 = vector.broadcast %322 : vector<1x32xf32> to vector<16x32xf32>
    %324 = arith.mulf %292, %323 : vector<16x32xf32>
    %325 = arith.truncf %324 : vector<16x32xf32> to vector<16x32xbf16>
    %c0_252 = arith.constant 0 : index
    %c0_253 = arith.constant 0 : index
    %326 = vector.load %arg27[%c0_252, %c0_253] : memref<32x16xbf16, #tpu.memory_space<vmem>>, vector<32x16xbf16>
    %cst_254 = arith.constant dense<0.000000e+00> : vector<16x16xf32>
    %327 = tpu.matmul %325, %326, %cst_254 {dimension_numbers = #tpu.dot_dimension_numbers<[1], [0], [0], [1], [0, 0, 1, 1], [], []>} : vector<16x32xbf16>, vector<32x16xbf16>, vector<16x16xf32> -> vector<16x16xf32>
    %c0_255 = arith.constant 0 : index
    %c0_256 = arith.constant 0 : index
    %328 = vector.load %arg28[%c0_255, %c0_256] : memref<1x16xf32, #tpu.memory_space<vmem>>, vector<1x16xf32>
    %329 = vector.broadcast %328 : vector<1x16xf32> to vector<16x16xf32>
    %330 = arith.mulf %327, %329 : vector<16x16xf32>
    %c0_257 = arith.constant 0 : index
    %c0_258 = arith.constant 0 : index
    %331 = vector.load %arg29[%c0_257, %c0_258] : memref<1x16xf32, #tpu.memory_space<vmem>>, vector<1x16xf32>
    %332 = vector.broadcast %331 : vector<1x16xf32> to vector<16x16xf32>
    %333 = arith.addf %330, %332 : vector<16x16xf32>
    %334 = arith.addf %333, %193 : vector<16x16xf32>
    %335 = arith.truncf %334 : vector<16x16xf32> to vector<16x16xbf16>
    %c0_259 = arith.constant 0 : index
    %c0_260 = arith.constant 0 : index
    %336 = vector.load %arg30[%c0_259, %c0_260] : memref<16x64xbf16, #tpu.memory_space<vmem>>, vector<16x64xbf16>
    %cst_261 = arith.constant dense<0.000000e+00> : vector<16x64xf32>
    %337 = tpu.matmul %335, %336, %cst_261 {dimension_numbers = #tpu.dot_dimension_numbers<[1], [0], [0], [1], [0, 0, 1, 1], [], []>} : vector<16x16xbf16>, vector<16x64xbf16>, vector<16x64xf32> -> vector<16x64xf32>
    %c0_262 = arith.constant 0 : index
    %c0_263 = arith.constant 0 : index
    %338 = vector.load %arg31[%c0_262, %c0_263] : memref<1x64xf32, #tpu.memory_space<vmem>>, vector<1x64xf32>
    %339 = vector.broadcast %338 : vector<1x64xf32> to vector<16x64xf32>
    %340 = arith.mulf %337, %339 : vector<16x64xf32>
    %c0_264 = arith.constant 0 : index
    %c0_265 = arith.constant 0 : index
    %341 = vector.load %arg32[%c0_264, %c0_265] : memref<1x64xf32, #tpu.memory_space<vmem>>, vector<1x64xf32>
    %342 = vector.broadcast %341 : vector<1x64xf32> to vector<16x64xf32>
    %343 = arith.addf %340, %342 : vector<16x64xf32>
    %344 = arith.negf %343 : vector<16x64xf32>
    %345 = math.exp %344 : vector<16x64xf32>
    %cst_266 = arith.constant 1.000000e+00 : f32
    %346 = vector.broadcast %cst_266 : f32 to vector<16x64xf32>
    %347 = arith.addf %346, %345 : vector<16x64xf32>
    %348 = arith.divf %346, %347 : vector<16x64xf32>
    %349 = arith.mulf %343, %348 : vector<16x64xf32>
    %cst_267 = arith.constant dense<0.000000e+00> : vector<64xf32>
    %350 = vector.multi_reduction <add>, %349, %cst_267 [0] : vector<16x64xf32> to vector<64xf32>
    %351 = vector.shape_cast %350 : vector<64xf32> to vector<1x64xf32>
    %cst_268 = arith.constant 6.250000e-02 : f32
    %352 = vector.broadcast %cst_268 : f32 to vector<1x64xf32>
    %353 = arith.mulf %351, %352 : vector<1x64xf32>
    %354 = vector.shape_cast %353 : vector<1x64xf32> to vector<1x64xf32>
    %355 = vector.broadcast %354 : vector<1x64xf32> to vector<8x64xf32>
    %356 = arith.truncf %355 : vector<8x64xf32> to vector<8x64xbf16>
    %c0_269 = arith.constant 0 : index
    %c0_270 = arith.constant 0 : index
    %357 = vector.load %arg33[%c0_269, %c0_270] : memref<64x128xbf16, #tpu.memory_space<vmem>>, vector<64x128xbf16>
    %cst_271 = arith.constant dense<0.000000e+00> : vector<8x128xf32>
    %358 = tpu.matmul %356, %357, %cst_271 {dimension_numbers = #tpu.dot_dimension_numbers<[1], [0], [0], [1], [0, 0, 1, 1], [], []>} : vector<8x64xbf16>, vector<64x128xbf16>, vector<8x128xf32> -> vector<8x128xf32>
    %c0_272 = arith.constant 0 : index
    %c0_273 = arith.constant 0 : index
    %359 = vector.load %arg34[%c0_272, %c0_273] : memref<1x128xf32, #tpu.memory_space<vmem>>, vector<1x128xf32>
    %360 = vector.broadcast %359 : vector<1x128xf32> to vector<8x128xf32>
    %361 = arith.addf %358, %360 : vector<8x128xf32>
    %c0_274 = arith.constant 0 : index
    %c0_275 = arith.constant 0 : index
    %c0_276 = arith.constant 0 : index
    %362 = vector.load %arg35[%c0_274, %c0_275, %c0_276] : memref<1x8x128xf32, #tpu.memory_space<vmem>>, vector<1x8x128xf32>
    %363 = vector.shape_cast %362 : vector<1x8x128xf32> to vector<8x128xf32>
    %364 = vector.shape_cast %361 : vector<8x128xf32> to vector<1x8x128xf32>
    tpu.vector_store %arg35[%c0_274, %c0_275, %c0_276], %364 {strides = array<i32>} : memref<1x8x128xf32, #tpu.memory_space<vmem>>, vector<1x8x128xf32>,
    return
  }
  func.func @transform_0(%arg0: i32) -> (i32, i32, i32) {
    %c0_i32 = arith.constant 0 : i32
    %c0_i32_0 = arith.constant 0 : i32
    %c0_i32_1 = arith.constant 0 : i32
    return %arg0, %c0_i32, %c0_i32_0 : i32, i32, i32
  }
  func.func @transform_1(%arg0: i32) -> (i32, i32) {
    %c0_i32 = arith.constant 0 : i32
    %c0_i32_0 = arith.constant 0 : i32
    %c0_i32_1 = arith.constant 0 : i32
    return %c0_i32, %c0_i32_0 : i32, i32
  }
  func.func @transform_2(%arg0: i32) -> (i32, i32) {
    %c0_i32 = arith.constant 0 : i32
    %c0_i32_0 = arith.constant 0 : i32
    %c0_i32_1 = arith.constant 0 : i32
    return %c0_i32, %c0_i32_0 : i32, i32
  }
  func.func @transform_3(%arg0: i32) -> (i32, i32) {
    %c0_i32 = arith.constant 0 : i32
    %c0_i32_0 = arith.constant 0 : i32
    %c0_i32_1 = arith.constant 0 : i32
    return %c0_i32, %c0_i32_0 : i32, i32
  }
  func.func @transform_4(%arg0: i32) -> (i32, i32, i32) {
    %c0_i32 = arith.constant 0 : i32
    %c0_i32_0 = arith.constant 0 : i32
    %c0_i32_1 = arith.constant 0 : i32
    %c0_i32_2 = arith.constant 0 : i32
    return %c0_i32, %c0_i32_0, %c0_i32_1 : i32, i32, i32
  }
  func.func @transform_5(%arg0: i32) -> (i32, i32, i32) {
    %c0_i32 = arith.constant 0 : i32
    %c0_i32_0 = arith.constant 0 : i32
    %c0_i32_1 = arith.constant 0 : i32
    %c0_i32_2 = arith.constant 0 : i32
    return %c0_i32, %c0_i32_0, %c0_i32_1 : i32, i32, i32
  }
  func.func @transform_6(%arg0: i32) -> (i32, i32) {
    %c0_i32 = arith.constant 0 : i32
    %c0_i32_0 = arith.constant 0 : i32
    %c0_i32_1 = arith.constant 0 : i32
    return %c0_i32, %c0_i32_0 : i32, i32
  }
  func.func @transform_7(%arg0: i32) -> (i32, i32) {
    %c0_i32 = arith.constant 0 : i32
    %c0_i32_0 = arith.constant 0 : i32
    %c0_i32_1 = arith.constant 0 : i32
    return %c0_i32, %c0_i32_0 : i32, i32
  }
  func.func @transform_8(%arg0: i32) -> (i32, i32, i32) {
    %c0_i32 = arith.constant 0 : i32
    %c0_i32_0 = arith.constant 0 : i32
    %c0_i32_1 = arith.constant 0 : i32
    %c0_i32_2 = arith.constant 0 : i32
    return %c0_i32, %c0_i32_0, %c0_i32_1 : i32, i32, i32
  }
  func.func @transform_9(%arg0: i32) -> (i32, i32, i32) {
    %c0_i32 = arith.constant 0 : i32
    %c0_i32_0 = arith.constant 0 : i32
    %c0_i32_1 = arith.constant 0 : i32
    %c0_i32_2 = arith.constant 0 : i32
    return %c0_i32, %c0_i32_0, %c0_i32_1 : i32, i32, i32
  }
  func.func @transform_10(%arg0: i32) -> (i32, i32) {
    %c0_i32 = arith.constant 0 : i32
    %c0_i32_0 = arith.constant 0 : i32
    %c0_i32_1 = arith.constant 0 : i32
    return %c0_i32, %c0_i32_0 : i32, i32
  }
  func.func @transform_11(%arg0: i32) -> (i32, i32) {
    %c0_i32 = arith.constant 0 : i32
    %c0_i32_0 = arith.constant 0 : i32
    %c0_i32_1 = arith.constant 0 : i32
    return %c0_i32, %c0_i32_0 : i32, i32
  }
  func.func @transform_12(%arg0: i32) -> (i32, i32) {
    %c0_i32 = arith.constant 0 : i32
    %c0_i32_0 = arith.constant 0 : i32
    %c0_i32_1 = arith.constant 0 : i32
    return %c0_i32, %c0_i32_0 : i32, i32
  }
  func.func @transform_13(%arg0: i32) -> (i32, i32) {
    %c0_i32 = arith.constant 0 : i32
    %c0_i32_0 = arith.constant 0 : i32
    %c0_i32_1 = arith.constant 0 : i32
    return %c0_i32, %c0_i32_0 : i32, i32
  }
  func.func @transform_14(%arg0: i32) -> (i32, i32) {
    %c0_i32 = arith.constant 0 : i32
    %c0_i32_0 = arith.constant 0 : i32
    %c0_i32_1 = arith.constant 0 : i32
    return %c0_i32, %c0_i32_0 : i32, i32
  }
  func.func @transform_15(%arg0: i32) -> (i32, i32) {
    %c0_i32 = arith.constant 0 : i32
    %c0_i32_0 = arith.constant 0 : i32
    %c0_i32_1 = arith.constant 0 : i32
    return %c0_i32, %c0_i32_0 : i32, i32
  }
  func.func @transform_16(%arg0: i32) -> (i32, i32) {
    %c0_i32 = arith.constant 0 : i32
    %c0_i32_0 = arith.constant 0 : i32
    %c0_i32_1 = arith.constant 0 : i32
    return %c0_i32, %c0_i32_0 : i32, i32
  }
  func.func @transform_17(%arg0: i32) -> (i32, i32) {
    %c0_i32 = arith.constant 0 : i32
    %c0_i32_0 = arith.constant 0 : i32
    %c0_i32_1 = arith.constant 0 : i32
    return %c0_i32, %c0_i32_0 : i32, i32
  }
  func.func @transform_18(%arg0: i32) -> (i32, i32, i32) {
    %c0_i32 = arith.constant 0 : i32
    %c0_i32_0 = arith.constant 0 : i32
    %c0_i32_1 = arith.constant 0 : i32
    %c0_i32_2 = arith.constant 0 : i32
    return %c0_i32, %c0_i32_0, %c0_i32_1 : i32, i32, i32
  }
  func.func @transform_19(%arg0: i32) -> (i32, i32, i32) {
    %c0_i32 = arith.constant 0 : i32
    %c0_i32_0 = arith.constant 0 : i32
    %c0_i32_1 = arith.constant 0 : i32
    %c0_i32_2 = arith.constant 0 : i32
    return %c0_i32, %c0_i32_0, %c0_i32_1 : i32, i32, i32
  }
  func.func @transform_20(%arg0: i32) -> (i32, i32) {
    %c0_i32 = arith.constant 0 : i32
    %c0_i32_0 = arith.constant 0 : i32
    %c0_i32_1 = arith.constant 0 : i32
    return %c0_i32, %c0_i32_0 : i32, i32
  }
  func.func @transform_21(%arg0: i32) -> (i32, i32) {
    %c0_i32 = arith.constant 0 : i32
    %c0_i32_0 = arith.constant 0 : i32
    %c0_i32_1 = arith.constant 0 : i32
    return %c0_i32, %c0_i32_0 : i32, i32
  }
  func.func @transform_22(%arg0: i32) -> (i32, i32) {
    %c0_i32 = arith.constant 0 : i32
    %c0_i32_0 = arith.constant 0 : i32
    %c0_i32_1 = arith.constant 0 : i32
    return %c0_i32, %c0_i32_0 : i32, i32
  }
  func.func @transform_23(%arg0: i32) -> (i32, i32) {
    %c0_i32 = arith.constant 0 : i32
    %c0_i32_0 = arith.constant 0 : i32
    %c0_i32_1 = arith.constant 0 : i32
    return %c0_i32, %c0_i32_0 : i32, i32
  }
  func.func @transform_24(%arg0: i32) -> (i32, i32) {
    %c0_i32 = arith.constant 0 : i32
    %c0_i32_0 = arith.constant 0 : i32
    %c0_i32_1 = arith.constant 0 : i32
    return %c0_i32, %c0_i32_0 : i32, i32
  }
  func.func @transform_25(%arg0: i32) -> (i32, i32) {
    %c0_i32 = arith.constant 0 : i32
    %c0_i32_0 = arith.constant 0 : i32
    %c0_i32_1 = arith.constant 0 : i32
    return %c0_i32, %c0_i32_0 : i32, i32
  }
  func.func @transform_26(%arg0: i32) -> (i32, i32) {
    %c0_i32 = arith.constant 0 : i32
    %c0_i32_0 = arith.constant 0 : i32
    %c0_i32_1 = arith.constant 0 : i32
    return %c0_i32, %c0_i32_0 : i32, i32
  }
  func.func @transform_27(%arg0: i32) -> (i32, i32) {
    %c0_i32 = arith.constant 0 : i32
    %c0_i32_0 = arith.constant 0 : i32
    %c0_i32_1 = arith.constant 0 : i32
    return %c0_i32, %c0_i32_0 : i32, i32
  }
  func.func @transform_28(%arg0: i32) -> (i32, i32) {
    %c0_i32 = arith.constant 0 : i32
    %c0_i32_0 = arith.constant 0 : i32
    %c0_i32_1 = arith.constant 0 : i32
    return %c0_i32, %c0_i32_0 : i32, i32
  }
  func.func @transform_29(%arg0: i32) -> (i32, i32) {
    %c0_i32 = arith.constant 0 : i32
    %c0_i32_0 = arith.constant 0 : i32
    %c0_i32_1 = arith.constant 0 : i32
    return %c0_i32, %c0_i32_0 : i32, i32
  }
  func.func @transform_30(%arg0: i32) -> (i32, i32) {
    %c0_i32 = arith.constant 0 : i32
    %c0_i32_0 = arith.constant 0 : i32
    %c0_i32_1 = arith.constant 0 : i32
    return %c0_i32, %c0_i32_0 : i32, i32
  }
  func.func @transform_31(%arg0: i32) -> (i32, i32) {
    %c0_i32 = arith.constant 0 : i32
    %c0_i32_0 = arith.constant 0 : i32
    %c0_i32_1 = arith.constant 0 : i32
    return %c0_i32, %c0_i32_0 : i32, i32
  }
  func.func @transform_32(%arg0: i32) -> (i32, i32) {
    %c0_i32 = arith.constant 0 : i32
    %c0_i32_0 = arith.constant 0 : i32
    %c0_i32_1 = arith.constant 0 : i32
    return %c0_i32, %c0_i32_0 : i32, i32
  }
  func.func @transform_33(%arg0: i32) -> (i32, i32) {
    %c0_i32 = arith.constant 0 : i32
    %c0_i32_0 = arith.constant 0 : i32
    %c0_i32_1 = arith.constant 0 : i32
    return %c0_i32, %c0_i32_0 : i32, i32
  }
  func.func @transform_34(%arg0: i32) -> (i32, i32, i32) {
    %c0_i32 = arith.constant 0 : i32
    %c0_i32_0 = arith.constant 0 : i32
    %c0_i32_1 = arith.constant 0 : i32
    return %arg0, %c0_i32, %c0_i32_0 : i32, i32, i32
  }
}

</mosaic_0001>

<bundles_post_ra>
// kernel: efficientnet_forward.1
= control target key start
LH: loop header
LB: loop body
LE: loop exit
PB: predicated region body
PF: predicated region fallthrough
CT: control target
= control target key end

     0   :  { %s6663_s6 = smov 1   ;;  %s6664_s10 = smov 2   ;;  %s7708_s0 = inlined_call_operand.smem [shape: u32[35], index: -1, kind: input, shape index: {}] }
   0x1   :  { %s6707_s5 = sld [smem:[%s7708_s0]]   ;;  %s6665_s14 = smov 3  }
   0x2   :  { %s6712_s9 = sld [smem:[%s7708_s0 + %s6663_s6]]   ;;  %s6666_s18 = smov 4  }
   0x3   :  { %s6717_s13 = sld [smem:[%s7708_s0 + %s6664_s10]]   ;;  %s6667_s22 = smov 5  }
   0x4   :  { %s6722_s17 = sld [smem:[%s7708_s0 + %s6665_s14]]   ;;  %s6668_s26 = smov 6  }
   0x5   :  { %s6727_s21 = sld [smem:[%s7708_s0 + %s6666_s18]]   ;;  %s6669_s30 = smov 7  }
   0x6   :  { %s6732_s25 = sld [smem:[%s7708_s0 + %s6667_s22]]   ;;  %s6670_s4 = smov 8  }
   0x7   :  { %s6737_s29 = sld [smem:[%s7708_s0 + %s6668_s26]]   ;;  %s6671_s10 = smov 9  }
   0x8   :  { %s6742_s3 = sld [smem:[%s7708_s0 + %s6669_s30]]   ;;  %s6672_s15 = smov 10  }
   0x9   :  { %s6747_s8 = sld [smem:[%s7708_s0 + %s6670_s4]]   ;;  %s6673_s20 = smov 11  }
   0xa   :  { %s6752_s14 = sld [smem:[%s7708_s0 + %s6671_s10]]   ;;  %s6674_s26 = smov 12  }
   0xb   :  { %s6757_s19 = sld [smem:[%s7708_s0 + %s6672_s15]]   ;;  %s6675_s1 = smov 13  }
   0xc   :  { %s6762_s24 = sld [smem:[%s7708_s0 + %s6673_s20]]   ;;  %s6676_s7 = smov 14  }
   0xd   :  { %s6767_s30 = sld [smem:[%s7708_s0 + %s6674_s26]]   ;;  %s6677_s15 = smov 15  }
   0xe   :  { %s6772_s6 = sld [smem:[%s7708_s0 + %s6675_s1]]   ;;  %s6678_s22 = smov 16  }
   0xf   :  { %s6777_s12 = sld [smem:[%s7708_s0 + %s6676_s7]]   ;;  %s6679_s28 = smov 17  }
  0x10   :  { %s6782_s20 = sld [smem:[%s7708_s0 + %s6677_s15]]   ;;  %s6680_s7 = smov 18  }
  0x11   :  { %s6787_s27 = sld [smem:[%s7708_s0 + %s6678_s22]]   ;;  %s6681_s15 = smov 19  }
  0x12   :  { %s6792_s4 = sld [smem:[%s7708_s0 + %s6679_s28]]   ;;  %s6682_s22 = smov 20  }
  0x13   :  { %s6683_s28 = smov 21  }
  0x14   :  { %7723 = sst [smem:[#allocation2_spill]] %s6772_s6 }
  0x15   :  { %7724 = sst [smem:[#allocation3_spill]] %s6777_s12 }
  0x16   :  { %s6797_s12 = sld [smem:[%s7708_s0 + %s6680_s7]]   ;;  %s6684_s7 = smov 22  }
  0x17   :  { %7725 = sst [smem:[#allocation4_spill]] %s6787_s27 }
  0x18   :  { %7726 = sst [smem:[#allocation5_spill]] %s6792_s4 }
  0x19   :  { %s6802_s6 = sld [smem:[%s7708_s0 + %s6681_s15]]   ;;  %s6685_s15 = smov 23  }
  0x1a   :  { %s6807_s27 = sld [smem:[%s7708_s0 + %s6682_s22]]   ;;  %s6686_s22 = smov 24  }
  0x1b   :  { %s6812_s4 = sld [smem:[%s7708_s0 + %s6683_s28]]   ;;  %s6687_s28 = smov 25  }
  0x1c   :  { %7727 = sst [smem:[#allocation6_spill]] %s6797_s12 }
  0x1d   :  { %s6817_s12 = sld [smem:[%s7708_s0 + %s6684_s7]]   ;;  %s6688_s7 = smov 26  }
  0x1f   :  { %7728 = sst [smem:[#allocation7_spill]] %s6802_s6 }
  0x20   :  { %7729 = sst [smem:[#allocation8_spill]] %s6807_s27 }
  0x21   :  { %7730 = sst [smem:[#allocation9_spill]] %s6812_s4 }
  0x22   :  { %s6822_s6 = sld [smem:[%s7708_s0 + %s6685_s15]]   ;;  %s6689_s15 = smov 27  }
  0x23   :  { %7731 = sst [smem:[#allocation10_spill]] %s6817_s12 }
  0x24   :  { %s6827_s27 = sld [smem:[%s7708_s0 + %s6686_s22]]   ;;  %s6690_s22 = smov 28  }
  0x25   :  { %s6832_s4 = sld [smem:[%s7708_s0 + %s6687_s28]]   ;;  %s6691_s28 = smov 29  }
  0x26   :  { %s6837_s12 = sld [smem:[%s7708_s0 + %s6688_s7]]   ;;  %s6692_s7 = smov 30  }
  0x28   :  { %7732 = sst [smem:[#allocation11_spill]] %s6822_s6 }
  0x29   :  { %s6842_s6 = sld [smem:[%s7708_s0 + %s6689_s15]]   ;;  %s6693_s15 = smov 31  }
  0x2a   :  { %7733 = sst [smem:[#allocation12_spill]] %s6827_s27 }
  0x2b   :  { %7734 = sst [smem:[#allocation13_spill]] %s6832_s4 }
  0x2c   :  { %7735 = sst [smem:[#allocation14_spill]] %s6837_s12 }
  0x2d   :  { %s6847_s27 = sld [smem:[%s7708_s0 + %s6690_s22]]   ;;  %s6694_s22 = smov 32  }
  0x2e   :  { %s6852_s4 = sld [smem:[%s7708_s0 + %s6691_s28]]   ;;  %s6695_s28 = smov 33  }
  0x2f   :  { %7736 = sst [smem:[#allocation15_spill]] %s6842_s6 }
  0x30   :  { %s6857_s12 = sld [smem:[%s7708_s0 + %s6692_s7]]   ;;  %s6696_s7 = smov 34  }
  0x31   :  { %s6862_s6 = sld [smem:[%s7708_s0 + %s6693_s15]]   ;;  %s6879_s15 = smov 0  }
  0x33   :  { %7737 = sst [smem:[#allocation16_spill]] %s6847_s27 }
  0x34   :  { %7738 = sst [smem:[#allocation17_spill]] %s6852_s4 }
  0x35   :  { %s6867_s27 = sld [smem:[%s7708_s0 + %s6694_s22]]  }
  0x36   :  { %7739 = sst [smem:[#allocation18_spill]] %s6857_s12 }
  0x37   :  { %s6872_s4 = sld [smem:[%s7708_s0 + %s6695_s28]]  }
  0x38   :  { %s6877_s12 = sld [smem:[%s7708_s0 + %s6696_s7]]  }
  0x39 LB: > { %s5321_s16 = sadd.s32 4294967295, %s6661_s15   ;;  %p5325_p0 = scmp.ge.s32.totalorder %s6661_s15, 1  ;;  %s6661_s15 = sphi %s6879_s15, %s79_s15  }
  0x3a   : > { %p947_p1 = scmp.lt.s32.totalorder %s6661_s15, 3 }
  0x3c   : > { %p948_p2 = pnand %p5325_p0, %p947_p1 }
  0x3e   : > { %951 = sbr.rel (%p948_p2) target bundleno = 4688 (0x1250), region = 156 }
  0x43   : > { %v6481_v0 = vld [vmem:[%s6712_s9] sm:$0xff]   ;;  %p1032_p3 = scmp.lt.s32.totalorder %s5321_s16, 1  ;;  %vm1078_vm0 = vcmask 130048   ;;  %vm1274_vm1 = vcmask 523264   ;;  %vm1482_vm2 = vcmask 1043456   ;;  %vm1469_vm3 = vcmask 64512  }
  0x44   : > { %5908 = vmatprep.subr.bf16.mxu0 %v6481_v0  ;;  %v6486_v5 = vld [vmem:[%s6727_s21 + $0x20] sm:$0xff]   ;;  %vm6698_vm4 = vmmov 0   ;;  %s7778_s22 = sld [smem:[#allocation2_spill]]  ;;  %vm4822_vm5 = vcmask 261120  }
  0x45   : > { %s7796_s16 = smov (!%p1032_p3, %s5321_s16), 1  ;;  %5909 = vmatpush3.bf16.msra.mxu0 %v6481_v0  ;;  %v6487_v6 = vld [vmem:[%s6727_s21] sm:$0xff]   ;;  %s7779_s23 = sld [smem:[#allocation3_spill]] }
  0x46   : > { %s5685_s0 = sshll.u32 %s7796_s16, 5  ;;  %5926 = vmatprep.mubr.msk.bf16.mxu1 %vm1274_vm1, %v6487_v6  ;;  %v5338_v9 = vld [vmem:[%s6717_s13] ss:$0 sm:$0xff]  ;;  %s7780_s26 = sld [smem:[#allocation4_spill]] }
  0x47   : > { %s1036_s18 = scalar_lea.vmem %s6707_s5, %s5685_s0  ;;  %v5339_v14 = vld [vmem:[%s6722_s17] ss:$0 sm:$0xff]  ;;  %s7781_s28 = sld [smem:[#allocation5_spill]] }
  0x48   : > { %v6482_v1 = vld [vmem:[%s1036_s18] sm:$0xff]   ;;  %v6483_v2 = vld [vmem:[%s1036_s18 + $0x8] sm:$0xff]   ;;  %v6484_v3 = vld [vmem:[%s1036_s18 + $0x10] sm:$0xff]   ;;  %s7782_s1 = sld [smem:[#allocation6_spill]] }
  0x49   : > { %5910 = vmatprep.mubr.msk.bf16.mxu0 %vm1078_vm0, %v6482_v1  ;;  %v6485_v4 = vld [vmem:[%s1036_s18 + $0x18] sm:$0xff]   ;;  %s7783_s2 = sld [smem:[#allocation10_spill]] }
  0x4a   : > { %5911 = vmatmul.mubr.msk.bf16.vlgmr.msra.gmra.mxu0 %vm1078_vm0, %v6483_v2  ;;  %s7784_s7 = sld [smem:[#allocation7_spill]] }
  0x4b   : > { %5914 = vmatprep.mubr.msk.bf16.mxu0 %vm1078_vm0, %v6484_v3  ;;  %s7785_s10 = sld [smem:[#allocation8_spill]] }
  0x4c   : > { %s7786_s11 = sld [smem:[#allocation9_spill]] }
  0x4d   : > { %s7787_s0 = sld [smem:[#allocation12_spill]] }
  0x4e   : > { %s7788_s18 = sld [smem:[#allocation11_spill]] }
  0x52   : > { %5915 = vmatmul.mubr.msk.bf16.gmra.mxu0 %vm1078_vm0, %v6485_v4 }
  0x53   : > { %5942 = vmatprep.mubr.msk.bf16.mxu0 %vm1274_vm1, %v6486_v5 }
 0x10a   : > { %v5912_v7 = vpop.f32.mrf.mxu0 }
 0x10b   : > { %v1165_v12 = vmul.f32 %v5912_v7, %v5338_v9 }
 0x10c   : > { %v1125_v8 = vpop.f32.mrf.mxu0 }
 0x10d   : > { %v6904_v19 = vadd.f32 %v5339_v14, %v1165_v12  ;;  %v1163_v20 = vmul.f32 %v5338_v9, %v1125_v8 }
 0x10e   : > { %v5913_v10 = vpop.f32.mrf.mxu0 }
 0x10f   : > { %v1166_v11 = vmul.f32 %v5913_v10, %v5338_v9  ;;  %v5342_v30 = vmul.f32 -1.442695, %v6904_v19  ;;  %v6910_v31 = vadd.f32 %v5339_v14, %v1163_v20  ;;  %v6495_v20 = vld [vmem:[%s6727_s21 + $0x18] sm:$0xff]  }
 0x110   : > { %v1128_v13 = vpop.f32.mrf.mxu0 }
 0x111   : > { %v6902_v15 = vadd.f32 %v5339_v14, %v1166_v11  ;;  %v1164_v16 = vmul.f32 %v5338_v9, %v1128_v13  ;;  %v5340_v39 = vmul.f32 -1.442695, %v6910_v31  ;;  %v5372_v13 = vld [vmem:[%s6732_s25 + $0x4] sm:$0xf] }
 0x112   : > { %v5916_v17 = vpop.f32.mrf.mxu0 }
 0x113   : > { %v1169_v18 = vmul.f32 %v5916_v17, %v5338_v9  ;;  %v5343_v24 = vmul.f32 -1.442695, %v6902_v15  ;;  %v6907_v25 = vadd.f32 %v5339_v14, %v1164_v16  ;;  %v1484_v16 = vsel %vm1482_vm2, %v5372_v13, 0  ;;  %v6490_v17 = vld [vmem:[%s6727_s21 + $0x30] sm:$0xff]  }
 0x114   : > { %v1141_v21 = vpop.f32.mrf.mxu0 }
 0x115   : > { %v1184_v22 = vadd.f32 %v5339_v14, %v1169_v18  ;;  %v1167_v23 = vmul.f32 %v5338_v9, %v1141_v21  ;;  %v5341_v36 = vmul.f32 -1.442695, %v6907_v25  ;;  %v6494_v18 = vld [vmem:[%s6727_s21 + $0x10] sm:$0xff]   ;;  %v6492_v21 = vld [vmem:[%s6727_s21 + $0x40] sm:$0xff]  }
 0x116   : > { %v5917_v26 = vpop.f32.mrf.mxu0 }
 0x117   : > { %v5346_v27 = vmul.f32 -1.442695, %v1184_v22  ;;  %v1182_v28 = vadd.f32 %v5339_v14, %v1167_v23  ;;  %v1170_v29 = vmul.f32 %v5917_v26, %v5338_v9  ;;  %v6493_v23 = vld [vmem:[%s6727_s21 + $0x48] sm:$0xff]  }
 0x118   : > { %v1144_v32 = vpop.f32.mrf.mxu0 }
 0x119   : > { %6551 = vpow2.f32 %v5346_v27  ;;  %v5344_v33 = vmul.f32 -1.442695, %v1182_v28  ;;  %v1185_v34 = vadd.f32 %v5339_v14, %v1170_v29  ;;  %v1168_v35 = vmul.f32 %v5338_v9, %v1144_v32 }
 0x11a   : > { %6553 = vpow2.f32 %v5343_v24 }
 0x11b   : > { %6555 = vpow2.f32 %v5344_v33  ;;  %v5347_v37 = vmul.f32 -1.442695, %v1185_v34  ;;  %v1183_v38 = vadd.f32 %v5339_v14, %v1168_v35  ;;  %v6488_v14 = vld [vmem:[%s6727_s21 + $0x28] sm:$0xff]  }
 0x11c   : > { %6557 = vpow2.f32 %v5342_v30 }
 0x11d   : > { %6559 = vpow2.f32 %v5347_v37  ;;  %v5345_v40 = vmul.f32 -1.442695, %v1183_v38 }
 0x11e   : > { %6561 = vpow2.f32 %v5341_v36 }
 0x11f   : > { %6563 = vpow2.f32 %v5345_v40 }
 0x120   : > { %6565 = vpow2.f32 %v5340_v39 }
 0x126   : > { %v6552_v41 = vpop.eup %6551 }
 0x127   : > { %v6554_v42 = vpop.eup %6553  ;;  %v1216_v43 = vadd.f32 1.0, %v6552_v41 }
 0x128   : > { %v6556_v44 = vpop.eup %6555  ;;  %v1213_v48 = vadd.f32 1.0, %v6554_v42 }
 0x129   : > { %v6558_v45 = vpop.eup %6557  ;;  %v1214_v46 = vadd.f32 1.0, %v6556_v44  ;;  %6567 = vrcp.f32 %v1216_v43 }
 0x12a   : > { %v6560_v47 = vpop.eup %6559  ;;  %v1212_v52 = vadd.f32 1.0, %v6558_v45  ;;  %v6496_v45 = vld [vmem:[%s6727_s21 + $0x60] sm:$0xff]  }
 0x12b   : > { %v6562_v49 = vpop.eup %6561  ;;  %v1217_v50 = vadd.f32 1.0, %v6560_v47  ;;  %6569 = vrcp.f32 %v1214_v46  ;;  %v6497_v47 = vld [vmem:[%s6727_s21 + $0x68] sm:$0xff]  }
 0x12c   : > { %v6564_v51 = vpop.eup %6563  ;;  %v1211_v55 = vadd.f32 1.0, %v6562_v49  ;;  %v6499_v49 = vld [vmem:[%s6727_s21 + $0x78] sm:$0xff]  }
 0x12d   : > { %6571 = vrcp.f32 %v1217_v50  ;;  %v1215_v53 = vadd.f32 1.0, %v6564_v51  ;;  %v6566_v54 = vpop.eup %6565  ;;  %v6500_v50 = vld [vmem:[%s6727_s21 + $0x80] sm:$0xff]   ;;  %v5448_v51 = vld [vmem:[%s6732_s25 + $0x14] sm:$0xf] }
 0x12e   : > { %6573 = vrcp.f32 %v1213_v48  ;;  %v1210_v56 = vadd.f32 1.0, %v6566_v54  ;;  %v6498_v48 = vld [vmem:[%s6727_s21 + $0x70] sm:$0xff]  }
 0x12f   : > { %6575 = vrcp.f32 %v1215_v53  ;;  %v2092_v53 = vsel %vm1482_vm2, %v5448_v51, 0  ;;  %v6502_v54 = vld [vmem:[%s6727_s21 + $0x50] sm:$0xff]  }
 0x130   : > { %6577 = vrcp.f32 %v1212_v52  ;;  %v6501_v52 = vld [vmem:[%s6727_s21 + $0x88] sm:$0xff]  }
 0x131   : > { %6579 = vrcp.f32 %v1211_v55  ;;  %v6503_v55 = vld [vmem:[%s6727_s21 + $0x58] sm:$0xff]  }
 0x132   : > { %6581 = vrcp.f32 %v1210_v56  ;;  %v6510_v56 = vld [vmem:[%s6727_s21 + $0x90] sm:$0xff]  }
 0x136   : > { %v6568_v57 = vpop.eup %6567 }
 0x137   : > { %v6914_v61 = vmul.f32 %v6568_v57, %v1184_v22  ;;  %v5410_v22 = vld [vmem:[%s6732_s25 + $0xc] sm:$0xf]  ;;  %v6511_v57 = vld [vmem:[%s6727_s21 + $0x98] sm:$0xff]  }
 0x138   : > { %v6570_v58 = vpop.eup %6569  ;;  %v1788_v24 = vsel %vm1482_vm2, %v5410_v22, 0 }
 0x139   : > { %7740 = vst [vmem:[#allocation19_spill] sm:$0xff] %v6914_v61  ;;  %v6918_v0 = vmul.f32 %v6570_v58, %v1182_v28 }
 0x13a   : > { %v6572_v59 = vpop.eup %6571 }
 0x13b   : > { %v6574_v60 = vpop.eup %6573  ;;  %v6916_v62 = vmul.f32 %v6572_v59, %v1185_v34  ;;  %7742 = vst [vmem:[#allocation21_spill] sm:$0xff] %v6918_v0 }
 0x13c   : > { %v6576_v63 = vpop.eup %6575  ;;  %v6927_v4 = vmul.f32 %v6574_v60, %v6902_v15  ;;  %v6489_v15 = vld [vmem:[%s6727_s21 + $0x8] sm:$0xff]  }
 0x13d   : > { %7741 = vst [vmem:[#allocation20_spill] sm:$0xff] %v6916_v62  ;;  %v6922_v1 = vpack.c.bf16 %v6916_v62, %v6914_v61  ;;  %v6924_v2 = vmul.f32 %v6576_v63, %v1183_v38  ;;  %v6578_v3 = vpop.eup %6577 }
 0x13e   : > { %7744 = vst [vmem:[#allocation23_spill] sm:$0xff] %v6927_v4  ;;  %v6580_v6 = vpop.eup %6579  ;;  %v6938_v7 = vmul.f32 %v6578_v3, %v6904_v19  ;;  %v6491_v19 = vld [vmem:[%s6727_s21 + $0x38] sm:$0xff]  }
 0x13f   : > { %7743 = vst [vmem:[#allocation22_spill] sm:$0xff] %v6924_v2  ;;  %v6931_v5 = vpack.c.bf16 %v6924_v2, %v6918_v0  ;;  %5918 = vmatprep.subr.bf16.mxu1 %v6922_v1  ;;  %5934 = vmatprep.subr.bf16.mxu0 %v6922_v1  ;;  %v6582_v8 = vpop.eup %6581  ;;  %v6947_v10 = vmul.f32 %v6580_v6, %v6907_v25 }
 0x140   : > { %5919 = vmatpush3.bf16.msra.mxu1 %v6922_v1  ;;  %5935 = vmatpush3.bf16.msra.mxu0 %v6922_v1  ;;  %7745 = vst [vmem:[#allocation24_spill] sm:$0xff] %v6938_v7  ;;  %v6944_v9 = vpack.c.bf16 %v6927_v4, %v6938_v7  ;;  %v6952_v11 = vmul.f32 %v6582_v8, %v6910_v31 }
 0x141   : > { %5920 = vmatprep.subr.bf16.mxu1 %v6931_v5  ;;  %5936 = vmatprep.subr.bf16.mxu0 %v6931_v5  ;;  %7746 = vst [vmem:[#allocation25_spill] sm:$0xff] %v6947_v10 }
 0x142   : > { %7747 = vst [vmem:[#allocation26_spill] sm:$0xff] %v6952_v11  ;;  %v6958_v12 = vpack.c.bf16 %v6947_v10, %v6952_v11  ;;  %v5469_v10 = vld [vmem:[%s6732_s25 + $0x18] sm:$0xf] }
 0x144   : > { %5921 = vmatpush3.bf16.msra.mxu1 %v6931_v5  ;;  %5937 = vmatpush3.bf16.msra.mxu0 %v6931_v5 }
 0x145   : > { %5922 = vmatprep.subr.bf16.mxu1 %v6944_v9  ;;  %5938 = vmatprep.subr.bf16.mxu0 %v6944_v9 }
 0x148   : > { %5923 = vmatpush3.bf16.msra.mxu1 %v6944_v9  ;;  %5939 = vmatpush3.bf16.msra.mxu0 %v6944_v9 }
 0x149   : > { %5924 = vmatprep.subr.bf16.mxu1 %v6958_v12  ;;  %5940 = vmatprep.subr.bf16.mxu0 %v6958_v12 }
 0x14c   : > { %5925 = vmatpush3.bf16.msra.mxu1 %v6958_v12  ;;  %5941 = vmatpush3.bf16.msra.mxu0 %v6958_v12 }
 0x14d   : > { %5960 = vmatprep.subr.bf16.mxu0 %v6922_v1  ;;  %6428 = vmatprep.subr.msk.bf16.mxu1 %vm1482_vm2, %v5372_v13 }
 0x14f   : > { %5943 = vmatmul.mubr.msk.bf16.vlgmr.msra.gmra.mxu0 %vm1274_vm1, %v6488_v14  ;;  %5927 = vmatmul.mubr.msk.bf16.vlgmr.msra.gmra.mxu1 %vm1274_vm1, %v6489_v15 }
 0x150   : > { %5951 = vmatpush3.bf16.msra.mxu1 %v1484_v16  ;;  %5961 = vmatpush3.bf16.msra.mxu0 %v6922_v1 }
 0x151   : > { %5962 = vmatprep.subr.bf16.mxu0 %v6931_v5  ;;  %5976 = vmatprep.subr.bf16.mxu1 %v6922_v1 }
 0x152   : > { %5946 = vmatprep.mubr.msk.bf16.mxu0 %vm1274_vm1, %v6490_v17  ;;  %5930 = vmatprep.mubr.msk.bf16.mxu1 %vm1274_vm1, %v6494_v18 }
 0x154   : > { %5963 = vmatpush3.bf16.msra.mxu0 %v6931_v5 }
 0x155   : > { %5964 = vmatprep.subr.bf16.mxu0 %v6944_v9 }
 0x157   : > { %5947 = vmatmul.mubr.msk.bf16.gmra.mxu0 %vm1274_vm1, %v6491_v19  ;;  %5931 = vmatmul.mubr.msk.bf16.gmra.mxu1 %vm1274_vm1, %v6495_v20 }
 0x158   : > { %5965 = vmatpush3.bf16.msra.mxu0 %v6944_v9  ;;  %5968 = vmatprep.mubr.msk.bf16.mxu0 %vm1274_vm1, %v6492_v21 }
 0x159   : > { %5966 = vmatprep.subr.bf16.mxu0 %v6958_v12 }
 0x15c   : > { %5967 = vmatpush3.bf16.msra.mxu0 %v6958_v12 }
 0x15d   : > { %6429 = vmatprep.subr.msk.bf16.mxu0 %vm1482_vm2, %v5410_v22 }
 0x15f   : > { %5969 = vmatmul.mubr.msk.bf16.vlgmr.msra.gmra.mxu0 %vm1274_vm1, %v6493_v23 }
 0x160   : > { %5993 = vmatpush3.bf16.msra.mxu0 %v1788_v24  ;;  %5972 = vmatprep.mubr.msk.bf16.mxu0 %vm1274_vm1, %v6502_v54 }
 0x161   : > { %6018 = vmatprep.subr.bf16.mxu0 %v6922_v1 }
 0x167   : > { %5973 = vmatmul.mubr.msk.bf16.gmra.mxu0 %vm1274_vm1, %v6503_v55 }
 0x20f   : > { %v5944_v25 = vpop.f32.mrf.mxu0  ;;  %v6998_v26 = vpop.f32.mrf.mxu1 }
 0x211   : > { %v1432_v27 = vpop.f32.mrf.mxu0  ;;  %v7000_v28 = vpop.f32.mrf.mxu1 }
 0x213   : > { %v5945_v29 = vpop.f32.mrf.mxu0  ;;  %v7002_v30 = vpop.f32.mrf.mxu1 }
 0x214   : > { %v1353_v31 = vpack.c.bf16 %v7002_v30, %v6998_v26  ;;  %v1464_v35 = vpack.c.bf16 %v5945_v29, %v5944_v25 }
 0x215   : > { %v1435_v32 = vpop.f32.mrf.mxu0  ;;  %v7006_v33 = vpop.f32.mrf.mxu1 }
 0x216   : > { %v1463_v34 = vpack.c.bf16 %v1435_v32, %v1432_v27 }
 0x217   : > { %v5948_v36 = vpop.f32.mrf.mxu0  ;;  %v7008_v37 = vpop.f32.mrf.mxu1 }
 0x218   : > { %5952 = vmatprep.mubr.msk.bf16.mxu1 %vm1469_vm3, %v1463_v34 }
 0x219   : > { %v1448_v38 = vpop.f32.mrf.mxu0  ;;  %5953 = vmatmul.mubr.msk.bf16.vlgmr.msra.gmra.mxu1 %vm1469_vm3, %v1464_v35  ;;  %v7012_v39 = vpop.f32.mrf.mxu1  ;;  %v6504_v35 = vld [vmem:[%s6727_s21 + $0xa0] sm:$0xff]  }
 0x21a   : > { %5977 = vmatpush3.bf16.msra.mxu1 %v6922_v1 }
 0x21b   : > { %5978 = vmatprep.subr.bf16.mxu1 %v6931_v5  ;;  %v5949_v40 = vpop.f32.mrf.mxu0  ;;  %v7016_v41 = vpop.f32.mrf.mxu1 }
 0x21c   : > { %v1355_v42 = vpack.c.bf16 %v7016_v41, %v7008_v37  ;;  %v1466_v46 = vpack.c.bf16 %v5949_v40, %v5948_v36  ;;  %v6506_v40 = vld [vmem:[%s6727_s21 + $0xb0] sm:$0xff]  }
 0x21d   : > { %v1451_v43 = vpop.f32.mrf.mxu0  ;;  %v7067_v3 = vpop.f32.mrf.mxu1 }
 0x21e   : > { %v1465_v44 = vpack.c.bf16 %v1451_v43, %v1448_v38  ;;  %5979 = vmatpush3.bf16.msra.mxu1 %v6931_v5  ;;  %v6505_v38 = vld [vmem:[%s6727_s21 + $0xa8] sm:$0xff]   ;;  %v6507_v43 = vld [vmem:[%s6727_s21 + $0xb8] sm:$0xff]  }
 0x21f   : > { %5980 = vmatprep.subr.bf16.mxu1 %v6944_v9  ;;  %v7057_v58 = vpop.f32.mrf.mxu0 }
 0x220   : > { %5956 = vmatprep.mubr.msk.bf16.mxu1 %vm1469_vm3, %v1465_v44  ;;  %v6508_v44 = vld [vmem:[%s6727_s21 + $0xc0] sm:$0xff]  }
 0x221   : > { %5957 = vmatmul.mubr.msk.bf16.gmra.mxu1 %vm1469_vm3, %v1466_v46  ;;  %v7060_v59 = vpop.f32.mrf.mxu0  ;;  %v6509_v46 = vld [vmem:[%s6727_s21 + $0xc8] sm:$0xff]  }
 0x222   : > { %5981 = vmatpush3.bf16.msra.mxu1 %v6944_v9  ;;  %5984 = vmatprep.mubr.msk.bf16.mxu1 %vm1274_vm1, %v6496_v45  ;;  %v5486_v45 = vld [vmem:[%s6732_s25 + $0x1c] sm:$0xf] }
 0x223   : > { %5982 = vmatprep.subr.bf16.mxu1 %v6958_v12  ;;  %v7063_v60 = vpop.f32.mrf.mxu0 }
 0x226   : > { %5983 = vmatpush3.bf16.msra.mxu1 %v6958_v12 }
 0x227   : > { %6002 = vmatprep.subr.bf16.mxu1 %v6922_v1 }
 0x229   : > { %5985 = vmatmul.mubr.msk.bf16.vlgmr.msra.gmra.mxu1 %vm1274_vm1, %v6497_v47  ;;  %v2396_v47 = vsel %vm1482_vm2, %v5486_v45, 0 }
 0x22a   : > { %6003 = vmatpush3.bf16.msra.mxu1 %v6922_v1  ;;  %5988 = vmatprep.mubr.msk.bf16.mxu1 %vm1274_vm1, %v6498_v48  ;;  %v7120_v48 = vpop.f32.mrf.mxu0 }
 0x22b   : > { %6004 = vmatprep.subr.bf16.mxu1 %v6931_v5  ;;  %v1657_v4 = vpack.c.bf16 %v7120_v48, %v7060_v59 }
 0x22e   : > { %6005 = vmatpush3.bf16.msra.mxu1 %v6931_v5 }
 0x22f   : > { %6006 = vmatprep.subr.bf16.mxu1 %v6944_v9 }
 0x231   : > { %5989 = vmatmul.mubr.msk.bf16.gmra.mxu1 %vm1274_vm1, %v6499_v49  ;;  %v7122_v49 = vpop.f32.mrf.mxu0 }
 0x232   : > { %6007 = vmatpush3.bf16.msra.mxu1 %v6944_v9  ;;  %6010 = vmatprep.mubr.msk.bf16.mxu1 %vm1274_vm1, %v6500_v50 }
 0x233   : > { %6008 = vmatprep.subr.bf16.mxu1 %v6958_v12  ;;  %v7124_v50 = vpop.f32.mrf.mxu0 }
 0x236   : > { %6009 = vmatpush3.bf16.msra.mxu1 %v6958_v12 }
 0x237   : > { %6430 = vmatprep.subr.msk.bf16.mxu1 %vm1482_vm2, %v5448_v51  ;;  %v7126_v51 = vpop.f32.mrf.mxu0 }
 0x239   : > { %6011 = vmatmul.mubr.msk.bf16.vlgmr.msra.gmra.mxu1 %vm1274_vm1, %v6501_v52 }
 0x23a   : > { %6035 = vmatpush3.bf16.msra.mxu1 %v2092_v53  ;;  %6014 = vmatprep.mubr.msk.bf16.mxu1 %vm1274_vm1, %v6510_v56  ;;  %v7130_v53 = vpop.f32.mrf.mxu0 }
 0x23b   : > { %6060 = vmatprep.subr.bf16.mxu1 %v6922_v1 }
 0x241   : > { %6015 = vmatmul.mubr.msk.bf16.gmra.mxu1 %vm1274_vm1, %v6511_v57 }
 0x2d9   : > { %v7069_v6 = vpop.f32.mrf.mxu1 }
 0x2db   : > { %v7071_v8 = vpop.f32.mrf.mxu1 }
 0x2dd   : > { %v7073_v13 = vpop.f32.mrf.mxu1 }
 0x2df   : > { %v7075_v14 = vpop.f32.mrf.mxu1 }
 0x2e1   : > { %v7077_v15 = vpop.f32.mrf.mxu1 }
 0x2e3   : > { %v7079_v16 = vpop.f32.mrf.mxu1 }
 0x2e5   : > { %v7081_v17 = vpop.f32.mrf.mxu1 }
 0x2e7   : > { %v7083_v18 = vpop.f32.mrf.mxu1 }
 0x2e9   : > { %v5986_v19 = vpop.f32.mrf.mxu1 }
 0x2eb   : > { %v1738_v20 = vpop.f32.mrf.mxu1 }
 0x2ed   : > { %v5987_v21 = vpop.f32.mrf.mxu1 }
 0x2ee   : > { %v1770_v24 = vpack.c.bf16 %v5987_v21, %v5986_v19 }
 0x2ef   : > { %v1741_v22 = vpop.f32.mrf.mxu1 }
 0x2f0   : > { %v1769_v23 = vpack.c.bf16 %v1741_v22, %v1738_v20 }
 0x2f1   : > { %v5990_v25 = vpop.f32.mrf.mxu1 }
 0x2f2   : > { %5994 = vmatprep.mubr.msk.bf16.mxu0 %vm1469_vm3, %v1769_v23 }
 0x2f3   : > { %v1754_v27 = vpop.f32.mrf.mxu1  ;;  %5995 = vmatmul.mubr.msk.bf16.vlgmr.msra.gmra.mxu0 %vm1469_vm3, %v1770_v24 }
 0x2f4   : > { %6019 = vmatpush3.bf16.msra.mxu0 %v6922_v1 }
 0x2f5   : > { %6020 = vmatprep.subr.bf16.mxu0 %v6931_v5  ;;  %v5991_v29 = vpop.f32.mrf.mxu1 }
 0x2f6   : > { %v1772_v36 = vpack.c.bf16 %v5991_v29, %v5990_v25 }
 0x2f7   : > { %v1757_v32 = vpop.f32.mrf.mxu1 }
 0x2f8   : > { %v1771_v34 = vpack.c.bf16 %v1757_v32, %v1754_v27  ;;  %6021 = vmatpush3.bf16.msra.mxu0 %v6931_v5 }
 0x2f9   : > { %6022 = vmatprep.subr.bf16.mxu0 %v6944_v9 }
 0x2fa   : > { %5998 = vmatprep.mubr.msk.bf16.mxu0 %vm1469_vm3, %v1771_v34 }
 0x2fb   : > { %5999 = vmatmul.mubr.msk.bf16.gmra.mxu0 %vm1469_vm3, %v1772_v36 }
 0x2fc   : > { %6023 = vmatpush3.bf16.msra.mxu0 %v6944_v9  ;;  %6026 = vmatprep.mubr.msk.bf16.mxu0 %vm1274_vm1, %v6504_v35 }
 0x2fd   : > { %6024 = vmatprep.subr.bf16.mxu0 %v6958_v12 }
 0x300   : > { %6025 = vmatpush3.bf16.msra.mxu0 %v6958_v12 }
 0x301   : > { %6044 = vmatprep.subr.bf16.mxu0 %v6922_v1 }
 0x303   : > { %6027 = vmatmul.mubr.msk.bf16.vlgmr.msra.gmra.mxu0 %vm1274_vm1, %v6505_v38 }
 0x304   : > { %6045 = vmatpush3.bf16.msra.mxu0 %v6922_v1  ;;  %6030 = vmatprep.mubr.msk.bf16.mxu0 %vm1274_vm1, %v6506_v40 }
 0x305   : > { %6046 = vmatprep.subr.bf16.mxu0 %v6931_v5 }
 0x308   : > { %6047 = vmatpush3.bf16.msra.mxu0 %v6931_v5 }
 0x309   : > { %6048 = vmatprep.subr.bf16.mxu0 %v6944_v9 }
 0x30b   : > { %6031 = vmatmul.mubr.msk.bf16.gmra.mxu0 %vm1274_vm1, %v6507_v43  ;;  %v6512_v43 = vld [vmem:[%s6727_s21 + $0xe0] sm:$0xff]  }
 0x30c   : > { %6049 = vmatpush3.bf16.msra.mxu0 %v6944_v9  ;;  %6052 = vmatprep.mubr.msk.bf16.mxu0 %vm1274_vm1, %v6508_v44 }
 0x30d   : > { %6050 = vmatprep.subr.bf16.mxu0 %v6958_v12 }
 0x310   : > { %6051 = vmatpush3.bf16.msra.mxu0 %v6958_v12 }
 0x311   : > { %6431 = vmatprep.subr.msk.bf16.mxu0 %vm1482_vm2, %v5486_v45  ;;  %v6513_v45 = vld [vmem:[%s6727_s21 + $0xe8] sm:$0xff]  }
 0x313   : > { %6053 = vmatmul.mubr.msk.bf16.vlgmr.msra.gmra.mxu0 %vm1274_vm1, %v6509_v46  ;;  %v6514_v46 = vld [vmem:[%s6727_s21 + $0xf0] sm:$0xff]  }
 0x314   : > { %6077 = vmatpush3.bf16.msra.mxu0 %v2396_v47  ;;  %v6515_v47 = vld [vmem:[%s6727_s21 + $0xf8] sm:$0xff]  }
 0x315   : > { %6086 = vmatprep.subr.bf16.mxu0 %v6922_v1 }
 0x3b3   : > { %v7132_v54 = vpop.f32.mrf.mxu0 }
 0x3b5   : > { %v7134_v55 = vpop.f32.mrf.mxu0 }
 0x3b7   : > { %v7136_v56 = vpop.f32.mrf.mxu0 }
 0x3b9   : > { %v7138_v57 = vpop.f32.mrf.mxu0 }
 0x3bb   : > { %v7140_v19 = vpop.f32.mrf.mxu0 }
 0x3bd   : > { %v7142_v20 = vpop.f32.mrf.mxu0 }
 0x3bf   : > { %v7144_v21 = vpop.f32.mrf.mxu0 }
 0x3c1   : > { %v7146_v22 = vpop.f32.mrf.mxu0 }
 0x3c2   : > { %7748 = vst [vmem:[#allocation27_spill] sm:$0xff] %v7146_v22 }
 0x3c3   : > { %v6028_v23 = vpop.f32.mrf.mxu0 }
 0x3c5   : > { %v2042_v24 = vpop.f32.mrf.mxu0 }
 0x3c7   : > { %v6029_v25 = vpop.f32.mrf.mxu0 }
 0x3c8   : > { %v2074_v32 = vpack.c.bf16 %v6029_v25, %v6028_v23  ;;  %v6516_v23 = vld [vmem:[%s6727_s21 + $0x110] sm:$0xff]  }
 0x3c9   : > { %v2045_v27 = vpop.f32.mrf.mxu0 }
 0x3ca   : > { %v2073_v29 = vpack.c.bf16 %v2045_v27, %v2042_v24  ;;  %v6012_v24 = vpop.f32.mrf.mxu1  ;;  %v1356_v27 = vld [vmem:[%s6732_s25] sm:$0xf] }
 0x3cb   : > { %v6032_v34 = vpop.f32.mrf.mxu0 }
 0x3cc   : > { %6036 = vmatprep.mubr.msk.bf16.mxu1 %vm1469_vm3, %v2073_v29  ;;  %v1930_v25 = vpop.f32.mrf.mxu1  ;;  %v6517_v29 = vld [vmem:[%s6727_s21 + $0x118] sm:$0xff]  }
 0x3cd   : > { %v2058_v35 = vpop.f32.mrf.mxu0  ;;  %6037 = vmatmul.mubr.msk.bf16.vlgmr.msra.gmra.mxu1 %vm1469_vm3, %v2074_v32  ;;  %v2668_v32 = vsel %vm1482_vm2, %v1356_v27, 0 }
 0x3ce   : > { %6061 = vmatpush3.bf16.msra.mxu1 %v6922_v1 }
 0x3cf   : > { %6062 = vmatprep.subr.bf16.mxu1 %v6931_v5  ;;  %v6033_v36 = vpop.f32.mrf.mxu0 }
 0x3d0   : > { %v2076_v44 = vpack.c.bf16 %v6033_v36, %v6032_v34  ;;  %v6013_v34 = vpop.f32.mrf.mxu1  ;;  %v5431_v36 = vld [vmem:[%s6732_s25 + $0x10] sm:$0xf] }
 0x3d1   : > { %v2061_v38 = vpop.f32.mrf.mxu0 }
 0x3d2   : > { %v2075_v40 = vpack.c.bf16 %v2061_v38, %v2058_v35  ;;  %6063 = vmatpush3.bf16.msra.mxu1 %v6931_v5  ;;  %v1352_v35 = vpack.c.bf16 %v7006_v33, %v7000_v28  ;;  %v1933_v38 = vpop.f32.mrf.mxu1 }
 0x3d3   : > { %6064 = vmatprep.subr.bf16.mxu1 %v6944_v9  ;;  %v1961_v33 = vpack.c.bf16 %v1933_v38, %v1930_v25  ;;  %v7207_v37 = vpop.f32.mrf.mxu0 }
 0x3d4   : > { %6040 = vmatprep.mubr.msk.bf16.mxu1 %vm1469_vm3, %v2075_v40  ;;  %v2828_v40 = vsel %vm1482_vm2, %v5431_v36, 0 }
 0x3d5   : > { %6041 = vmatmul.mubr.msk.bf16.gmra.mxu1 %vm1469_vm3, %v2076_v44  ;;  %v1354_v44 = vpack.c.bf16 %v7067_v3, %v7012_v39  ;;  %v1962_v3 = vpack.c.bf16 %v6013_v34, %v6012_v24  ;;  %v7209_v41 = vpop.f32.mrf.mxu0 }
 0x3d6   : > { %6065 = vmatpush3.bf16.msra.mxu1 %v6944_v9  ;;  %6068 = vmatprep.mubr.msk.bf16.mxu1 %vm1274_vm1, %v6512_v43  ;;  %v6016_v43 = vpop.f32.mrf.mxu1 }
 0x3d7   : > { %6066 = vmatprep.subr.bf16.mxu1 %v6958_v12 }
 0x3d8   : > { %v1946_v28 = vpop.f32.mrf.mxu1 }
 0x3da   : > { %6067 = vmatpush3.bf16.msra.mxu1 %v6958_v12 }
 0x3db   : > { %6420 = vmatprep.subr.bf16.mxu1 %v6922_v1 }
 0x3dd   : > { %6069 = vmatmul.mubr.msk.bf16.vlgmr.msra.gmra.mxu1 %vm1274_vm1, %v6513_v45  ;;  %v6017_v45 = vpop.f32.mrf.mxu1 }
 0x3de   : > { %6424 = vmatpush3.bf16.msra.mxu1 %v6922_v1  ;;  %6072 = vmatprep.mubr.msk.bf16.mxu1 %vm1274_vm1, %v6514_v46  ;;  %v1964_v30 = vpack.c.bf16 %v6017_v45, %v6016_v43  ;;  %v6519_v46 = vld [vmem:[%s6727_s21 + $0xd8] sm:$0xff]  }
 0x3df   : > { %6421 = vmatprep.subr.bf16.mxu1 %v6931_v5  ;;  %v1949_v39 = vpop.f32.mrf.mxu1 }
 0x3e0   : > { %v1963_v26 = vpack.c.bf16 %v1949_v39, %v1946_v28 }
 0x3e2   : > { %6425 = vmatpush3.bf16.msra.mxu1 %v6931_v5 }
 0x3e3   : > { %6422 = vmatprep.subr.bf16.mxu1 %v6944_v9 }
 0x3e5   : > { %6073 = vmatmul.mubr.msk.bf16.gmra.mxu1 %vm1274_vm1, %v6515_v47 }
 0x3e6   : > { %6426 = vmatpush3.bf16.msra.mxu1 %v6944_v9  ;;  %6098 = vmatprep.mubr.msk.bf16.mxu1 %vm1274_vm1, %v6516_v23 }
 0x3e7   : > { %6423 = vmatprep.subr.bf16.mxu1 %v6958_v12 }
 0x3ea   : > { %6427 = vmatpush3.bf16.msra.mxu1 %v6958_v12 }
 0x3eb   : > { %6433 = vmatprep.subr.msk.bf16.mxu1 %vm1482_vm2, %v1356_v27 }
 0x3ed   : > { %6099 = vmatmul.mubr.msk.bf16.vlgmr.msra.gmra.mxu1 %vm1274_vm1, %v6517_v29 }
 0x3ee   : > { %6114 = vmatprep.mubr.msk.bf16.mxu1 %vm1469_vm3, %v1352_v35  ;;  %6113 = vmatpush3.bf16.msra.mxu1 %v2668_v32 }
 0x3ef   : > { %6435 = vmatprep.subr.msk.bf16.mxu1 %vm1482_vm2, %v5431_v36 }
 0x3f5   : > { %6115 = vmatmul.mubr.msk.bf16.vlgmr.msra.gmra.mxu1 %vm1469_vm3, %v1353_v31  ;;  %v6518_v31 = vld [vmem:[%s6727_s21 + $0xd0] sm:$0xff]  }
 0x3f6   : > { %6118 = vmatprep.mubr.msk.bf16.mxu1 %vm1469_vm3, %v1354_v44  ;;  %6133 = vmatpush3.bf16.msra.mxu1 %v2828_v40 }
 0x3f7   : > { %6056 = vmatprep.mubr.msk.bf16.mxu0 %vm1274_vm1, %v6518_v31 }
 0x3f8   : > { %6057 = vmatmul.mubr.msk.bf16.gmra.mxu0 %vm1274_vm1, %v6519_v46 }
 0x3fd   : > { %6119 = vmatmul.mubr.msk.bf16.gmra.mxu1 %vm1469_vm3, %v1355_v42  ;;  %v7211_v42 = vpop.f32.mrf.mxu0 }
 0x3fe   : > { %6134 = vmatprep.mubr.msk.bf16.mxu1 %vm1469_vm3, %v1961_v33 }
 0x405   : > { %6135 = vmatmul.mubr.msk.bf16.vlgmr.msra.gmra.mxu1 %vm1469_vm3, %v1962_v3 }
 0x406   : > { %6138 = vmatprep.mubr.msk.bf16.mxu1 %vm1469_vm3, %v1963_v26 }
 0x40d   : > { %6139 = vmatmul.mubr.msk.bf16.gmra.mxu1 %vm1469_vm3, %v1964_v30  ;;  %v6520_v30 = vld [vmem:[%s6727_s21 + $0x100] sm:$0xff]  }
 0x48d   : > { %v7215_v23 = vpop.f32.mrf.mxu1 }
 0x48f   : > { %v7217_v24 = vpop.f32.mrf.mxu1 }
 0x491   : > { %v7219_v25 = vpop.f32.mrf.mxu1 }
 0x493   : > { %v7221_v27 = vpop.f32.mrf.mxu1 }
 0x495   : > { %v7223_v29 = vpop.f32.mrf.mxu1 }
 0x497   : > { %v7225_v32 = vpop.f32.mrf.mxu1 }
 0x499   : > { %v7227_v34 = vpop.f32.mrf.mxu1 }
 0x49b   : > { %v7229_v35 = vpop.f32.mrf.mxu1 }
 0x49d   : > { %v6070_v36 = vpop.f32.mrf.mxu1 }
 0x49f   : > { %v2346_v38 = vpop.f32.mrf.mxu1 }
 0x4a1   : > { %v6071_v40 = vpop.f32.mrf.mxu1 }
 0x4a2   : > { %v2378_v28 = vpack.c.bf16 %v6071_v40, %v6070_v36 }
 0x4a3   : > { %v2349_v43 = vpop.f32.mrf.mxu1 }
 0x4a4   : > { %v2377_v44 = vpack.c.bf16 %v2349_v43, %v2346_v38  ;;  %v5507_v43 = vld [vmem:[%s6732_s25 + $0x20] sm:$0xf] }
 0x4a5   : > { %v6074_v33 = vpop.f32.mrf.mxu1 }
 0x4a6   : > { %6078 = vmatprep.mubr.msk.bf16.mxu0 %vm1469_vm3, %v2377_v44  ;;  %v2588_v44 = vsel %vm1482_vm2, %v5507_v43, 0 }
 0x4a7   : > { %v2362_v45 = vpop.f32.mrf.mxu1  ;;  %6079 = vmatmul.mubr.msk.bf16.vlgmr.msra.gmra.mxu0 %vm1469_vm3, %v2378_v28 }
 0x4a8   : > { %6087 = vmatpush3.bf16.msra.mxu0 %v6922_v1  ;;  %v6521_v1 = vld [vmem:[%s6727_s21 + $0x108] sm:$0xff]  }
 0x4a9   : > { %6088 = vmatprep.subr.bf16.mxu0 %v6931_v5  ;;  %v6075_v39 = vpop.f32.mrf.mxu1 }
 0x4aa   : > { %v2380_v31 = vpack.c.bf16 %v6075_v39, %v6074_v33 }
 0x4ab   : > { %v2365_v3 = vpop.f32.mrf.mxu1 }
 0x4ac   : > { %v2379_v26 = vpack.c.bf16 %v2365_v3, %v2362_v45  ;;  %6089 = vmatpush3.bf16.msra.mxu0 %v6931_v5  ;;  %v2237_v5 = vpop.f32.mrf.mxu0 }
 0x4ad   : > { %6090 = vmatprep.subr.bf16.mxu0 %v6944_v9 }
 0x4ae   : > { %6082 = vmatprep.mubr.msk.bf16.mxu0 %vm1469_vm3, %v2379_v26  ;;  %v6100_v26 = vpop.f32.mrf.mxu1 }
 0x4af   : > { %6083 = vmatmul.mubr.msk.bf16.gmra.mxu0 %vm1469_vm3, %v2380_v31 }
 0x4b0   : > { %6091 = vmatpush3.bf16.msra.mxu0 %v6944_v9  ;;  %6094 = vmatprep.mubr.msk.bf16.mxu0 %vm1274_vm1, %v6520_v30  ;;  %v5393_v9 = vld [vmem:[%s6732_s25 + $0x8] sm:$0xf] }
 0x4b1   : > { %6092 = vmatprep.subr.bf16.mxu0 %v6958_v12  ;;  %v2748_v61 = vsel %vm1482_vm2, %v5393_v9, 0 }
 0x4b4   : > { %6093 = vmatpush3.bf16.msra.mxu0 %v6958_v12 }
 0x4b5   : > { %6432 = vmatprep.subr.msk.bf16.mxu0 %vm1482_vm2, %v5507_v43 }
 0x4b7   : > { %6095 = vmatmul.mubr.msk.bf16.vlgmr.msra.gmra.mxu0 %vm1274_vm1, %v6521_v1  ;;  %v2554_v1 = vpop.f32.mrf.mxu1 }
 0x4b8   : > { %v6058_v46 = vpop.f32.mrf.mxu0  ;;  %6103 = vmatpush3.bf16.msra.mxu0 %v2588_v44 }
 0x4b9   : > { %6434 = vmatprep.subr.msk.bf16.mxu0 %vm1482_vm2, %v5393_v9  ;;  %v6101_v43 = vpop.f32.mrf.mxu1 }
 0x4ba   : > { %v2250_v36 = vpop.f32.mrf.mxu0  ;;  %v2572_v11 = vpack.c.bf16 %v6101_v43, %v6100_v26 }
 0x4bb   : > { %v2557_v52 = vpop.f32.mrf.mxu1 }
 0x4bc   : > { %v6059_v38 = vpop.f32.mrf.mxu0  ;;  %v2571_v2 = vpack.c.bf16 %v2557_v52, %v2554_v1 }
 0x4bd   : > { %v2268_v40 = vpack.c.bf16 %v6059_v38, %v6058_v46 }
 0x4be   : > { %v2253_v28 = vpop.f32.mrf.mxu0 }
 0x567   : > { %v7251_v33 = vpop.f32.mrf.mxu0 }
 0x569   : > { %v7253_v12 = vpop.f32.mrf.mxu0 }
 0x56b   : > { %v7255_v45 = vpop.f32.mrf.mxu0 }
 0x56d   : > { %v7257_v39 = vpop.f32.mrf.mxu0 }
 0x56f   : > { %v7259_v3 = vpop.f32.mrf.mxu0 }
 0x571   : > { %v7261_v30 = vpop.f32.mrf.mxu0 }
 0x572   : > { %7749 = vst [vmem:[#allocation28_spill] sm:$0xff] %v7261_v30 }
 0x573   : > { %v7263_v31 = vpop.f32.mrf.mxu0 }
 0x574   : > { %7750 = vst [vmem:[#allocation29_spill] sm:$0xff] %v7263_v31 }
 0x575   : > { %v7265_v46 = vpop.f32.mrf.mxu0 }
 0x576   : > { %7751 = vst [vmem:[#allocation30_spill] sm:$0xff] %v7265_v46 }
 0x577   : > { %v6096_v38 = vpop.f32.mrf.mxu0 }
 0x579   : > { %v2538_v44 = vpop.f32.mrf.mxu0 }
 0x57b   : > { %v6097_v47 = vpop.f32.mrf.mxu0 }
 0x57c   : > { %v2570_v62 = vpack.c.bf16 %v6097_v47, %v6096_v38 }
 0x57d   : > { %v2541_v63 = vpop.f32.mrf.mxu0 }
 0x57e   : > { %v2569_v0 = vpack.c.bf16 %v2541_v63, %v2538_v44  ;;  %v2908_v63 = vsel %vm1482_vm2, %v5469_v10, 0 }
 0x580   : > { %6104 = vmatprep.mubr.msk.bf16.mxu0 %vm1469_vm3, %v2569_v0  ;;  %v1659_v0 = vpack.c.bf16 %v7130_v53, %v7124_v50 }
 0x581   : > { %6105 = vmatmul.mubr.msk.bf16.vlgmr.msra.gmra.mxu0 %vm1469_vm3, %v2570_v62  ;;  %v7752_v62 = vpack.c.bf16 %v7063_v60, %v7057_v58  ;;  %v6116_v58 = vpop.f32.mrf.mxu1 }
 0x582   : > { %6108 = vmatprep.mubr.msk.bf16.mxu0 %vm1469_vm3, %v2571_v2  ;;  %6123 = vmatpush3.bf16.msra.mxu0 %v2748_v61  ;;  %v2265_v61 = vpack.c.bf16 %v2237_v5, %v7209_v41  ;;  %v7753_v2 = vpack.c.bf16 %v7126_v51, %v7122_v49  ;;  %v2713_v7 = vadd.f32 %v6116_v58, %v7069_v6 }
 0x583   : > { %6436 = vmatprep.subr.msk.bf16.mxu0 %vm1482_vm2, %v5469_v10  ;;  %v7754_v10 = vpack.c.bf16 %v7211_v42, %v7207_v37  ;;  %v2704_v59 = vpop.f32.mrf.mxu1 }
 0x585   : > { %v6117_v60 = vpop.f32.mrf.mxu1 }
 0x587   : > { %v2707_v48 = vpop.f32.mrf.mxu1 }
 0x589   : > { %6109 = vmatmul.mubr.msk.bf16.gmra.mxu0 %vm1469_vm3, %v2572_v11  ;;  %v7720_v11 = vmov 0.0   ;;  %v6120_v49 = vpop.f32.mrf.mxu1 }
 0x58a   : > { %6124 = vmatprep.mubr.msk.bf16.mxu0 %vm1469_vm3, %v1657_v4  ;;  %v2267_v4 = vpack.c.bf16 %v2253_v28, %v2250_v36  ;;  %6152 = vmatprep.subr.bf16.mxu1 %v7720_v11  ;;  %v2729_v30 = vadd.f32 %v6120_v49, %v7077_v15 }
 0x58b   : > { %6160 = vmatprep.mubr.msk.bf16.mxu1 %vm6698_vm4, %v7720_v11  ;;  %v2720_v50 = vpop.f32.mrf.mxu1 }
 0x58c   : > { %v2721_v22 = vadd.f32 %v2720_v50, %v7079_v16 }
 0x58d   : > { %v6121_v53 = vpop.f32.mrf.mxu1 }
 0x58f   : > { %v2723_v42 = vpop.f32.mrf.mxu1 }
 0x591   : > { %6125 = vmatmul.mubr.msk.bf16.vlgmr.msra.gmra.mxu0 %vm1469_vm3, %v7752_v62  ;;  %v6136_v36 = vpop.f32.mrf.mxu1 }
 0x592   : > { %6128 = vmatprep.mubr.msk.bf16.mxu0 %vm1469_vm3, %v1659_v0  ;;  %6143 = vmatpush3.bf16.msra.mxu0 %v2908_v63  ;;  %v2873_v46 = vadd.f32 %v6136_v36, %v7215_v23 }
 0x593   : > { %6164 = vmatprep.subr.bf16.mxu0 %v7720_v11  ;;  %v2864_v28 = vpop.f32.mrf.mxu1 }
 0x595   : > { %v6137_v38 = vpop.f32.mrf.mxu1 }
 0x597   : > { %v2867_v63 = vpop.f32.mrf.mxu1 }
 0x599   : > { %6129 = vmatmul.mubr.msk.bf16.gmra.mxu0 %vm1469_vm3, %v7753_v2 }
 0x59a   : > { %6144 = vmatprep.mubr.msk.bf16.mxu0 %vm1469_vm3, %v2265_v61  ;;  %v6140_v61 = vpop.f32.mrf.mxu1 }
 0x5a1   : > { %6145 = vmatmul.mubr.msk.bf16.vlgmr.msra.gmra.mxu0 %vm1469_vm3, %v7754_v10  ;;  %v2880_v10 = vpop.f32.mrf.mxu1 }
 0x5a2   : > { %6148 = vmatprep.mubr.msk.bf16.mxu0 %vm1469_vm3, %v2267_v4 }
 0x5a3   : > { %v6141_v58 = vpop.f32.mrf.mxu1 }
 0x5a9   : > { %6149 = vmatmul.mubr.msk.bf16.gmra.mxu0 %vm1469_vm3, %v2268_v40 }
 0x5aa   : > { %6172 = vmatprep.mubr.msk.bf16.mxu0 %vm6698_vm4, %v7720_v11 }
 0x641   : > { %v6106_v51 = vpop.f32.mrf.mxu0 }
 0x643   : > { %v7303_v52 = vpop.f32.mrf.mxu0 }
 0x645   : > { %v7305_v37 = vpop.f32.mrf.mxu0 }
 0x647   : > { %v7307_v41 = vpop.f32.mrf.mxu0 }
 0x648   : > { %7755 = vst [vmem:[#allocation31_spill] sm:$0xff] %v7307_v41  ;;  %v2708_v41 = vadd.f32 %v2707_v48, %v7075_v14  ;;  %v2876_v14 = vadd.f32 %v6137_v38, %v7219_v25  ;;  %v2883_v25 = vpop.f32.mrf.mxu1  ;;  %v7760_v38 = vld [vmem:[#allocation27_spill] sm:$0xff] }
 0x649   : > { %v7309_v47 = vpop.f32.mrf.mxu0 }
 0x64a   : > { %7756 = vst [vmem:[#allocation32_spill] sm:$0xff] %v7309_v47 }
 0x64b   : > { %v7311_v5 = vpop.f32.mrf.mxu0 }
 0x64c   : > { %7757 = vst [vmem:[#allocation33_spill] sm:$0xff] %v7311_v5  ;;  %v2716_v5 = vadd.f32 %v6117_v60, %v7073_v13 }
 0x64d   : > { %v7313_v40 = vpop.f32.mrf.mxu0 }
 0x64e   : > { %7758 = vst [vmem:[#allocation34_spill] sm:$0xff] %v7313_v40  ;;  %v2705_v40 = vadd.f32 %v2704_v59, %v7071_v8  ;;  %v2865_v8 = vadd.f32 %v2864_v28, %v7217_v24 }
 0x64f   : > { %v7315_v9 = vpop.f32.mrf.mxu0 }
 0x650   : > { %7759 = vst [vmem:[#allocation35_spill] sm:$0xff] %v7315_v9 }
 0x651   : > { %v6126_v26 = vpop.f32.mrf.mxu0 }
 0x652   : > { %v2793_v11 = vadd.f32 %v6126_v26, %v7132_v54 }
 0x653   : > { %v2784_v1 = vpop.f32.mrf.mxu0 }
 0x654   : > { %v2785_v47 = vadd.f32 %v2784_v1, %v7134_v55  ;;  %v2977_v59 = vadd.f32 %v2793_v11, %v2713_v7  ;;  %v2732_v55 = vadd.f32 %v6121_v53, %v7081_v17  ;;  %v2868_v7 = vadd.f32 %v2867_v63, %v7221_v27 }
 0x655   : > { %v6127_v43 = vpop.f32.mrf.mxu0  ;;  %v2881_v53 = vadd.f32 %v2880_v10, %v7225_v32 }
 0x656   : > { %v2796_v54 = vadd.f32 %v6127_v43, %v7136_v56  ;;  %v2975_v60 = vadd.f32 %v2785_v47, %v2705_v40 }
 0x657   : > { %v2787_v44 = vpop.f32.mrf.mxu0 }
 0x658   : > { %v2788_v15 = vadd.f32 %v2787_v44, %v7138_v57  ;;  %v7761_v44 = vld [vmem:[#allocation28_spill] sm:$0xff] }
 0x659   : > { %v6130_v0 = vpop.f32.mrf.mxu0 }
 0x65a   : > { %v2809_v17 = vadd.f32 %v6130_v0, %v7140_v19  ;;  %v7762_v0 = vld [vmem:[#allocation31_spill] sm:$0xff] }
 0x65b   : > { %v2800_v62 = vpop.f32.mrf.mxu0 }
 0x65c   : > { %v2801_v27 = vadd.f32 %v2800_v62, %v7142_v20 }
 0x65d   : > { %v6131_v2 = vpop.f32.mrf.mxu0 }
 0x65e   : > { %v2979_v1 = vadd.f32 %v2801_v27, %v2721_v22 }
 0x65f   : > { %v2803_v4 = vpop.f32.mrf.mxu0 }
 0x661   : > { %v6146_v9 = vpop.f32.mrf.mxu0 }
 0x662   : > { %v2953_v31 = vadd.f32 %v6146_v9, %v7251_v33  ;;  %v2724_v33 = vadd.f32 %v2723_v42, %v7083_v18  ;;  %v2976_v42 = vadd.f32 %v2788_v15, %v2708_v41  ;;  %v2981_v9 = vadd.f32 %v2809_v17, %v2729_v30 }
 0x663   : > { %v2944_v6 = vpop.f32.mrf.mxu0 }
 0x664   : > { %v2985_v13 = vadd.f32 %v2953_v31, %v2873_v46  ;;  %v2945_v23 = vadd.f32 %v2944_v6, %v7253_v12  ;;  %v2889_v31 = vadd.f32 %v6140_v61, %v7223_v29  ;;  %v2978_v12 = vadd.f32 %v2796_v54, %v2716_v5  ;;  %v7339_v46 = vld [vmem:[%s6737_s29] ss:$0 sm:$0xff] }
 0x665   : > { %v6147_v16 = vpop.f32.mrf.mxu0  ;;  %v5529_v29 = vld [vmem:[%s6742_s3] ss:$0 sm:$0xff] }
 0x666   : > { %v2993_v56 = vadd.f32 %v2985_v13, %v2977_v59  ;;  %v2983_v48 = vadd.f32 %v2945_v23, %v2865_v8  ;;  %v2956_v24 = vadd.f32 %v6147_v16, %v7255_v45  ;;  %v2892_v45 = vadd.f32 %v6141_v58, %v7227_v34  ;;  %v7764_v58 = vld [vmem:[#allocation32_spill] sm:$0xff] }
 0x667   : > { %v2947_v18 = vpop.f32.mrf.mxu0 }
 0x668   : > { %v3001_v11 = vadd.f32 %v6106_v51, %v2993_v56  ;;  %v2991_v57 = vadd.f32 %v2983_v48, %v2975_v60  ;;  %v2986_v49 = vadd.f32 %v2956_v24, %v2876_v14  ;;  %v2948_v50 = vadd.f32 %v2947_v18, %v7257_v39  ;;  %v7765_v14 = vld [vmem:[#allocation30_spill] sm:$0xff]  ;;  %v7766_v48 = vld [vmem:[#allocation33_spill] sm:$0xff] }
 0x669   : > { %v6150_v47 = vpop.f32.mrf.mxu0  ;;  %v2884_v51 = vadd.f32 %v2883_v25, %v7229_v35  ;;  %v2812_v39 = vadd.f32 %v6131_v2, %v7144_v21  ;;  %v7767_v25 = vld [vmem:[#allocation34_spill] sm:$0xff] }
 0x66a   : > { %v3016_v19 = vmul.f32 %v7339_v46, %v3001_v11  ;;  %v2999_v5 = vadd.f32 %v2991_v57, %v7303_v52  ;;  %v2994_v36 = vadd.f32 %v2986_v49, %v2978_v12  ;;  %v2984_v40 = vadd.f32 %v2948_v50, %v2868_v7 }
 0x66b   : > { %v2969_v32 = vadd.f32 %v6150_v47, %v7259_v3  ;;  %v2960_v28 = vpop.f32.mrf.mxu0  ;;  %v2804_v52 = vadd.f32 %v2803_v4, %v7760_v38  ;;  %v2982_v61 = vadd.f32 %v2812_v39, %v2732_v55 }
 0x66c   : > { %v7351_v34 = vadd.f32 %v5529_v29, %v3016_v19  ;;  %v3014_v20 = vmul.f32 %v7339_v46, %v2999_v5  ;;  %v3002_v41 = vadd.f32 %v7305_v37, %v2994_v36  ;;  %v2992_v26 = vadd.f32 %v2984_v40, %v2976_v42  ;;  %v7763_v37 = vld [vmem:[#allocation29_spill] sm:$0xff] }
 0x66d   : > { %v2989_v43 = vadd.f32 %v2969_v32, %v2889_v31  ;;  %v2961_v63 = vadd.f32 %v2960_v28, %v7761_v44  ;;  %v6151_v35 = vpop.f32.mrf.mxu0  ;;  %v2980_v16 = vadd.f32 %v2804_v52, %v2724_v33 }
 0x66e   : > { %v5532_v30 = vmul.f32 -1.442695, %v7351_v34  ;;  %v7358_v21 = vadd.f32 %v5529_v29, %v3014_v20  ;;  %v3017_v3 = vmul.f32 %v7339_v46, %v3002_v41  ;;  %v3000_v62 = vadd.f32 %v2992_v26, %v7762_v0 }
 0x66f   : > { %v2997_v2 = vadd.f32 %v2989_v43, %v2981_v9  ;;  %v2987_v10 = vadd.f32 %v2961_v63, %v2881_v53  ;;  %v2972_v54 = vadd.f32 %v6151_v35, %v7763_v37  ;;  %v2963_v22 = vpop.f32.mrf.mxu0  ;;  %v7768_v53 = vld [vmem:[#allocation35_spill] sm:$0xff] }
 0x670   : > { %6583 = vpow2.f32 %v5532_v30  ;;  %v5530_v4 = vmul.f32 -1.442695, %v7358_v21  ;;  %v7364_v6 = vadd.f32 %v5529_v29, %v3017_v3  ;;  %v3015_v8 = vmul.f32 %v7339_v46, %v3000_v62  ;;  %v7770_v37 = vld [vmem:[#allocation23_spill] sm:$0xff] }
 0x671   : > { %v3005_v59 = vadd.f32 %v7764_v58, %v2997_v2  ;;  %v2995_v13 = vadd.f32 %v2987_v10, %v2979_v1  ;;  %v2990_v23 = vadd.f32 %v2972_v54, %v2892_v45  ;;  %v2964_v15 = vadd.f32 %v2963_v22, %v7765_v14  ;;  %v7769_v2 = vld [vmem:[#allocation24_spill] sm:$0xff] }
 0x672   : > { %6585 = vpow2.f32 %v5530_v4  ;;  %v5533_v55 = vmul.f32 -1.442695, %v7364_v6  ;;  %v3030_v60 = vadd.f32 %v5529_v29, %v3015_v8  ;;  %v7771_v8 = vld [vmem:[#allocation26_spill] sm:$0xff] }
 0x673   : > { %v3020_v56 = vmul.f32 %v7339_v46, %v3005_v59  ;;  %v3003_v24 = vadd.f32 %v2995_v13, %v7766_v48  ;;  %v2998_v7 = vadd.f32 %v2990_v23, %v2982_v61  ;;  %v2988_v31 = vadd.f32 %v2964_v15, %v2884_v51  ;;  %v7772_v13 = vld [vmem:[#allocation25_spill] sm:$0xff] }
 0x674   : > { %6587 = vpow2.f32 %v5533_v55  ;;  %v5531_v12 = vmul.f32 -1.442695, %v3030_v60 }
 0x675   : > { %v3035_v17 = vadd.f32 %v5529_v29, %v3020_v56  ;;  %v3018_v18 = vmul.f32 %v7339_v46, %v3003_v24  ;;  %v3006_v11 = vadd.f32 %v7767_v25, %v2998_v7  ;;  %v2996_v57 = vadd.f32 %v2988_v31, %v2980_v16  ;;  %v7773_v56 = vld [vmem:[#allocation19_spill] sm:$0xff]  ;;  %v7774_v24 = vld [vmem:[#allocation20_spill] sm:$0xff]  ;;  %v7775_v31 = vld [vmem:[#allocation21_spill] sm:$0xff] }
 0x676   : > { %6589 = vpow2.f32 %v5531_v12  ;;  %v7776_v25 = vld [vmem:[#allocation22_spill] sm:$0xff] }
 0x677   : > { %v5536_v33 = vmul.f32 -1.442695, %v3035_v17  ;;  %v3033_v49 = vadd.f32 %v5529_v29, %v3018_v18  ;;  %v3021_v50 = vmul.f32 %v7339_v46, %v3006_v11  ;;  %v3004_v45 = vadd.f32 %v2996_v57, %v7768_v53 }
 0x679   : > { %6591 = vpow2.f32 %v5536_v33  ;;  %v5534_v42 = vmul.f32 -1.442695, %v3033_v49  ;;  %v3036_v27 = vadd.f32 %v5529_v29, %v3021_v50  ;;  %v3019_v47 = vmul.f32 %v7339_v46, %v3004_v45  ;;  %v6522_v33 = vld [vmem:[%s6747_s8 + $0x8] sm:$0xff]   ;;  %v5544_v50 = vld [vmem:[%s6752_s14 + $0x4] sm:$0xf] }
 0x67a   : > { %v3217_v53 = vsel %vm1482_vm2, %v5544_v50, 0 }
 0x67b   : > { %6593 = vpow2.f32 %v5534_v42  ;;  %v5537_v19 = vmul.f32 -1.442695, %v3036_v27  ;;  %v3034_v5 = vadd.f32 %v5529_v29, %v3019_v47 }
 0x67d   : > { %v6584_v36 = vpop.eup %6583  ;;  %6595 = vpow2.f32 %v5537_v19  ;;  %v5535_v40 = vmul.f32 -1.442695, %v3034_v5 }
 0x67e   : > { %v3063_v51 = vadd.f32 1.0, %v6584_v36 }
 0x67f   : > { %v6586_v9 = vpop.eup %6585  ;;  %6597 = vpow2.f32 %v5535_v40 }
 0x680   : > { %6599 = vrcp.f32 %v3063_v51  ;;  %v3061_v39 = vadd.f32 1.0, %v6586_v9 }
 0x681   : > { %v6588_v32 = vpop.eup %6587 }
 0x682   : > { %6601 = vrcp.f32 %v3061_v39  ;;  %v3064_v28 = vadd.f32 1.0, %v6588_v32  ;;  %v6524_v39 = vld [vmem:[%s6747_s8 + $0x18] sm:$0xff]   ;;  %v6525_v32 = vld [vmem:[%s6747_s8 + $0x10] sm:$0xff]  }
 0x683   : > { %v6590_v20 = vpop.eup %6589 }
 0x684   : > { %6603 = vrcp.f32 %v3064_v28  ;;  %v3062_v41 = vadd.f32 1.0, %v6590_v20  ;;  %v5555_v28 = vld [vmem:[%s6752_s14 + $0xc] sm:$0xf] }
 0x685   : > { %v3374_v20 = vsel %vm1482_vm2, %v5555_v28, 0 }
 0x686   : > { %v6592_v26 = vpop.eup %6591  ;;  %6605 = vrcp.f32 %v3062_v41 }
 0x687   : > { %v3067_v46 = vadd.f32 1.0, %v6592_v26 }
 0x688   : > { %v6594_v1 = vpop.eup %6593 }
 0x689   : > { %6607 = vrcp.f32 %v3067_v46  ;;  %v3065_v29 = vadd.f32 1.0, %v6594_v1 }
 0x68a   : > { %v6596_v38 = vpop.eup %6595 }
 0x68b   : > { %6609 = vrcp.f32 %v3065_v29  ;;  %v3068_v52 = vadd.f32 1.0, %v6596_v38 }
 0x68c   : > { %v6598_v43 = vpop.eup %6597 }
 0x68d   : > { %v6600_v44 = vpop.eup %6599  ;;  %6611 = vrcp.f32 %v3068_v52  ;;  %v3066_v63 = vadd.f32 1.0, %v6598_v43 }
 0x68e   : > { %v3087_v30 = vmul.f32 %v6600_v44, %v7351_v34 }
 0x68f   : > { %v6602_v35 = vpop.eup %6601  ;;  %6613 = vrcp.f32 %v3066_v63  ;;  %v6526_v63 = vld [vmem:[%s6747_s8 + $0x28] sm:$0xff]  }
 0x690   : > { %v3085_v0 = vmul.f32 %v6602_v35, %v7358_v21  ;;  %v3095_v10 = vadd.f32 %v3087_v30, %v7769_v2  ;;  %v5566_v2 = vld [vmem:[%s6752_s14 + $0x14] sm:$0xf] }
 0x691   : > { %v6604_v3 = vpop.eup %6603 }
 0x692   : > { %v3088_v62 = vmul.f32 %v6604_v3, %v7364_v6  ;;  %v3093_v58 = vadd.f32 %v3085_v0, %v7771_v8 }
 0x693   : > { %v6606_v61 = vpop.eup %6605 }
 0x694   : > { %v3096_v54 = vadd.f32 %v3088_v62, %v7770_v37  ;;  %v3086_v22 = vmul.f32 %v6606_v61, %v3030_v60  ;;  %v6527_v61 = vld [vmem:[%s6747_s8 + $0x20] sm:$0xff]   ;;  %v6528_v37 = vld [vmem:[%s6747_s8 + $0x30] sm:$0xff]  }
 0x696   : > { %v6608_v4 = vpop.eup %6607  ;;  %v7383_v59 = vpack.c.bf16 %v3096_v54, %v3095_v10  ;;  %v3094_v23 = vadd.f32 %v3086_v22, %v7772_v13  ;;  %v3531_v10 = vsel %vm1482_vm2, %v5566_v2, 0  ;;  %v6531_v2 = vld [vmem:[%s6767_s30] sm:$0xff]  }
 0x697   : > { %v3091_v15 = vmul.f32 %v6608_v4, %v3035_v17  ;;  %v7777_v17 = vmov 0.0  }
 0x698   : > { %v6610_v14 = vpop.eup %6609  ;;  %v7386_v34 = vpack.c.bf16 %v3094_v23, %v3093_v58 }
 0x699   : > { %v3089_v16 = vmul.f32 %v6610_v14, %v3033_v49  ;;  %v3099_v48 = vadd.f32 %v3091_v15, %v7773_v56  ;;  %v6523_v49 = vld [vmem:[%s6747_s8] sm:$0xff]  }
 0x69a   : > { %v6612_v21 = vpop.eup %6611 }
 0x69b   : > { %v3092_v6 = vmul.f32 %v6612_v21, %v3036_v27  ;;  %v3097_v12 = vadd.f32 %v3089_v16, %v7775_v31  ;;  %v6529_v21 = vld [vmem:[%s6747_s8 + $0x38] sm:$0xff]   ;;  %v5550_v16 = vld [vmem:[%s6752_s14 + $0x8] sm:$0xf] }
 0x69c   : > { %v6614_v55 = vpop.eup %6613  ;;  %v5577_v31 = vld [vmem:[%s6752_s14 + $0x1c] sm:$0xf] }
 0x69d   : > { %v3100_v7 = vadd.f32 %v3092_v6, %v7774_v24  ;;  %v3090_v60 = vmul.f32 %v6614_v55, %v3034_v5  ;;  %v6530_v6 = vld [vmem:[%s6747_s8 + $0x40] sm:$0xff]   ;;  %v3884_v55 = vsel %vm1482_vm2, %v5550_v16, 0 }
 0x69f   : > { %v7391_v18 = vpack.c.bf16 %v3100_v7, %v3099_v48  ;;  %v3098_v11 = vadd.f32 %v3090_v60, %v7776_v25  ;;  %v3688_v25 = vsel %vm1482_vm2, %v5577_v31, 0 }
 0x6a1   : > { %v7394_v57 = vpack.c.bf16 %v3098_v11, %v3097_v12  ;;  %6153 = vmatpush3.bf16.msra.mxu1 %v7391_v18  ;;  %6165 = vmatpush3.bf16.msra.mxu0 %v7391_v18  ;;  %v5572_v12 = vld [vmem:[%s6752_s14 + $0x18] sm:$0xf] }
 0x6a2   : > { %6154 = vmatprep.subr.bf16.mxu1 %v7777_v17  ;;  %6166 = vmatprep.subr.bf16.mxu0 %v7777_v17  ;;  %v3978_v11 = vsel %vm1482_vm2, %v5572_v12, 0 }
 0x6a5   : > { %6155 = vmatpush3.bf16.msra.mxu1 %v7394_v57  ;;  %6167 = vmatpush3.bf16.msra.mxu0 %v7394_v57 }
 0x6a6   : > { %6156 = vmatprep.subr.bf16.mxu1 %v7777_v17  ;;  %6168 = vmatprep.subr.bf16.mxu0 %v7777_v17 }
 0x6a9   : > { %6157 = vmatpush3.bf16.msra.mxu1 %v7383_v59  ;;  %6169 = vmatpush3.bf16.msra.mxu0 %v7383_v59 }
 0x6aa   : > { %6158 = vmatprep.subr.bf16.mxu1 %v7777_v17  ;;  %6170 = vmatprep.subr.bf16.mxu0 %v7777_v17 }
 0x6ad   : > { %6159 = vmatpush3.bf16.msra.mxu1 %v7386_v34  ;;  %6171 = vmatpush3.bf16.msra.mxu0 %v7386_v34 }
 0x6ae   : > { %6182 = vmatprep.subr.bf16.mxu0 %v7777_v17  ;;  %6176 = vmatprep.subr.bf16.mxu1 %v7777_v17 }
 0x6b0   : > { %6173 = vmatmul.mubr.msk.bf16.vlgmr.msra.gmra.mxu0 %vm1274_vm1, %v6522_v33  ;;  %6161 = vmatmul.mubr.msk.bf16.vlgmr.msra.gmra.mxu1 %vm1274_vm1, %v6523_v49 }
 0x6b1   : > { %6183 = vmatpush3.bf16.msra.mxu0 %v7391_v18  ;;  %6178 = vmatprep.mubr.msk.bf16.mxu1 %vm6698_vm4, %v7777_v17 }
 0x6b2   : > { %6184 = vmatprep.subr.bf16.mxu0 %v7777_v17  ;;  %6190 = vmatprep.mubr.msk.bf16.mxu0 %vm6698_vm4, %v7777_v17 }
 0x6b3   : > { %6177 = vmatpush3.bf16.msra.mxu1 %v3217_v53 }
 0x6b4   : > { %6194 = vmatprep.subr.bf16.mxu1 %v7777_v17 }
 0x6b5   : > { %6185 = vmatpush3.bf16.msra.mxu0 %v7394_v57 }
 0x6b6   : > { %6186 = vmatprep.subr.bf16.mxu0 %v7777_v17 }
 0x6b9   : > { %6187 = vmatpush3.bf16.msra.mxu0 %v7383_v59 }
 0x6ba   : > { %6188 = vmatprep.subr.bf16.mxu0 %v7777_v17 }
 0x6bd   : > { %6189 = vmatpush3.bf16.msra.mxu0 %v7386_v34 }
 0x6be   : > { %6206 = vmatprep.subr.bf16.mxu0 %v7777_v17 }
 0x6c0   : > { %6191 = vmatmul.mubr.msk.bf16.vlgmr.msra.gmra.mxu0 %vm1274_vm1, %v6525_v32 }
 0x6c1   : > { %6208 = vmatprep.mubr.msk.bf16.mxu0 %vm6698_vm4, %v7777_v17  ;;  %6207 = vmatpush3.bf16.msra.mxu0 %v3374_v20  ;;  %v3157_v20 = vld [vmem:[%s6752_s14] sm:$0xf] }
 0x6c2   : > { %6224 = vmatprep.subr.bf16.mxu0 %v7777_v17 }
 0x770   : > { %v3203_v45 = vpop.f32.mrf.mxu0  ;;  %v7431_v42 = vpop.f32.mrf.mxu1 }
 0x772   : > { %v6174_v27 = vpop.f32.mrf.mxu0  ;;  %v6162_v47 = vpop.f32.mrf.mxu1 }
 0x774   : > { %v3206_v19 = vpop.f32.mrf.mxu0  ;;  %v7433_v5 = vpop.f32.mrf.mxu1 }
 0x775   : > { %v3210_v36 = vpack.c.bf16 %v3206_v19, %v3203_v45  ;;  %v3156_v40 = vpack.c.bf16 %v7433_v5, %v7431_v42  ;;  %v5583_v19 = vld [vmem:[%s6752_s14 + $0x20] sm:$0xf] }
 0x776   : > { %v6175_v51 = vpop.f32.mrf.mxu0  ;;  %v6163_v9 = vpop.f32.mrf.mxu1 }
 0x777   : > { %6179 = vmatmul.mubr.msk.bf16.vlgmr.msra.gmra.mxu1 %vm1469_vm3, %v3210_v36  ;;  %v3790_v9 = vsel %vm1482_vm2, %v5583_v19, 0 }
 0x778   : > { %6195 = vmatpush3.bf16.msra.mxu1 %v7391_v18  ;;  %6202 = vmatprep.mubr.msk.bf16.mxu1 %vm6698_vm4, %v7777_v17 }
 0x779   : > { %6196 = vmatprep.subr.bf16.mxu1 %v7777_v17 }
 0x77c   : > { %6197 = vmatpush3.bf16.msra.mxu1 %v7394_v57 }
 0x77d   : > { %6198 = vmatprep.subr.bf16.mxu1 %v7777_v17 }
 0x780   : > { %6199 = vmatpush3.bf16.msra.mxu1 %v7383_v59  ;;  %v3305_v35 = vpop.f32.mrf.mxu0 }
 0x781   : > { %6200 = vmatprep.subr.bf16.mxu1 %v7777_v17 }
 0x782   : > { %v6192_v30 = vpop.f32.mrf.mxu0 }
 0x784   : > { %6201 = vmatpush3.bf16.msra.mxu1 %v7386_v34  ;;  %v3308_v3 = vpop.f32.mrf.mxu0 }
 0x785   : > { %6212 = vmatprep.subr.bf16.mxu1 %v7777_v17  ;;  %v3312_v0 = vpack.c.bf16 %v3308_v3, %v3305_v35 }
 0x786   : > { %v6193_v62 = vpop.f32.mrf.mxu0 }
 0x787   : > { %6203 = vmatmul.mubr.msk.bf16.vlgmr.msra.gmra.mxu1 %vm1274_vm1, %v6524_v39 }
 0x788   : > { %6213 = vmatpush3.bf16.msra.mxu1 %v7391_v18  ;;  %6220 = vmatprep.mubr.msk.bf16.mxu1 %vm6698_vm4, %v7777_v17 }
 0x789   : > { %6214 = vmatprep.subr.bf16.mxu1 %v7777_v17 }
 0x78c   : > { %6215 = vmatpush3.bf16.msra.mxu1 %v7394_v57 }
 0x78d   : > { %6216 = vmatprep.subr.bf16.mxu1 %v7777_v17 }
 0x790   : > { %6217 = vmatpush3.bf16.msra.mxu1 %v7383_v59 }
 0x791   : > { %6218 = vmatprep.subr.bf16.mxu1 %v7777_v17 }
 0x794   : > { %6219 = vmatpush3.bf16.msra.mxu1 %v7386_v34 }
 0x795   : > { %6236 = vmatprep.subr.bf16.mxu1 %v7777_v17 }
 0x797   : > { %6221 = vmatmul.mubr.msk.bf16.vlgmr.msra.gmra.mxu1 %vm1274_vm1, %v6527_v61 }
 0x798   : > { %6238 = vmatprep.mubr.msk.bf16.mxu1 %vm6698_vm4, %v7777_v17  ;;  %6237 = vmatpush3.bf16.msra.mxu1 %v3531_v10 }
 0x799   : > { %6254 = vmatprep.subr.bf16.mxu1 %v7777_v17 }
 0x837   : > { %v7467_v41 = vpop.f32.mrf.mxu1 }
 0x839   : > { %v6180_v26 = vpop.f32.mrf.mxu1 }
 0x83b   : > { %v7469_v46 = vpop.f32.mrf.mxu1 }
 0x83d   : > { %v6181_v1 = vpop.f32.mrf.mxu1 }
 0x847   : > { %v3360_v29 = vpop.f32.mrf.mxu1 }
 0x849   : > { %v6204_v38 = vpop.f32.mrf.mxu1 }
 0x84b   : > { %v3363_v52 = vpop.f32.mrf.mxu1 }
 0x84c   : > { %v3367_v43 = vpack.c.bf16 %v3363_v52, %v3360_v29  ;;  %v3837_v29 = vsel %vm1482_vm2, %v3157_v20, 0 }
 0x84d   : > { %v6205_v44 = vpop.f32.mrf.mxu1 }
 0x84e   : > { %6209 = vmatmul.mubr.msk.bf16.vlgmr.msra.gmra.mxu0 %vm1469_vm3, %v3367_v43  ;;  %v5561_v44 = vld [vmem:[%s6752_s14 + $0x10] sm:$0xf] }
 0x84f   : > { %6225 = vmatpush3.bf16.msra.mxu0 %v7391_v18  ;;  %6232 = vmatprep.mubr.msk.bf16.mxu0 %vm6698_vm4, %v7777_v17  ;;  %v3931_v35 = vsel %vm1482_vm2, %v5561_v44, 0  ;;  %v5596_v44 = vld [vmem:[%s7779_s23] ss:$0 sm:$0xff]  ;;  %s7790_s23 = sld [smem:[#allocation13_spill]] }
 0x850   : > { %6226 = vmatprep.subr.bf16.mxu0 %v7777_v17 }
 0x853   : > { %6227 = vmatpush3.bf16.msra.mxu0 %v7394_v57 }
 0x854   : > { %6228 = vmatprep.subr.bf16.mxu0 %v7777_v17 }
 0x857   : > { %6229 = vmatpush3.bf16.msra.mxu0 %v7383_v59 }
 0x858   : > { %6230 = vmatprep.subr.bf16.mxu0 %v7777_v17 }
 0x85b   : > { %6231 = vmatpush3.bf16.msra.mxu0 %v7386_v34 }
 0x85c   : > { %6242 = vmatprep.subr.bf16.mxu0 %v7777_v17 }
 0x85e   : > { %6233 = vmatmul.mubr.msk.bf16.vlgmr.msra.gmra.mxu0 %vm1274_vm1, %v6526_v63 }
 0x85f   : > { %6243 = vmatpush3.bf16.msra.mxu0 %v7391_v18  ;;  %6250 = vmatprep.mubr.msk.bf16.mxu0 %vm6698_vm4, %v7777_v17 }
 0x860   : > { %6244 = vmatprep.subr.bf16.mxu0 %v7777_v17 }
 0x863   : > { %6245 = vmatpush3.bf16.msra.mxu0 %v7394_v57 }
 0x864   : > { %6246 = vmatprep.subr.bf16.mxu0 %v7777_v17 }
 0x867   : > { %6247 = vmatpush3.bf16.msra.mxu0 %v7383_v59 }
 0x868   : > { %6248 = vmatprep.subr.bf16.mxu0 %v7777_v17 }
 0x86b   : > { %6249 = vmatpush3.bf16.msra.mxu0 %v7386_v34 }
 0x86c   : > { %6266 = vmatprep.subr.bf16.mxu0 %v7777_v17 }
 0x86e   : > { %6251 = vmatmul.mubr.msk.bf16.vlgmr.msra.gmra.mxu0 %vm1274_vm1, %v6528_v37 }
 0x86f   : > { %6268 = vmatprep.mubr.msk.bf16.mxu0 %vm6698_vm4, %v7777_v17  ;;  %6267 = vmatpush3.bf16.msra.mxu0 %v3688_v25  ;;  %v5589_v25 = vld [vmem:[%s6757_s19] ss:$0 sm:$0xff] }
 0x870   : > { %6284 = vmatprep.subr.bf16.mxu0 %v7777_v17 }
 0x90e   : > { %v7505_v54 = vpop.f32.mrf.mxu0 }
 0x910   : > { %v6210_v22 = vpop.f32.mrf.mxu0 }
 0x912   : > { %v7507_v4 = vpop.f32.mrf.mxu0 }
 0x914   : > { %v6211_v8 = vpop.f32.mrf.mxu0 }
 0x91e   : > { %v3517_v58 = vpop.f32.mrf.mxu0 }
 0x920   : > { %v6234_v13 = vpop.f32.mrf.mxu0 }
 0x922   : > { %v3520_v23 = vpop.f32.mrf.mxu0 }
 0x923   : > { %v3524_v14 = vpack.c.bf16 %v3520_v23, %v3517_v58 }
 0x924   : > { %v6235_v15 = vpop.f32.mrf.mxu0 }
 0x925   : > { %6239 = vmatmul.mubr.msk.bf16.vlgmr.msra.gmra.mxu1 %vm1469_vm3, %v3524_v14 }
 0x926   : > { %6255 = vmatpush3.bf16.msra.mxu1 %v7391_v18  ;;  %6262 = vmatprep.mubr.msk.bf16.mxu1 %vm6698_vm4, %v7777_v17 }
 0x927   : > { %6256 = vmatprep.subr.bf16.mxu1 %v7777_v17 }
 0x92a   : > { %6257 = vmatpush3.bf16.msra.mxu1 %v7394_v57 }
 0x92b   : > { %6258 = vmatprep.subr.bf16.mxu1 %v7777_v17 }
 0x92e   : > { %6259 = vmatpush3.bf16.msra.mxu1 %v7383_v59  ;;  %v3619_v7 = vpop.f32.mrf.mxu0 }
 0x92f   : > { %6260 = vmatprep.subr.bf16.mxu1 %v7777_v17 }
 0x930   : > { %v6252_v60 = vpop.f32.mrf.mxu0 }
 0x932   : > { %6261 = vmatpush3.bf16.msra.mxu1 %v7386_v34 }
 0x933   : > { %6272 = vmatprep.subr.bf16.mxu1 %v7777_v17 }
 0x935   : > { %6263 = vmatmul.mubr.msk.bf16.vlgmr.msra.gmra.mxu1 %vm1274_vm1, %v6529_v21 }
 0x936   : > { %6273 = vmatpush3.bf16.msra.mxu1 %v7391_v18  ;;  %6280 = vmatprep.mubr.msk.bf16.mxu1 %vm6698_vm4, %v7777_v17  ;;  %v3622_v18 = vpop.f32.mrf.mxu0 }
 0x937   : > { %6274 = vmatprep.subr.bf16.mxu1 %v7777_v17 }
 0x938   : > { %v6253_v33 = vpop.f32.mrf.mxu0 }
 0x939   : > { %v5590_v33 = vld [vmem:[%s6762_s24] ss:$0 sm:$0xff] }
 0x93a   : > { %6275 = vmatpush3.bf16.msra.mxu1 %v7394_v57  ;;  %v3626_v57 = vpack.c.bf16 %v3622_v18, %v3619_v7 }
 0x93b   : > { %6276 = vmatprep.subr.bf16.mxu1 %v7777_v17 }
 0x93e   : > { %6277 = vmatpush3.bf16.msra.mxu1 %v7383_v59  ;;  %v3462_v59 = vpop.f32.mrf.mxu1 }
 0x93f   : > { %6278 = vmatprep.subr.bf16.mxu1 %v7777_v17 }
 0x942   : > { %6279 = vmatpush3.bf16.msra.mxu1 %v7386_v34  ;;  %v6222_v34 = vpop.f32.mrf.mxu1 }
 0x943   : > { %6296 = vmatprep.subr.bf16.mxu1 %v7777_v17 }
 0x944   : > { %v3465_v56 = vpop.f32.mrf.mxu1 }
 0x945   : > { %6281 = vmatmul.mubr.msk.bf16.vlgmr.msra.gmra.mxu1 %vm1274_vm1, %v6530_v6  ;;  %v3469_v48 = vpack.c.bf16 %v3465_v56, %v3462_v59 }
 0x946   : > { %6297 = vmatpush3.bf16.msra.mxu1 %v3884_v55  ;;  %6298 = vmatprep.mubr.msk.bf16.mxu1 %vm6698_vm4, %v7777_v17  ;;  %v6223_v24 = vpop.f32.mrf.mxu1 }
 0x947   : > { %6308 = vmatprep.subr.bf16.mxu1 %v7777_v17 }
 0x94d   : > { %6299 = vmatmul.mubr.msk.bf16.vlgmr.msra.gmra.mxu1 %vm1469_vm3, %v3312_v0 }
 0x94e   : > { %6310 = vmatprep.mubr.msk.bf16.mxu1 %vm6698_vm4, %v7777_v17  ;;  %6309 = vmatpush3.bf16.msra.mxu1 %v3978_v11 }
 0x94f   : > { %6320 = vmatprep.subr.bf16.mxu1 %v7777_v17 }
 0x955   : > { %6311 = vmatmul.mubr.msk.bf16.vlgmr.msra.gmra.mxu1 %vm1469_vm3, %v3626_v57 }
 0x956   : > { %6322 = vmatprep.mubr.msk.bf16.mxu1 %vm6698_vm4, %v7777_v17 }
 0x9e5   : > { %v3567_v49 = vpop.f32.mrf.mxu1 }
 0x9e7   : > { %v6240_v50 = vpop.f32.mrf.mxu1 }
 0x9e9   : > { %v7551_v53 = vpop.f32.mrf.mxu1 }
 0x9eb   : > { %v6241_v45 = vpop.f32.mrf.mxu1 }
 0x9f5   : > { %v3674_v27 = vpop.f32.mrf.mxu1 }
 0x9f7   : > { %v6264_v47 = vpop.f32.mrf.mxu1 }
 0x9f9   : > { %v3677_v36 = vpop.f32.mrf.mxu1 }
 0x9fa   : > { %v3681_v51 = vpack.c.bf16 %v3677_v36, %v3674_v27 }
 0x9fb   : > { %v6265_v39 = vpop.f32.mrf.mxu1 }
 0x9fc   : > { %6269 = vmatmul.mubr.msk.bf16.vlgmr.msra.gmra.mxu0 %vm1469_vm3, %v3681_v51 }
 0x9fd   : > { %6285 = vmatpush3.bf16.msra.mxu0 %v3790_v9  ;;  %6286 = vmatprep.mubr.msk.bf16.mxu0 %vm6698_vm4, %v7777_v17 }
 0x9fe   : > { %6290 = vmatprep.subr.bf16.mxu0 %v7777_v17 }
 0xa05   : > { %v3776_v32 = vpop.f32.mrf.mxu1 }
 0xa07   : > { %v6282_v28 = vpop.f32.mrf.mxu1 }
 0xa09   : > { %v3779_v26 = vpop.f32.mrf.mxu1 }
 0xa0a   : > { %v3783_v1 = vpack.c.bf16 %v3779_v26, %v3776_v32 }
 0xa0b   : > { %v6283_v38 = vpop.f32.mrf.mxu1 }
 0xa0c   : > { %6287 = vmatmul.mubr.msk.bf16.vlgmr.msra.gmra.mxu0 %vm1469_vm3, %v3783_v1  ;;  %v6532_v1 = vld [vmem:[%s6782_s20] sm:$0xff]  }
 0xa0d   : > { %v3920_v52 = vpop.f32.mrf.mxu1  ;;  %6291 = vmatpush3.bf16.msra.mxu0 %v3837_v29  ;;  %6292 = vmatprep.mubr.msk.bf16.mxu0 %vm6698_vm4, %v7777_v17  ;;  %v5595_v38 = vld [vmem:[%s7778_s22] ss:$0 sm:$0xff]  ;;  %s7789_s22 = sld [smem:[#allocation14_spill]] }
 0xa0e   : > { %6302 = vmatprep.subr.bf16.mxu0 %v7777_v17  ;;  %v3921_v6 = vadd.f32 %v3920_v52, %v7505_v54  ;;  %6321 = vmatpush3.bf16.msra.mxu1 %v6532_v1 }
 0xa0f   : > { %v6300_v43 = vpop.f32.mrf.mxu1  ;;  %6332 = vmatprep.subr.bf16.mxu1 %v7777_v17 }
 0xa11   : > { %v3923_v63 = vpop.f32.mrf.mxu1 }
 0xa12   : > { %v3924_v60 = vadd.f32 %v3923_v63, %v7507_v4 }
 0xa13   : > { %v6301_v30 = vpop.f32.mrf.mxu1 }
 0xa14   : > { %6293 = vmatmul.mubr.msk.bf16.vlgmr.msra.gmra.mxu0 %vm1469_vm3, %v3156_v40 }
 0xa15   : > { %6303 = vmatpush3.bf16.msra.mxu0 %v3931_v35  ;;  %6304 = vmatprep.mubr.msk.bf16.mxu0 %vm6698_vm4, %v7777_v17  ;;  %v4014_v3 = vpop.f32.mrf.mxu1 }
 0xa16   : > { %6314 = vmatprep.subr.bf16.mxu0 %v7777_v17 }
 0xa17   : > { %v6312_v0 = vpop.f32.mrf.mxu1 }
 0xa19   : > { %v4017_v62 = vpop.f32.mrf.mxu1 }
 0xa1b   : > { %v6313_v61 = vpop.f32.mrf.mxu1 }
 0xa1c   : > { %6305 = vmatmul.mubr.msk.bf16.vlgmr.msra.gmra.mxu0 %vm1469_vm3, %v3469_v48  ;;  %v5599_v61 = vld [vmem:[%s7780_s26] ss:$0 sm:$0xff]  ;;  %s7791_s26 = sld [smem:[#allocation17_spill]] }
 0xa1d   : > { %6316 = vmatprep.mubr.msk.bf16.mxu0 %vm6698_vm4, %v7777_v17  ;;  %6315 = vmatpush3.bf16.msra.mxu0 %v6531_v2 }
 0xa1e   : > { %6326 = vmatprep.subr.bf16.mxu0 %v7777_v17 }
 0xabc   : > { %v3724_v42 = vpop.f32.mrf.mxu0 }
 0xabd   : > { %v4015_v55 = vadd.f32 %v4014_v3, %v3724_v42  ;;  %v5600_v42 = vld [vmem:[%s7781_s28] ss:$0 sm:$0xff]  ;;  %s7792_s28 = sld [smem:[#allocation15_spill]] }
 0xabe   : > { %v6270_v5 = vpop.f32.mrf.mxu0 }
 0xac0   : > { %v3727_v40 = vpop.f32.mrf.mxu0 }
 0xac1   : > { %v4018_v31 = vadd.f32 %v4017_v62, %v3727_v40 }
 0xac2   : > { %v6271_v10 = vpop.f32.mrf.mxu0 }
 0xacc   : > { %v3826_v37 = vpop.f32.mrf.mxu0 }
 0xace   : > { %v6288_v22 = vpop.f32.mrf.mxu0 }
 0xad0   : > { %v3829_v8 = vpop.f32.mrf.mxu0 }
 0xad2   : > { %v6289_v58 = vpop.f32.mrf.mxu0 }
 0xad4   : > { %v3873_v13 = vpop.f32.mrf.mxu0 }
 0xad5   : > { %v3874_v21 = vadd.f32 %v3873_v13, %v7467_v41 }
 0xad6   : > { %v6294_v23 = vpop.f32.mrf.mxu0 }
 0xad7   : > { %v4021_v56 = vadd.f32 %v3921_v6, %v3874_v21 }
 0xad8   : > { %v3876_v14 = vpop.f32.mrf.mxu0 }
 0xad9   : > { %v3877_v48 = vadd.f32 %v3876_v14, %v7469_v46 }
 0xada   : > { %v6295_v15 = vpop.f32.mrf.mxu0 }
 0xadb   : > { %v4022_v11 = vadd.f32 %v3924_v60, %v3877_v48  ;;  %v6533_v48 = vld [vmem:[%s7782_s1] sm:$0xff]   ;;  %v6536_v60 = vld [vmem:[%s7782_s1 + $0x18] sm:$0xff]  }
 0xadc   : > { %v3967_v16 = vpop.f32.mrf.mxu0 }
 0xadd   : > { %v3968_v59 = vadd.f32 %v3967_v16, %v3567_v49 }
 0xade   : > { %v6306_v34 = vpop.f32.mrf.mxu0 }
 0xadf   : > { %v4023_v24 = vadd.f32 %v4015_v55, %v3968_v59 }
 0xae0   : > { %v3970_v7 = vpop.f32.mrf.mxu0 }
 0xae1   : > { %v4025_v12 = vadd.f32 %v4023_v24, %v4021_v56  ;;  %v3971_v18 = vadd.f32 %v3970_v7, %v7551_v53  ;;  %v6534_v24 = vld [vmem:[%s7782_s1 + $0x8] sm:$0xff]   ;;  %v6535_v7 = vld [vmem:[%s7782_s1 + $0x10] sm:$0xff]  }
 0xae2   : > { %v6307_v41 = vpop.f32.mrf.mxu0 }
 0xae3   : > { %v4027_v57 = vadd.f32 %v4025_v12, %v3826_v37  ;;  %v4024_v54 = vadd.f32 %v4018_v31, %v3971_v18  ;;  %v6537_v31 = vld [vmem:[%s7782_s1 + $0x20] sm:$0xff]   ;;  %v6538_v12 = vld [vmem:[%s7782_s1 + $0x28] sm:$0xff]   ;;  %v6539_v18 = vld [vmem:[%s7782_s1 + $0x30] sm:$0xff]  }
 0xae4   : > { %v6541_v41 = vld [vmem:[%s7782_s1 + $0x40] sm:$0xff]  }
 0xae5   : > { %v4036_v50 = vmul.f32 %v5589_v25, %v4027_v57  ;;  %v4026_v49 = vadd.f32 %v4024_v54, %v4022_v11  ;;  %v6542_v11 = vld [vmem:[%s7783_s2 + $0x8] sm:$0xff]   ;;  %v6543_v57 = vld [vmem:[%s7783_s2] sm:$0xff]  }
 0xae7   : > { %v4045_v45 = vadd.f32 %v5590_v33, %v4036_v50  ;;  %v4028_v27 = vadd.f32 %v4026_v49, %v3829_v8 }
 0xae9   : > { %v5591_v47 = vmul.f32 -1.442695, %v4045_v45  ;;  %v4037_v46 = vmul.f32 %v5589_v25, %v4028_v27  ;;  %v6540_v25 = vld [vmem:[%s7782_s1 + $0x38] sm:$0xff]  }
 0xaeb   : > { %6615 = vpow2.f32 %v5591_v47  ;;  %v4046_v19 = vadd.f32 %v5590_v33, %v4037_v46 }
 0xaed   : > { %v5592_v4 = vmul.f32 -1.442695, %v4046_v19 }
 0xaef   : > { %6617 = vpow2.f32 %v5592_v4 }
 0xaf8   : > { %v6616_v36 = vpop.eup %6615 }
 0xaf9   : > { %v4053_v51 = vadd.f32 1.0, %v6616_v36 }
 0xafb   : > { %6619 = vrcp.f32 %v4053_v51 }
 0xafc   : > { %v6618_v53 = vpop.eup %6617 }
 0xafd   : > { %v4054_v9 = vadd.f32 1.0, %v6618_v53 }
 0xaff   : > { %6621 = vrcp.f32 %v4054_v9 }
 0xb08   : > { %v6620_v39 = vpop.eup %6619 }
 0xb09   : > { %v4059_v28 = vmul.f32 %v6620_v39, %v4045_v45 }
 0xb0c   : > { %v6622_v32 = vpop.eup %6621 }
 0xb0d   : > { %v4060_v20 = vmul.f32 %v6622_v32, %v4046_v19 }
 0xb0f   : > { %v4061_v26 = vpack.c.bf16 %v4060_v20, %v4059_v28 }
 0xb11   : > { %6317 = vmatmul.mubr.msk.bf16.vlgmr.msra.gmra.mxu0 %vm1078_vm0, %v4061_v26 }
 0xb12   : > { %6328 = vmatprep.mubr.msk.bf16.mxu0 %vm6698_vm4, %v7777_v17 }
 0xbd1   : > { %v4107_v29 = vpop.f32.mrf.mxu0 }
 0xbd2   : > { %v4121_v43 = vmul.f32 %v5595_v38, %v4107_v29  ;;  %v5617_v29 = vld [vmem:[%s7784_s7 + $0x2] ss:$0 sm:$0xff] }
 0xbd3   : > { %v6318_v52 = vpop.f32.mrf.mxu0 }
 0xbd4   : > { %v7593_v3 = vadd.f32 %v5596_v44, %v4121_v43  ;;  %v5629_v52 = vld [vmem:[%s7784_s7 + $0x4] ss:$0 sm:$0xff]  ;;  %v5635_v43 = vld [vmem:[%s7784_s7 + $0x5] ss:$0 sm:$0xff] }
 0xbd5   : > { %v4110_v63 = vpop.f32.mrf.mxu0 }
 0xbd6   : > { %v4122_v35 = vmul.f32 %v5595_v38, %v4110_v63  ;;  %v5623_v38 = vld [vmem:[%s7784_s7 + $0x3] ss:$0 sm:$0xff] }
 0xbd7   : > { %v6319_v30 = vpop.f32.mrf.mxu0 }
 0xbd8   : > { %v7595_v0 = vadd.f32 %v5596_v44, %v4122_v35  ;;  %v5605_v35 = vld [vmem:[%s7784_s7] ss:$0 sm:$0xff]  ;;  %v5611_v30 = vld [vmem:[%s7784_s7 + $0x1] ss:$0 sm:$0xff] }
 0xbda   : > { %v4132_v62 = vpack.c.bf16 %v7595_v0, %v7593_v3 }
 0xbdc   : > { %6323 = vmatmul.mubr.msk.bf16.vlgmr.msra.gmra.mxu1 %vm1078_vm0, %v4132_v62 }
 0xbdd   : > { %6334 = vmatprep.mubr.msk.bf16.mxu1 %vm6698_vm4, %v7777_v17 }
 0xc9c   : > { %v4178_v2 = vpop.f32.mrf.mxu1 }
 0xc9d   : > { %v4192_v5 = vmul.f32 %v5599_v61, %v4178_v2 }
 0xc9e   : > { %v6324_v40 = vpop.f32.mrf.mxu1 }
 0xc9f   : > { %v4201_v10 = vadd.f32 %v5600_v42, %v4192_v5  ;;  %v5641_v5 = vld [vmem:[%s7784_s7 + $0x6] ss:$0 sm:$0xff]  ;;  %v5647_v40 = vld [vmem:[%s7784_s7 + $0x7] ss:$0 sm:$0xff] }
 0xca0   : > { %v4181_v37 = vpop.f32.mrf.mxu1 }
 0xca1   : > { %v5601_v22 = vmul.f32 -1.442695, %v4201_v10  ;;  %v4193_v8 = vmul.f32 %v5599_v61, %v4181_v37 }
 0xca2   : > { %v6325_v58 = vpop.f32.mrf.mxu1 }
 0xca3   : > { %6623 = vpow2.f32 %v5601_v22  ;;  %v4202_v13 = vadd.f32 %v5600_v42, %v4193_v8 }
 0xca5   : > { %v5602_v23 = vmul.f32 -1.442695, %v4202_v13 }
 0xca7   : > { %6625 = vpow2.f32 %v5602_v23 }
 0xcb0   : > { %v6624_v14 = vpop.eup %6623 }
 0xcb1   : > { %v4209_v15 = vadd.f32 1.0, %v6624_v14 }
 0xcb3   : > { %6627 = vrcp.f32 %v4209_v15 }
 0xcb4   : > { %v6626_v21 = vpop.eup %6625 }
 0xcb5   : > { %v4210_v16 = vadd.f32 1.0, %v6626_v21 }
 0xcb7   : > { %6629 = vrcp.f32 %v4210_v16 }
 0xcc0   : > { %v6628_v6 = vpop.eup %6627 }
 0xcc1   : > { %v4215_v59 = vmul.f32 %v6628_v6, %v4201_v10 }
 0xcc4   : > { %v6630_v55 = vpop.eup %6629 }
 0xcc5   : > { %v4216_v34 = vmul.f32 %v6630_v55, %v4202_v13 }
 0xcc7   : > { %v4217_v56 = vpack.c.bf16 %v4216_v34, %v4215_v59 }
 0xcc9   : > { %6327 = vmatpush3.bf16.msra.mxu0 %v4217_v56  ;;  %6333 = vmatpush3.bf16.msra.mxu1 %v4217_v56 }
 0xcca   : > { %6338 = vmatprep.subr.bf16.mxu0 %v7777_v17  ;;  %6344 = vmatprep.subr.bf16.mxu1 %v7777_v17 }
 0xccc   : > { %6329 = vmatmul.mubr.msk.bf16.vlgmr.msra.gmra.mxu0 %vm1078_vm0, %v6533_v48  ;;  %6335 = vmatmul.mubr.msk.bf16.vlgmr.msra.gmra.mxu1 %vm1078_vm0, %v6534_v24 }
 0xccd   : > { %6339 = vmatpush3.bf16.msra.mxu0 %v4217_v56  ;;  %6345 = vmatpush3.bf16.msra.mxu1 %v4217_v56 }
 0xcce   : > { %6340 = vmatprep.mubr.msk.bf16.mxu0 %vm6698_vm4, %v7777_v17  ;;  %6346 = vmatprep.mubr.msk.bf16.mxu1 %vm6698_vm4, %v7777_v17 }
 0xccf   : > { %6350 = vmatprep.subr.bf16.mxu0 %v7777_v17  ;;  %6356 = vmatprep.subr.bf16.mxu1 %v7777_v17 }
 0xcd4   : > { %6341 = vmatmul.mubr.msk.bf16.vlgmr.msra.gmra.mxu0 %vm1078_vm0, %v6535_v7  ;;  %6347 = vmatmul.mubr.msk.bf16.vlgmr.msra.gmra.mxu1 %vm1078_vm0, %v6536_v60 }
 0xcd5   : > { %6351 = vmatpush3.bf16.msra.mxu0 %v4217_v56  ;;  %6357 = vmatpush3.bf16.msra.mxu1 %v4217_v56 }
 0xcd6   : > { %6352 = vmatprep.mubr.msk.bf16.mxu0 %vm6698_vm4, %v7777_v17  ;;  %6358 = vmatprep.mubr.msk.bf16.mxu1 %vm6698_vm4, %v7777_v17 }
 0xcd7   : > { %6362 = vmatprep.subr.bf16.mxu0 %v7777_v17  ;;  %6368 = vmatprep.subr.bf16.mxu1 %v7777_v17 }
 0xcdc   : > { %6353 = vmatmul.mubr.msk.bf16.vlgmr.msra.gmra.mxu0 %vm1078_vm0, %v6537_v31  ;;  %6359 = vmatmul.mubr.msk.bf16.vlgmr.msra.gmra.mxu1 %vm1078_vm0, %v6538_v12 }
 0xcdd   : > { %6363 = vmatpush3.bf16.msra.mxu0 %v4217_v56  ;;  %6369 = vmatpush3.bf16.msra.mxu1 %v4217_v56 }
 0xcde   : > { %6364 = vmatprep.mubr.msk.bf16.mxu0 %vm6698_vm4, %v7777_v17  ;;  %6370 = vmatprep.mubr.msk.bf16.mxu1 %vm6698_vm4, %v7777_v17 }
 0xcdf   : > { %6374 = vmatprep.subr.bf16.mxu0 %v7777_v17  ;;  %6380 = vmatprep.subr.bf16.mxu1 %v7777_v17 }
 0xce4   : > { %6365 = vmatmul.mubr.msk.bf16.vlgmr.msra.gmra.mxu0 %vm1078_vm0, %v6539_v18  ;;  %6371 = vmatmul.mubr.msk.bf16.vlgmr.msra.gmra.mxu1 %vm1078_vm0, %v6540_v25 }
 0xce5   : > { %6375 = vmatpush3.bf16.msra.mxu0 %v4217_v56  ;;  %6376 = vmatprep.mubr.msk.bf16.mxu0 %vm6698_vm4, %v7777_v17 }
 0xce6   : > { %6384 = vmatprep.mubr.msk.bf16.mxu1 %vm6698_vm4, %v7777_v17  ;;  %6388 = vmatprep.subr.bf16.mxu0 %v7777_v17 }
 0xce7   : > { %6381 = vmatpush3.bf16.msra.mxu1 %v6542_v11 }
 0xce8   : > { %6382 = vmatprep.subr.bf16.mxu1 %v7777_v17 }
 0xceb   : > { %6383 = vmatpush3.bf16.msra.mxu1 %v6543_v57 }
 0xcec   : > { %6377 = vmatmul.mubr.msk.bf16.vlgmr.msra.gmra.mxu0 %vm1078_vm0, %v6541_v41  ;;  %6394 = vmatprep.subr.bf16.mxu1 %v7777_v17 }
 0xced   : > { %6390 = vmatprep.mubr.msk.bf16.mxu0 %vm6698_vm4, %v7777_v17 }
 0xd8c   : > { %v4262_v54 = vpop.f32.mrf.mxu0  ;;  %v4323_v33 = vpop.f32.mrf.mxu1 }
 0xd8d   : > { %v4276_v22 = vmul.f32 %v5605_v35, %v4262_v54  ;;  %v4338_v8 = vmul.f32 %v5611_v30, %v4323_v33  ;;  %v5653_v54 = vld [vmem:[%s7784_s7 + $0x8] ss:$0 sm:$0xff] }
 0xd8e   : > { %v6330_v50 = vpop.f32.mrf.mxu0  ;;  %v6336_v49 = vpop.f32.mrf.mxu1 }
 0xd8f   : > { %v4774_v24 = vadd.f32 %v4338_v8, %v4276_v22 }
 0xd90   : > { %v4265_v45 = vpop.f32.mrf.mxu0  ;;  %v4326_v27 = vpop.f32.mrf.mxu1 }
 0xd91   : > { %v4277_v7 = vmul.f32 %v5605_v35, %v4265_v45  ;;  %v4339_v12 = vmul.f32 %v5611_v30, %v4326_v27 }
 0xd92   : > { %v6331_v47 = vpop.f32.mrf.mxu0  ;;  %v6337_v46 = vpop.f32.mrf.mxu1 }
 0xd94   : > { %v4385_v19 = vpop.f32.mrf.mxu0  ;;  %v4447_v4 = vpop.f32.mrf.mxu1 }
 0xd95   : > { %v4400_v62 = vmul.f32 %v5617_v29, %v4385_v19  ;;  %v4462_v61 = vmul.f32 %v5623_v38, %v4447_v4  ;;  %v4775_v19 = vadd.f32 %v4339_v12, %v4277_v7 }
 0xd96   : > { %v6342_v36 = vpop.f32.mrf.mxu0  ;;  %v6348_v51 = vpop.f32.mrf.mxu1 }
 0xd97   : > { %v4776_v15 = vadd.f32 %v4462_v61, %v4400_v62  ;;  %v5654_v51 = vld [vmem:[%s7785_s10] ss:$0 sm:$0xff]  ;;  %s7793_s10 = sld [smem:[#allocation16_spill]] }
 0xd98   : > { %v4388_v53 = vpop.f32.mrf.mxu0  ;;  %v4450_v9 = vpop.f32.mrf.mxu1 }
 0xd99   : > { %v4401_v21 = vmul.f32 %v5617_v29, %v4388_v53  ;;  %v4463_v16 = vmul.f32 %v5623_v38, %v4450_v9  ;;  %v4782_v33 = vadd.f32 %v4776_v15, %v4774_v24 }
 0xd9a   : > { %v6343_v39 = vpop.f32.mrf.mxu0  ;;  %v6349_v32 = vpop.f32.mrf.mxu1 }
 0xd9b   : > { %v4777_v50 = vadd.f32 %v4463_v16, %v4401_v21  ;;  %v5655_v39 = vld [vmem:[%s7786_s11] ss:$0 sm:$0xff]  ;;  %s7794_s11 = sld [smem:[#allocation18_spill]] }
 0xd9c   : > { %v4509_v28 = vpop.f32.mrf.mxu0  ;;  %v4571_v20 = vpop.f32.mrf.mxu1 }
 0xd9d   : > { %v4524_v10 = vmul.f32 %v5629_v52, %v4509_v28  ;;  %v4586_v37 = vmul.f32 %v5635_v43, %v4571_v20  ;;  %v4783_v27 = vadd.f32 %v4777_v50, %v4775_v19 }
 0xd9e   : > { %v6354_v26 = vpop.f32.mrf.mxu0  ;;  %v6360_v1 = vpop.f32.mrf.mxu1 }
 0xd9f   : > { %v4778_v59 = vadd.f32 %v4586_v37, %v4524_v10 }
 0xda0   : > { %v4512_v44 = vpop.f32.mrf.mxu0  ;;  %v4574_v63 = vpop.f32.mrf.mxu1 }
 0xda1   : > { %v4525_v34 = vmul.f32 %v5629_v52, %v4512_v44  ;;  %v4587_v56 = vmul.f32 %v5635_v43, %v4574_v63 }
 0xda2   : > { %v6355_v2 = vpop.f32.mrf.mxu0  ;;  %v6361_v42 = vpop.f32.mrf.mxu1 }
 0xda3   : > { %v4779_v49 = vadd.f32 %v4587_v56, %v4525_v34 }
 0xda4   : > { %v4633_v58 = vpop.f32.mrf.mxu0  ;;  %v4695_v13 = vpop.f32.mrf.mxu1 }
 0xda5   : > { %v4648_v23 = vmul.f32 %v5641_v5, %v4633_v58  ;;  %v4710_v14 = vmul.f32 %v5647_v40, %v4695_v13 }
 0xda6   : > { %v6366_v6 = vpop.f32.mrf.mxu0  ;;  %v6372_v55 = vpop.f32.mrf.mxu1 }
 0xda7   : > { %v4780_v48 = vadd.f32 %v4710_v14, %v4648_v23  ;;  %v4908_v6 = vld [vmem:[%s7787_s0] sm:$0xf]  ;;  %s5328_s0 = sshll.u32 %s7796_s16, 3 }
 0xda8   : > { %v4636_v60 = vpop.f32.mrf.mxu0  ;;  %v4698_v31 = vpop.f32.mrf.mxu1  ;;  %v4920_v55 = vsel %vm1482_vm2, %v4908_v6, 0 }
 0xda9   : > { %v4784_v18 = vadd.f32 %v4780_v48, %v4778_v59  ;;  %v4649_v25 = vmul.f32 %v5641_v5, %v4636_v60  ;;  %v4711_v41 = vmul.f32 %v5647_v40, %v4698_v31  ;;  %6389 = vmatpush3.bf16.msra.mxu0 %v4920_v55  ;;  %v5658_v59 = vld [vmem:[%s7788_s18] ss:$0 sm:$0xff]  ;;  %s1040_s18 = scalar_lea.vmem %s6877_s12, %s5328_s0 }
 0xdaa   : > { %v6367_v11 = vpop.f32.mrf.mxu0  ;;  %v6373_v57 = vpop.f32.mrf.mxu1  ;;  %6402 = vmatprep.subr.bf16.mxu0 %v7777_v17 }
 0xdab   : > { %v4781_v47 = vadd.f32 %v4711_v41, %v4649_v25  ;;  %v4786_v45 = vadd.f32 %v4784_v18, %v4782_v33  ;;  %v6544_v11 = vld [vmem:[%s7789_s22 + $0x8] sm:$0xff]   ;;  %v6545_v57 = vld [vmem:[%s7789_s22] sm:$0xff]  }
 0xdac   : > { %v4757_v46 = vpop.f32.mrf.mxu0 }
 0xdad   : > { %v4785_v4 = vadd.f32 %v4781_v47, %v4779_v49  ;;  %v4772_v36 = vmul.f32 %v5653_v54, %v4757_v46 }
 0xdae   : > { %v6378_v53 = vpop.f32.mrf.mxu0 }
 0xdaf   : > { %v4788_v9 = vadd.f32 %v4786_v45, %v4772_v36  ;;  %v4787_v26 = vadd.f32 %v4785_v4, %v4783_v27  ;;  %v4968_v45 = vlaneseq }
 0xdb0   : > { %v4760_v32 = vpop.f32.mrf.mxu0 }
 0xdb1   : > { %v4797_v28 = vmul.f32 %v5654_v51, %v4788_v9  ;;  %v4773_v20 = vmul.f32 %v5653_v54, %v4760_v32  ;;  %v5663_v54 = vld [vmem:[%s7790_s23] ss:$0 sm:$0xff] }
 0xdb2   : > { %v6379_v1 = vpop.f32.mrf.mxu0 }
 0xdb3   : > { %v4806_v29 = vadd.f32 %v5655_v39, %v4797_v28  ;;  %v4789_v38 = vadd.f32 %v4787_v26, %v4773_v20  ;;  %v6546_v20 = vld [vmem:[%s7791_s26] sm:$0xff]  }
 0xdb4   : > { %v5669_v26 = vld [vmem:[%s7792_s28] ss:$0 sm:$0xff] }
 0xdb5   : > { %v5656_v52 = vmul.f32 -1.442695, %v4806_v29  ;;  %v4798_v43 = vmul.f32 %v5654_v51, %v4789_v38  ;;  %v4969_v51 = vshrl.u32 %v4968_v45, 7  ;;  %v5670_v38 = vld [vmem:[%s7793_s10] ss:$0 sm:$0xff] }
 0xdb7   : > { %6631 = vpow2.f32 %v5656_v52  ;;  %v4807_v44 = vadd.f32 %v5655_v39, %v4798_v43  ;;  %v4970_v53 = vsub.s32 0, %v4969_v51 }
 0xdb9   : > { %v5657_v63 = vmul.f32 -1.442695, %v4807_v44 }
 0xdbb   : > { %6633 = vpow2.f32 %v5657_v63 }
 0xdc4   : > { %v6632_v35 = vpop.eup %6631 }
 0xdc5   : > { %v4814_v30 = vadd.f32 1.0, %v6632_v35 }
 0xdc7   : > { %6635 = vrcp.f32 %v4814_v30 }
 0xdc8   : > { %v6634_v62 = vpop.eup %6633 }
 0xdc9   : > { %v4815_v61 = vadd.f32 1.0, %v6634_v62 }
 0xdcb   : > { %6637 = vrcp.f32 %v4815_v61 }
 0xdd4   : > { %v6636_v2 = vpop.eup %6635 }
 0xdd5   : > { %v4820_v42 = vmul.f32 %v6636_v2, %v4806_v29 }
 0xdd7   : > { %v4823_v10 = vsel %vm4822_vm5, %v4820_v42, 0.0 }
 0xdd8   : > { %v6638_v5 = vpop.eup %6637 }
 0xdd9   : > { %v4821_v40 = vmul.f32 %v6638_v5, %v4807_v44  ;;  %v6548_v5 = vld [vmem:[%s6867_s27 + $0x10] sm:$0xff]  }
 0xddb   : > { %v4824_v37 = vsel %vm4822_vm5, %v4821_v40, 0.0 }
 0xddc   : > { %v4825_v22 = vadd.f32 %v4824_v37, %v4823_v10  ;;  %v6550_v10 = vld [vmem:[%s6867_s27] sm:$0xff]  }
 0xddd   : > { %v5674_v37 = vld [vmem:[%s6862_s6] ss:$0 sm:$0xff] }
 0xdde   : > { %v4826_v8 = vrot.slane %v4825_v22, 4 }
 0xde0   : > { %v4827_v58 = vadd.f32 %v4826_v8, %v4825_v22 }
 0xde2   : > { %v4828_v13 = vrot.slane %v4827_v58, 2 }
 0xde4   : > { %v4829_v23 = vadd.f32 %v4828_v13, %v4827_v58 }
 0xde6   : > { %v4830_v14 = vrot.slane %v4829_v23, 1 }
 0xde8   : > { %v4831_v15 = vadd.f32 %v4830_v14, %v4829_v23 }
 0xdea   : > { %v4832_v21 = vmul.f32 0.0625, %v4831_v15 }
 0xdec   : > { %v4833_v16 = vpack.c.bf16 %v4832_v21, %v4832_v21 }
 0xdee   : > { %6385 = vmatmul.mubr.msk.bf16.vlgmr.msra.gmra.mxu1 %vm4822_vm5, %v4833_v16 }
 0xdef   : > { %6398 = vmatprep.mubr.msk.bf16.mxu1 %vm6698_vm4, %v7777_v17  ;;  %6395 = vmatpush3.bf16.msra.mxu1 %v6544_v11 }
 0xdf0   : > { %6396 = vmatprep.subr.bf16.mxu1 %v7777_v17 }
 0xdf3   : > { %6397 = vmatpush3.bf16.msra.mxu1 %v6545_v57 }
 0xdf4   : > { %6408 = vmatprep.subr.bf16.mxu1 %v7777_v17 }
 0xeae   : > { %v4894_v34 = vpop.f32.mrf.mxu1 }
 0xeaf   : > { %v4895_v56 = vadd.f32 %v5658_v59, %v4894_v34 }
 0xeb0   : > { %v6386_v48 = vpop.f32.mrf.mxu1 }
 0xeb1   : > { %v5662_v24 = vmul.f32 -1.442695, %v4895_v56 }
 0xeb2   : > { %v4897_v7 = vpop.f32.mrf.mxu1 }
 0xeb3   : > { %6639 = vpow2.f32 %v5662_v24 }
 0xeb4   : > { %v6387_v60 = vpop.f32.mrf.mxu1 }
 0xec0   : > { %v6640_v31 = vpop.eup %6639 }
 0xec1   : > { %v4903_v12 = vadd.f32 1.0, %v6640_v31 }
 0xec3   : > { %6641 = vrcp.f32 %v4903_v12 }
 0xed0   : > { %v6642_v18 = vpop.eup %6641 }
 0xed1   : > { %v4906_v25 = vmul.f32 %v6642_v18, %v4895_v56 }
 0xed3   : > { %v4907_v41 = vpack.c.bf16 %v4906_v25, %v4906_v25 }
 0xed5   : > { %6391 = vmatmul.mubr.msk.bf16.vlgmr.msra.gmra.mxu0 %vm1469_vm3, %v4907_v41 }
 0xed6   : > { %6404 = vmatprep.mubr.msk.bf16.mxu0 %vm6698_vm4, %v7777_v17  ;;  %6403 = vmatpush3.bf16.msra.mxu0 %v6546_v20 }
 0xf95   : > { %v4956_v33 = vpop.f32.mrf.mxu0 }
 0xf96   : > { %v4957_v50 = vadd.f32 %v5663_v54, %v4956_v33 }
 0xf97   : > { %v6392_v49 = vpop.f32.mrf.mxu0 }
 0xf98   : > { %v5665_v47 = vmul.f32 -1.442695, %v4957_v50  ;;  %v5677_v50 = vld [vmem:[%s6872_s4] ss:$0 sm:$0xff] }
 0xf99   : > { %v4959_v46 = vpop.f32.mrf.mxu0 }
 0xf9a   : > { %6643 = vpow2.f32 %v5665_v47 }
 0xf9b   : > { %v6393_v19 = vpop.f32.mrf.mxu0 }
 0xfa7   : > { %v6644_v4 = vpop.eup %6643 }
 0xfa8   : > { %v4965_v36 = vadd.f32 1.0, %v6644_v4 }
 0xfaa   : > { %6645 = vrcp.f32 %v4965_v36 }
 0xfb7   : > { %v6646_v27 = vpop.eup %6645 }
 0xfb8   : > { %v4971_v9 = vrot.slane %v6646_v27, %v4970_v53 }
 0xfba   : > { %v4972_v39 = vmul.f32 %v4971_v9, %v4820_v42  ;;  %v4973_v32 = vmul.f32 %v4971_v9, %v4821_v40  ;;  %v6547_v42 = vld [vmem:[%s6867_s27 + $0x18] sm:$0xff]   ;;  %v6549_v40 = vld [vmem:[%s6867_s27 + $0x8] sm:$0xff]  }
 0xfbc   : > { %v4974_v28 = vpack.c.bf16 %v4973_v32, %v4972_v39 }
 0xfbe   : > { %6399 = vmatmul.mubr.msk.bf16.vlgmr.msra.gmra.mxu1 %vm4822_vm5, %v4974_v28 }
 0xfbf   : > { %6416 = vmatprep.mubr.msk.bf16.mxu1 %vm6698_vm4, %v7777_v17  ;;  %6409 = vmatpush3.bf16.msra.mxu1 %v6547_v42 }
 0xfc0   : > { %6410 = vmatprep.subr.bf16.mxu1 %v7777_v17 }
 0xfc3   : > { %6411 = vmatpush3.bf16.msra.mxu1 %v6548_v5 }
 0xfc4   : > { %6412 = vmatprep.subr.bf16.mxu1 %v7777_v17 }
 0xfc7   : > { %6413 = vmatpush3.bf16.msra.mxu1 %v6549_v40 }
 0xfc8   : > { %6414 = vmatprep.subr.bf16.mxu1 %v7777_v17 }
 0xfcb   : > { %6415 = vmatpush3.bf16.msra.mxu1 %v6550_v10 }
0x107e   : > { %v5028_v1 = vpop.f32.mrf.mxu1 }
0x107f   : > { %v5042_v29 = vmul.f32 %v5669_v26, %v5028_v1 }
0x1080   : > { %v6400_v52 = vpop.f32.mrf.mxu1 }
0x1081   : > { %v5051_v44 = vadd.f32 %v5670_v38, %v5042_v29 }
0x1082   : > { %v5031_v43 = vpop.f32.mrf.mxu1 }
0x1083   : > { %v5043_v63 = vmul.f32 %v5669_v26, %v5031_v43  ;;  %v5053_v62 = vadd.f32 %v5051_v44, %v7593_v3  ;;  %v5673_v3 = vld [vmem:[%s7794_s11] ss:$0 sm:$0xff] }
0x1084   : > { %v6401_v35 = vpop.f32.mrf.mxu1 }
0x1085   : > { %v5052_v30 = vadd.f32 %v5670_v38, %v5043_v63 }
0x1087   : > { %v5054_v61 = vadd.f32 %v5052_v30, %v7595_v0 }
0x1089   : > { %v5055_v2 = vpack.c.bf16 %v5054_v61, %v5053_v62 }
0x108b   : > { %6405 = vmatmul.mubr.msk.bf16.vlgmr.msra.gmra.mxu0 %vm1078_vm0, %v5055_v2 }
0x114b   : > { %v5101_v0 = vpop.f32.mrf.mxu0 }
0x114c   : > { %v5115_v22 = vmul.f32 %v5673_v3, %v5101_v0 }
0x114d   : > { %v6406_v8 = vpop.f32.mrf.mxu0 }
0x114e   : > { %v5124_v58 = vadd.f32 %v5674_v37, %v5115_v22 }
0x114f   : > { %v5104_v13 = vpop.f32.mrf.mxu0 }
0x1150   : > { %v5675_v23 = vmul.f32 -1.442695, %v5124_v58  ;;  %v5116_v14 = vmul.f32 %v5673_v3, %v5104_v13 }
0x1151   : > { %v6407_v15 = vpop.f32.mrf.mxu0 }
0x1152   : > { %6647 = vpow2.f32 %v5675_v23  ;;  %v5125_v21 = vadd.f32 %v5674_v37, %v5116_v14 }
0x1154   : > { %v5676_v16 = vmul.f32 -1.442695, %v5125_v21 }
0x1156   : > { %6649 = vpow2.f32 %v5676_v16 }
0x115f   : > { %v6648_v6 = vpop.eup %6647 }
0x1160   : > { %v5132_v55 = vadd.f32 1.0, %v6648_v6 }
0x1162   : > { %6651 = vrcp.f32 %v5132_v55 }
0x1163   : > { %v6650_v17 = vpop.eup %6649 }
0x1164   : > { %v5133_v59 = vadd.f32 1.0, %v6650_v17 }
0x1166   : > { %6653 = vrcp.f32 %v5133_v59 }
0x116f   : > { %v6652_v34 = vpop.eup %6651 }
0x1170   : > { %v5138_v56 = vmul.f32 %v6652_v34, %v5124_v58 }
0x1172   : > { %v5140_v7 = vsel %vm1274_vm1, %v5138_v56, 0.0 }
0x1173   : > { %v6654_v48 = vpop.eup %6653 }
0x1174   : > { %v5139_v24 = vmul.f32 %v6654_v48, %v5125_v21 }
0x1176   : > { %v5141_v60 = vsel %vm1274_vm1, %v5139_v24, 0.0 }
0x1177   : > { %v5142_v31 = vadd.f32 %v5141_v60, %v5140_v7 }
0x1179   : > { %v5143_v12 = vrot.slane %v5142_v31, 4 }
0x117b   : > { %v5144_v18 = vadd.f32 %v5143_v12, %v5142_v31 }
0x117d   : > { %v5145_v25 = vrot.slane %v5144_v18, 2 }
0x117f   : > { %v5146_v41 = vadd.f32 %v5145_v25, %v5144_v18 }
0x1181   : > { %v5147_v11 = vrot.slane %v5146_v41, 1 }
0x1183   : > { %v5148_v57 = vadd.f32 %v5147_v11, %v5146_v41 }
0x1185   : > { %v5149_v54 = vmul.f32 0.0625, %v5148_v57 }
0x1187   : > { %v5150_v33 = vpack.c.bf16 %v5149_v54, %v5149_v54 }
0x1189   : > { %6417 = vmatmul.mubr.msk.bf16.vlgmr.msra.gmra.mxu1 %vm1274_vm1, %v5150_v33 }
0x1249   : > { %v5227_v49 = vpop.f32.mrf.mxu1 }
0x124a   : > { %v5228_v47 = vadd.f32 %v5677_v50, %v5227_v49 }
0x124b   : > { %v6418_v46 = vpop.f32.mrf.mxu1 }
0x124c   : > { %5233 = vst [vmem:[%s1040_s18] sm:$0xff] %v5228_v47 }
0x124d   : > { %v5230_v19 = vpop.f32.mrf.mxu1 }
0x124f   : > { %v6419_v4 = vpop.f32.mrf.mxu1 }
0x1250 PF: > { %s79_s15 = sadd.s32 1, %s6661_s15  }
0x1251   : > { %p76_p4 = scmp.ge.s32.totalorder %s79_s15, 4  }
0x1253   :  { %78 = sbr.rel (!%p76_p4) target bundleno = 57 (0x39), region = 268 }

</bundles_post_ra>
